<compile_context>
chip_gen: v6e
topology: v6e:2x2x1
jax: 0.10.0
libtpu: 0.0.40
codegen_flags: <defaults>
</compile_context>

<pallas_src>
import functools

import jax
import jax.numpy as jnp
from jax.experimental import pallas as pl
from jax.experimental.pallas import tpu as pltpu

HEADS = 8
SEG = 128            # lane padding of each fused-projection segment (vreg width)
OUT_PAD = 128        # lane-dense kernel output width


def _leaky_relu(x, slope=0.2):
    return jnp.where(x > 0, x, slope * x)


def _elu(x):
    return jnp.where(x > 0, x, jnp.exp(x) - 1.0)


def _gatv2_attention(x, wcat_ref, bcat_ref, ablk_ref, mask, *, n, hc, c_lin):
    """One GATv2Conv + parallel dense skip, all heads batched in H*C lanes.

    Returns (conv [n, hc]   -- per-head outputs, head-major lane layout,
             lin  [n, c_lin] -- dense skip branch).
    """
    # Fused projection [x@Wl | x@Wr | x@Wlin]; each segment is padded to 128
    # lanes so every slice below starts on a vreg boundary (no lane shifts).
    proj = jnp.dot(x.astype(jnp.bfloat16), wcat_ref[...],
                   preferred_element_type=jnp.float32) + bcat_ref[...]
    xl = proj[:, :hc]                         # source features (lin_l)
    xr = proj[:, SEG:SEG + hc]                # target features (lin_r)
    lin = proj[:, 2 * SEG:2 * SEG + c_lin]    # dense skip (lin1/2/3)

    # GATv2 scores for all heads, directly in the H*C lane layout:
    #   ablk_exp[k, k'] = att[head(k), chan(k)] iff head(k) == head(k')
    # so s[i, j, k'] equals e[i, j, head(k')] replicated over that head's
    # channel lanes -> the softmax weights below multiply xl element-wise.
    pair = _leaky_relu(xr[:, None, :] + xl[None, :, :])             # [n, n, hc]
    s = jnp.dot(pair.reshape(n * n, hc).astype(jnp.bfloat16), ablk_ref[...],
                preferred_element_type=jnp.float32).reshape(n, n, hc)

    # Masked softmax over the source axis j. Shift-invariant, so no -inf bias
    # is needed: the mask multiply zeroes non-edges and the d==0 guard keeps
    # nodes without in-edges at conv = 0.
    m = jnp.max(s, axis=1, keepdims=True)                           # [n, 1, hc]
    p = jnp.exp(s - m) * mask[:, :, None]                           # [n, n, hc]
    d = jnp.sum(p, axis=1)                                          # [n, hc]
    d = jnp.where(d == 0.0, 1.0, d)

    # Weighted aggregation of source messages; per-(node, head) normalization
    # via an approx EUP reciprocal instead of a full divide.
    num = jnp.sum(p * xl[None, :, :], axis=1)                       # [n, hc]
    conv = num * pl.reciprocal(d, approx=True)
    return conv, lin


def gat_fused_kernel(x_ref, mask_ref,
                     w1_ref, b1_ref, a1_ref, bc1_ref,
                     w2_ref, b2_ref, a2_ref, bc2_ref,
                     w3_ref, b3_ref, a3_ref, bc3_ref, hmean3_ref,
                     out_ref, *, n, heads, c_hidden, c_out, out_pad):
    mask = mask_ref[...]                 # [n, n]; mask[i, j] = 1 iff edge j->i
    hc_h = heads * c_hidden
    hc_o = heads * c_out

    # Layer 1: x = elu(conv1(x) + lin1(x))
    conv, lin = _gatv2_attention(x_ref[...], w1_ref, b1_ref, a1_ref, mask,
                                 n=n, hc=hc_h, c_lin=hc_h)
    y = _elu(conv + bc1_ref[...] + lin)

    # Layer 2: x = elu(conv2(x) + lin2(x))
    conv, lin = _gatv2_attention(y, w2_ref, b2_ref, a2_ref, mask,
                                 n=n, hc=hc_h, c_lin=hc_h)
    y = _elu(conv + bc2_ref[...] + lin)

    # Layer 3 (concat=False): mean over heads via a tiny bf16 [hc_o, c_out]
    # matmul, then the conv output bias and the dense skip.
    conv, lin = _gatv2_attention(y, w3_ref, b3_ref, a3_ref, mask,
                                 n=n, hc=hc_o, c_lin=c_out)
    conv = jnp.dot(conv.astype(jnp.bfloat16), hmean3_ref[...],
                   preferred_element_type=jnp.float32)
    y = conv + bc3_ref[...] + lin                                   # [n, c_out]

    # Lane-dense store: pad the narrow result to out_pad (=128) lanes.
    pad = jnp.zeros((n, out_pad - c_out), jnp.float32)
    out_ref[...] = jnp.concatenate([y, pad], axis=-1)


# ---------------------------------------------------------------------------
# Host-side constant preparation (run ONCE at parameter-init time).
# ---------------------------------------------------------------------------

def _pad_lanes(a, width):
    return jnp.pad(a, ((0, 0), (0, width - a.shape[1])))


def _prepare_layer(params, heads, ch):
    """Fused / block-structured constants for one GATv2 layer."""
    hc = heads * ch
    wcat = jnp.concatenate([_pad_lanes(params["wl"], SEG),
                            _pad_lanes(params["wr"], SEG),
                            _pad_lanes(params["wlin"], SEG)],
                           axis=1).astype(jnp.bfloat16)          # [F, 3*SEG]
    bcat = jnp.concatenate([_pad_lanes(params["bl"], SEG),
                            _pad_lanes(params["br"], SEG),
                            _pad_lanes(params["blin"], SEG)],
                           axis=1)                               # [1, 3*SEG] f32
    # Block-diagonal attention matrix producing scores in the H*C lane layout.
    head_of = jnp.arange(hc) // ch
    ablk_exp = jnp.where(head_of[:, None] == head_of[None, :],
                         params["att"].reshape(-1)[:, None],
                         0.0).astype(jnp.bfloat16)               # [hc, hc]
    return wcat, bcat, ablk_exp, params["bconv"]


def prepare_gat_params(p1, p2, p3, *, hidden, out_channels):
    """Hoisted per-call constant construction; call once after init."""
    c1 = _prepare_layer(p1, HEADS, hidden)
    c2 = _prepare_layer(p2, HEADS, hidden)
    c3 = _prepare_layer(p3, HEADS, out_channels)
    hc3 = HEADS * out_channels
    hmean3 = ((jnp.arange(hc3)[:, None] % out_channels)
              == jnp.arange(out_channels)[None, :]
              ).astype(jnp.bfloat16) / HEADS                     # [hc3, c_out]
    return (*c1, *c2, *c3, hmean3)


@functools.partial(jax.jit, static_argnames=("hidden", "out_channels"))
def gat_forward(x, adj_mask, consts, *, hidden, out_channels):
    n = x.shape[0]
    kernel = functools.partial(gat_fused_kernel, n=n, heads=HEADS,
                               c_hidden=hidden, c_out=out_channels,
                               out_pad=OUT_PAD)
    args = (x, adj_mask, *consts)
    vmem = pl.BlockSpec(memory_space=pltpu.MemorySpace.VMEM)
    out = pl.pallas_call(
        kernel,
        out_shape=jax.ShapeDtypeStruct((n, OUT_PAD), jnp.float32),
        in_specs=[vmem] * len(args),
        out_specs=vmem,
    )(*args)
    return out[:, :out_channels]


def init_layer_params(key, f_in, ch, heads, concat):
    ks = jax.random.split(key, 8)
    hc = heads * ch
    out_dim = hc if concat else ch

    def glorot(k, shape):
        fan_in, fan_out = shape[-2], shape[-1]
        scale = jnp.sqrt(6.0 / (fan_in + fan_out))
        return jax.random.uniform(k, shape, jnp.float32, -scale, scale)

    return dict(
        wl=glorot(ks[0], (f_in, hc)),
        bl=0.01 * jax.random.normal(ks[1], (1, hc), jnp.float32),
        wr=glorot(ks[2], (f_in, hc)),
        br=0.01 * jax.random.normal(ks[3], (1, hc), jnp.float32),
        att=glorot(ks[4], (heads, ch)),
        bconv=0.01 * jax.random.normal(ks[5], (1, out_dim), jnp.float32),
        wlin=glorot(ks[6], (f_in, out_dim)),
        blin=0.01 * jax.random.normal(ks[7], (1, out_dim), jnp.float32),
    )


if __name__ == "__main__":
    N = 16            # nodes
    F_IN = 8          # input feature dim
    HIDDEN = 8        # hidden_channels
    OUT = 4           # out_channels

    root = jax.random.PRNGKey(0)
    k_x, k_e1, k_e2, k_p1, k_p2, k_p3 = jax.random.split(root, 6)

    # Node features.
    x = jax.random.normal(k_x, (N, F_IN), jnp.float32)

    # edge_index: ring in both directions + 24 random edges (PyG [2, E] layout).
    src_ring = jnp.arange(N, dtype=jnp.int32)
    dst_ring = (src_ring + 1) % N
    extra_src = jax.random.randint(k_e1, (24,), 0, N, dtype=jnp.int32)
    extra_dst = jax.random.randint(k_e2, (24,), 0, N, dtype=jnp.int32)
    edge_src = jnp.concatenate([src_ring, dst_ring, extra_src])
    edge_dst = jnp.concatenate([dst_ring, src_ring, extra_dst])
    edge_index = jnp.stack([edge_src, edge_dst])   # parity with the PyG API

    # Dense adjacency mask (add_self_loops=False: only the given edges).
    adj_mask = jnp.zeros((N, N), jnp.float32).at[edge_dst, edge_src].set(1.0)

    p1 = init_layer_params(k_p1, F_IN, HIDDEN, HEADS, concat=True)
    p2 = init_layer_params(k_p2, HIDDEN * HEADS, HIDDEN, HEADS, concat=True)
    p3 = init_layer_params(k_p3, HIDDEN * HEADS, OUT, HEADS, concat=False)

    # Hoisted out of the forward path: done once, reused for every call.
    consts = prepare_gat_params(p1, p2, p3, hidden=HIDDEN, out_channels=OUT)
    consts = jax.block_until_ready(consts)

    out = gat_forward(x, adj_mask, consts, hidden=HIDDEN, out_channels=OUT)
    out = jax.block_until_ready(out)
    assert out.shape == (N, OUT), out.shape
    assert jnp.all(jnp.isfinite(out))
    print("KERNEL_OK")
</pallas_src>

<mosaic_0001>
module attributes {stable_mosaic.version = 11 : i64} {
  func.func @gat_fused_kernel(%arg0: memref<16x8xf32, #tpu.memory_space<vmem>>, %arg1: memref<16x16xf32, #tpu.memory_space<vmem>>, %arg2: memref<8x384xbf16, #tpu.memory_space<vmem>>, %arg3: memref<1x384xf32, #tpu.memory_space<vmem>>, %arg4: memref<64x64xbf16, #tpu.memory_space<vmem>>, %arg5: memref<1x64xf32, #tpu.memory_space<vmem>>, %arg6: memref<64x384xbf16, #tpu.memory_space<vmem>>, %arg7: memref<1x384xf32, #tpu.memory_space<vmem>>, %arg8: memref<64x64xbf16, #tpu.memory_space<vmem>>, %arg9: memref<1x64xf32, #tpu.memory_space<vmem>>, %arg10: memref<64x384xbf16, #tpu.memory_space<vmem>>, %arg11: memref<1x384xf32, #tpu.memory_space<vmem>>, %arg12: memref<32x32xbf16, #tpu.memory_space<vmem>>, %arg13: memref<1x4xf32, #tpu.memory_space<vmem>>, %arg14: memref<32x4xbf16, #tpu.memory_space<vmem>>, %arg15: memref<16x128xf32, #tpu.memory_space<vmem>>) attributes {dimension_semantics = [], scalar_prefetch = 0 : i64, scratch_operands = 0 : i64, tpu.core_type = #tpu.core_type<tc>} {
    %c0 = arith.constant 0 : index
    %c0_0 = arith.constant 0 : index
    %0 = vector.load %arg1[%c0, %c0_0] : memref<16x16xf32, #tpu.memory_space<vmem>>, vector<16x16xf32>
    %c0_1 = arith.constant 0 : index
    %c0_2 = arith.constant 0 : index
    %1 = vector.load %arg0[%c0_1, %c0_2] : memref<16x8xf32, #tpu.memory_space<vmem>>, vector<16x8xf32>
    %2 = arith.truncf %1 : vector<16x8xf32> to vector<16x8xbf16>
    %c0_3 = arith.constant 0 : index
    %c0_4 = arith.constant 0 : index
    %3 = vector.load %arg2[%c0_3, %c0_4] : memref<8x384xbf16, #tpu.memory_space<vmem>>, vector<8x384xbf16>
    %cst = arith.constant dense<0.000000e+00> : vector<16x384xf32>
    %4 = tpu.matmul %2, %3, %cst {dimension_numbers = #tpu.dot_dimension_numbers<[1], [0], [0], [1], [0, 0, 1, 1], [], []>} : vector<16x8xbf16>, vector<8x384xbf16>, vector<16x384xf32> -> vector<16x384xf32>
    %c0_5 = arith.constant 0 : index
    %c0_6 = arith.constant 0 : index
    %5 = vector.load %arg3[%c0_5, %c0_6] : memref<1x384xf32, #tpu.memory_space<vmem>>, vector<1x384xf32>
    %6 = vector.broadcast %5 : vector<1x384xf32> to vector<16x384xf32>
    %7 = arith.addf %4, %6 : vector<16x384xf32>
    %8 = vector.extract_strided_slice %7 {offsets = [0, 0], sizes = [16, 64], strides = [1, 1]} : vector<16x384xf32> to vector<16x64xf32>
    %9 = vector.extract_strided_slice %7 {offsets = [0, 128], sizes = [16, 64], strides = [1, 1]} : vector<16x384xf32> to vector<16x64xf32>
    %10 = vector.extract_strided_slice %7 {offsets = [0, 256], sizes = [16, 64], strides = [1, 1]} : vector<16x384xf32> to vector<16x64xf32>
    %11 = vector.shape_cast %9 : vector<16x64xf32> to vector<16x1x64xf32>
    %12 = vector.shape_cast %8 : vector<16x64xf32> to vector<1x16x64xf32>
    %13 = vector.broadcast %11 : vector<16x1x64xf32> to vector<16x16x64xf32>
    %14 = vector.broadcast %12 : vector<1x16x64xf32> to vector<16x16x64xf32>
    %15 = arith.addf %13, %14 : vector<16x16x64xf32>
    %cst_7 = arith.constant 0.000000e+00 : f32
    %16 = vector.broadcast %cst_7 : f32 to vector<16x16x64xf32>
    %17 = arith.cmpf ogt, %15, %16 : vector<16x16x64xf32>
    %cst_8 = arith.constant 2.000000e-01 : f32
    %18 = vector.broadcast %cst_8 : f32 to vector<16x16x64xf32>
    %19 = arith.mulf %18, %15 : vector<16x16x64xf32>
    %20 = arith.select %17, %15, %19 : vector<16x16x64xi1>, vector<16x16x64xf32>
    %21 = vector.shape_cast %20 : vector<16x16x64xf32> to vector<256x64xf32>
    %22 = arith.truncf %21 : vector<256x64xf32> to vector<256x64xbf16>
    %c0_9 = arith.constant 0 : index
    %c0_10 = arith.constant 0 : index
    %23 = vector.load %arg4[%c0_9, %c0_10] : memref<64x64xbf16, #tpu.memory_space<vmem>>, vector<64x64xbf16>
    %cst_11 = arith.constant dense<0.000000e+00> : vector<256x64xf32>
    %24 = tpu.matmul %22, %23, %cst_11 {dimension_numbers = #tpu.dot_dimension_numbers<[1], [0], [0], [1], [0, 0, 1, 1], [], []>} : vector<256x64xbf16>, vector<64x64xbf16>, vector<256x64xf32> -> vector<256x64xf32>
    %25 = vector.shape_cast %24 : vector<256x64xf32> to vector<16x16x64xf32>
    %cst_12 = arith.constant dense<0xFF800000> : vector<16x64xf32>
    %26 = vector.multi_reduction <maximumf>, %25, %cst_12 [1] : vector<16x16x64xf32> to vector<16x64xf32>
    %27 = vector.shape_cast %26 : vector<16x64xf32> to vector<16x1x64xf32>
    %28 = vector.broadcast %27 : vector<16x1x64xf32> to vector<16x16x64xf32>
    %29 = arith.subf %25, %28 : vector<16x16x64xf32>
    %30 = math.exp %29 : vector<16x16x64xf32>
    %31 = vector.shape_cast %0 : vector<16x16xf32> to vector<16x16x1xf32>
    %32 = vector.broadcast %31 : vector<16x16x1xf32> to vector<16x16x64xf32>
    %33 = arith.mulf %30, %32 : vector<16x16x64xf32>
    %cst_13 = arith.constant dense<0.000000e+00> : vector<16x64xf32>
    %34 = vector.multi_reduction <add>, %33, %cst_13 [1] : vector<16x16x64xf32> to vector<16x64xf32>
    %cst_14 = arith.constant 0.000000e+00 : f32
    %35 = vector.broadcast %cst_14 : f32 to vector<16x64xf32>
    %36 = arith.cmpf oeq, %34, %35 : vector<16x64xf32>
    %cst_15 = arith.constant 1.000000e+00 : f32
    %37 = vector.broadcast %cst_15 : f32 to vector<16x64xf32>
    %38 = arith.select %36, %37, %34 : vector<16x64xi1>, vector<16x64xf32>
    %39 = vector.shape_cast %8 : vector<16x64xf32> to vector<1x16x64xf32>
    %40 = vector.broadcast %39 : vector<1x16x64xf32> to vector<16x16x64xf32>
    %41 = arith.mulf %33, %40 : vector<16x16x64xf32>
    %cst_16 = arith.constant dense<0.000000e+00> : vector<16x64xf32>
    %42 = vector.multi_reduction <add>, %41, %cst_16 [1] : vector<16x16x64xf32> to vector<16x64xf32>
    %43 = tpu.reciprocal %38 {approx = true} : vector<16x64xf32> -> vector<16x64xf32>
    %44 = arith.mulf %42, %43 : vector<16x64xf32>
    %c0_17 = arith.constant 0 : index
    %c0_18 = arith.constant 0 : index
    %45 = vector.load %arg5[%c0_17, %c0_18] : memref<1x64xf32, #tpu.memory_space<vmem>>, vector<1x64xf32>
    %46 = vector.broadcast %45 : vector<1x64xf32> to vector<16x64xf32>
    %47 = arith.addf %44, %46 : vector<16x64xf32>
    %48 = arith.addf %47, %10 : vector<16x64xf32>
    %cst_19 = arith.constant 0.000000e+00 : f32
    %49 = vector.broadcast %cst_19 : f32 to vector<16x64xf32>
    %50 = arith.cmpf ogt, %48, %49 : vector<16x64xf32>
    %51 = math.exp %48 : vector<16x64xf32>
    %cst_20 = arith.constant 1.000000e+00 : f32
    %52 = vector.broadcast %cst_20 : f32 to vector<16x64xf32>
    %53 = arith.subf %51, %52 : vector<16x64xf32>
    %54 = arith.select %50, %48, %53 : vector<16x64xi1>, vector<16x64xf32>
    %55 = arith.truncf %54 : vector<16x64xf32> to vector<16x64xbf16>
    %c0_21 = arith.constant 0 : index
    %c0_22 = arith.constant 0 : index
    %56 = vector.load %arg6[%c0_21, %c0_22] : memref<64x384xbf16, #tpu.memory_space<vmem>>, vector<64x384xbf16>
    %cst_23 = arith.constant dense<0.000000e+00> : vector<16x384xf32>
    %57 = tpu.matmul %55, %56, %cst_23 {dimension_numbers = #tpu.dot_dimension_numbers<[1], [0], [0], [1], [0, 0, 1, 1], [], []>} : vector<16x64xbf16>, vector<64x384xbf16>, vector<16x384xf32> -> vector<16x384xf32>
    %c0_24 = arith.constant 0 : index
    %c0_25 = arith.constant 0 : index
    %58 = vector.load %arg7[%c0_24, %c0_25] : memref<1x384xf32, #tpu.memory_space<vmem>>, vector<1x384xf32>
    %59 = vector.broadcast %58 : vector<1x384xf32> to vector<16x384xf32>
    %60 = arith.addf %57, %59 : vector<16x384xf32>
    %61 = vector.extract_strided_slice %60 {offsets = [0, 0], sizes = [16, 64], strides = [1, 1]} : vector<16x384xf32> to vector<16x64xf32>
    %62 = vector.extract_strided_slice %60 {offsets = [0, 128], sizes = [16, 64], strides = [1, 1]} : vector<16x384xf32> to vector<16x64xf32>
    %63 = vector.extract_strided_slice %60 {offsets = [0, 256], sizes = [16, 64], strides = [1, 1]} : vector<16x384xf32> to vector<16x64xf32>
    %64 = vector.shape_cast %62 : vector<16x64xf32> to vector<16x1x64xf32>
    %65 = vector.shape_cast %61 : vector<16x64xf32> to vector<1x16x64xf32>
    %66 = vector.broadcast %64 : vector<16x1x64xf32> to vector<16x16x64xf32>
    %67 = vector.broadcast %65 : vector<1x16x64xf32> to vector<16x16x64xf32>
    %68 = arith.addf %66, %67 : vector<16x16x64xf32>
    %cst_26 = arith.constant 0.000000e+00 : f32
    %69 = vector.broadcast %cst_26 : f32 to vector<16x16x64xf32>
    %70 = arith.cmpf ogt, %68, %69 : vector<16x16x64xf32>
    %cst_27 = arith.constant 2.000000e-01 : f32
    %71 = vector.broadcast %cst_27 : f32 to vector<16x16x64xf32>
    %72 = arith.mulf %71, %68 : vector<16x16x64xf32>
    %73 = arith.select %70, %68, %72 : vector<16x16x64xi1>, vector<16x16x64xf32>
    %74 = vector.shape_cast %73 : vector<16x16x64xf32> to vector<256x64xf32>
    %75 = arith.truncf %74 : vector<256x64xf32> to vector<256x64xbf16>
    %c0_28 = arith.constant 0 : index
    %c0_29 = arith.constant 0 : index
    %76 = vector.load %arg8[%c0_28, %c0_29] : memref<64x64xbf16, #tpu.memory_space<vmem>>, vector<64x64xbf16>
    %cst_30 = arith.constant dense<0.000000e+00> : vector<256x64xf32>
    %77 = tpu.matmul %75, %76, %cst_30 {dimension_numbers = #tpu.dot_dimension_numbers<[1], [0], [0], [1], [0, 0, 1, 1], [], []>} : vector<256x64xbf16>, vector<64x64xbf16>, vector<256x64xf32> -> vector<256x64xf32>
    %78 = vector.shape_cast %77 : vector<256x64xf32> to vector<16x16x64xf32>
    %cst_31 = arith.constant dense<0xFF800000> : vector<16x64xf32>
    %79 = vector.multi_reduction <maximumf>, %78, %cst_31 [1] : vector<16x16x64xf32> to vector<16x64xf32>
    %80 = vector.shape_cast %79 : vector<16x64xf32> to vector<16x1x64xf32>
    %81 = vector.broadcast %80 : vector<16x1x64xf32> to vector<16x16x64xf32>
    %82 = arith.subf %78, %81 : vector<16x16x64xf32>
    %83 = math.exp %82 : vector<16x16x64xf32>
    %84 = vector.shape_cast %0 : vector<16x16xf32> to vector<16x16x1xf32>
    %85 = vector.broadcast %84 : vector<16x16x1xf32> to vector<16x16x64xf32>
    %86 = arith.mulf %83, %85 : vector<16x16x64xf32>
    %cst_32 = arith.constant dense<0.000000e+00> : vector<16x64xf32>
    %87 = vector.multi_reduction <add>, %86, %cst_32 [1] : vector<16x16x64xf32> to vector<16x64xf32>
    %cst_33 = arith.constant 0.000000e+00 : f32
    %88 = vector.broadcast %cst_33 : f32 to vector<16x64xf32>
    %89 = arith.cmpf oeq, %87, %88 : vector<16x64xf32>
    %cst_34 = arith.constant 1.000000e+00 : f32
    %90 = vector.broadcast %cst_34 : f32 to vector<16x64xf32>
    %91 = arith.select %89, %90, %87 : vector<16x64xi1>, vector<16x64xf32>
    %92 = vector.shape_cast %61 : vector<16x64xf32> to vector<1x16x64xf32>
    %93 = vector.broadcast %92 : vector<1x16x64xf32> to vector<16x16x64xf32>
    %94 = arith.mulf %86, %93 : vector<16x16x64xf32>
    %cst_35 = arith.constant dense<0.000000e+00> : vector<16x64xf32>
    %95 = vector.multi_reduction <add>, %94, %cst_35 [1] : vector<16x16x64xf32> to vector<16x64xf32>
    %96 = tpu.reciprocal %91 {approx = true} : vector<16x64xf32> -> vector<16x64xf32>
    %97 = arith.mulf %95, %96 : vector<16x64xf32>
    %c0_36 = arith.constant 0 : index
    %c0_37 = arith.constant 0 : index
    %98 = vector.load %arg9[%c0_36, %c0_37] : memref<1x64xf32, #tpu.memory_space<vmem>>, vector<1x64xf32>
    %99 = vector.broadcast %98 : vector<1x64xf32> to vector<16x64xf32>
    %100 = arith.addf %97, %99 : vector<16x64xf32>
    %101 = arith.addf %100, %63 : vector<16x64xf32>
    %cst_38 = arith.constant 0.000000e+00 : f32
    %102 = vector.broadcast %cst_38 : f32 to vector<16x64xf32>
    %103 = arith.cmpf ogt, %101, %102 : vector<16x64xf32>
    %104 = math.exp %101 : vector<16x64xf32>
    %cst_39 = arith.constant 1.000000e+00 : f32
    %105 = vector.broadcast %cst_39 : f32 to vector<16x64xf32>
    %106 = arith.subf %104, %105 : vector<16x64xf32>
    %107 = arith.select %103, %101, %106 : vector<16x64xi1>, vector<16x64xf32>
    %108 = arith.truncf %107 : vector<16x64xf32> to vector<16x64xbf16>
    %c0_40 = arith.constant 0 : index
    %c0_41 = arith.constant 0 : index
    %109 = vector.load %arg10[%c0_40, %c0_41] : memref<64x384xbf16, #tpu.memory_space<vmem>>, vector<64x384xbf16>
    %cst_42 = arith.constant dense<0.000000e+00> : vector<16x384xf32>
    %110 = tpu.matmul %108, %109, %cst_42 {dimension_numbers = #tpu.dot_dimension_numbers<[1], [0], [0], [1], [0, 0, 1, 1], [], []>} : vector<16x64xbf16>, vector<64x384xbf16>, vector<16x384xf32> -> vector<16x384xf32>
    %c0_43 = arith.constant 0 : index
    %c0_44 = arith.constant 0 : index
    %111 = vector.load %arg11[%c0_43, %c0_44] : memref<1x384xf32, #tpu.memory_space<vmem>>, vector<1x384xf32>
    %112 = vector.broadcast %111 : vector<1x384xf32> to vector<16x384xf32>
    %113 = arith.addf %110, %112 : vector<16x384xf32>
    %114 = vector.extract_strided_slice %113 {offsets = [0, 0], sizes = [16, 32], strides = [1, 1]} : vector<16x384xf32> to vector<16x32xf32>
    %115 = vector.extract_strided_slice %113 {offsets = [0, 128], sizes = [16, 32], strides = [1, 1]} : vector<16x384xf32> to vector<16x32xf32>
    %116 = vector.extract_strided_slice %113 {offsets = [0, 256], sizes = [16, 4], strides = [1, 1]} : vector<16x384xf32> to vector<16x4xf32>
    %117 = vector.shape_cast %115 : vector<16x32xf32> to vector<16x1x32xf32>
    %118 = vector.shape_cast %114 : vector<16x32xf32> to vector<1x16x32xf32>
    %119 = vector.broadcast %117 : vector<16x1x32xf32> to vector<16x16x32xf32>
    %120 = vector.broadcast %118 : vector<1x16x32xf32> to vector<16x16x32xf32>
    %121 = arith.addf %119, %120 : vector<16x16x32xf32>
    %cst_45 = arith.constant 0.000000e+00 : f32
    %122 = vector.broadcast %cst_45 : f32 to vector<16x16x32xf32>
    %123 = arith.cmpf ogt, %121, %122 : vector<16x16x32xf32>
    %cst_46 = arith.constant 2.000000e-01 : f32
    %124 = vector.broadcast %cst_46 : f32 to vector<16x16x32xf32>
    %125 = arith.mulf %124, %121 : vector<16x16x32xf32>
    %126 = arith.select %123, %121, %125 : vector<16x16x32xi1>, vector<16x16x32xf32>
    %127 = vector.shape_cast %126 : vector<16x16x32xf32> to vector<256x32xf32>
    %128 = arith.truncf %127 : vector<256x32xf32> to vector<256x32xbf16>
    %c0_47 = arith.constant 0 : index
    %c0_48 = arith.constant 0 : index
    %129 = vector.load %arg12[%c0_47, %c0_48] : memref<32x32xbf16, #tpu.memory_space<vmem>>, vector<32x32xbf16>
    %cst_49 = arith.constant dense<0.000000e+00> : vector<256x32xf32>
    %130 = tpu.matmul %128, %129, %cst_49 {dimension_numbers = #tpu.dot_dimension_numbers<[1], [0], [0], [1], [0, 0, 1, 1], [], []>} : vector<256x32xbf16>, vector<32x32xbf16>, vector<256x32xf32> -> vector<256x32xf32>
    %131 = vector.shape_cast %130 : vector<256x32xf32> to vector<16x16x32xf32>
    %cst_50 = arith.constant dense<0xFF800000> : vector<16x32xf32>
    %132 = vector.multi_reduction <maximumf>, %131, %cst_50 [1] : vector<16x16x32xf32> to vector<16x32xf32>
    %133 = vector.shape_cast %132 : vector<16x32xf32> to vector<16x1x32xf32>
    %134 = vector.broadcast %133 : vector<16x1x32xf32> to vector<16x16x32xf32>
    %135 = arith.subf %131, %134 : vector<16x16x32xf32>
    %136 = math.exp %135 : vector<16x16x32xf32>
    %137 = vector.shape_cast %0 : vector<16x16xf32> to vector<16x16x1xf32>
    %138 = vector.broadcast %137 : vector<16x16x1xf32> to vector<16x16x32xf32>
    %139 = arith.mulf %136, %138 : vector<16x16x32xf32>
    %cst_51 = arith.constant dense<0.000000e+00> : vector<16x32xf32>
    %140 = vector.multi_reduction <add>, %139, %cst_51 [1] : vector<16x16x32xf32> to vector<16x32xf32>
    %cst_52 = arith.constant 0.000000e+00 : f32
    %141 = vector.broadcast %cst_52 : f32 to vector<16x32xf32>
    %142 = arith.cmpf oeq, %140, %141 : vector<16x32xf32>
    %cst_53 = arith.constant 1.000000e+00 : f32
    %143 = vector.broadcast %cst_53 : f32 to vector<16x32xf32>
    %144 = arith.select %142, %143, %140 : vector<16x32xi1>, vector<16x32xf32>
    %145 = vector.shape_cast %114 : vector<16x32xf32> to vector<1x16x32xf32>
    %146 = vector.broadcast %145 : vector<1x16x32xf32> to vector<16x16x32xf32>
    %147 = arith.mulf %139, %146 : vector<16x16x32xf32>
    %cst_54 = arith.constant dense<0.000000e+00> : vector<16x32xf32>
    %148 = vector.multi_reduction <add>, %147, %cst_54 [1] : vector<16x16x32xf32> to vector<16x32xf32>
    %149 = tpu.reciprocal %144 {approx = true} : vector<16x32xf32> -> vector<16x32xf32>
    %150 = arith.mulf %148, %149 : vector<16x32xf32>
    %151 = arith.truncf %150 : vector<16x32xf32> to vector<16x32xbf16>
    %c0_55 = arith.constant 0 : index
    %c0_56 = arith.constant 0 : index
    %152 = vector.load %arg14[%c0_55, %c0_56] : memref<32x4xbf16, #tpu.memory_space<vmem>>, vector<32x4xbf16>
    %cst_57 = arith.constant dense<0.000000e+00> : vector<16x4xf32>
    %153 = tpu.matmul %151, %152, %cst_57 {dimension_numbers = #tpu.dot_dimension_numbers<[1], [0], [0], [1], [0, 0, 1, 1], [], []>} : vector<16x32xbf16>, vector<32x4xbf16>, vector<16x4xf32> -> vector<16x4xf32>
    %c0_58 = arith.constant 0 : index
    %c0_59 = arith.constant 0 : index
    %154 = vector.load %arg13[%c0_58, %c0_59] : memref<1x4xf32, #tpu.memory_space<vmem>>, vector<1x4xf32>
    %155 = vector.broadcast %154 : vector<1x4xf32> to vector<16x4xf32>
    %156 = arith.addf %153, %155 : vector<16x4xf32>
    %157 = arith.addf %156, %116 : vector<16x4xf32>
    %cst_60 = arith.constant 0.000000e+00 : f32
    %158 = vector.broadcast %cst_60 : f32 to vector<16x124xf32>
    %159 = tpu.concatenate %157, %158 in 1 : vector<16x4xf32>, vector<16x124xf32> -> vector<16x128xf32>
    %c0_61 = arith.constant 0 : index
    %c0_62 = arith.constant 0 : index
    %160 = vector.load %arg15[%c0_61, %c0_62] : memref<16x128xf32, #tpu.memory_space<vmem>>, vector<16x128xf32>
    tpu.vector_store %arg15[%c0_61, %c0_62], %159 {strides = array<i32>} : memref<16x128xf32, #tpu.memory_space<vmem>>, vector<16x128xf32>,
    return
  }
}

</mosaic_0001>

<bundles_post_ra>
// kernel: gat_forward.1
= control target key start
LH: loop header
LB: loop body
LE: loop exit
PB: predicated region body
PF: predicated region fallthrough
CT: control target
= control target key end

     0   :  { %20 = vsyncpa [#allocation3], 0  ;;  %s8199_s0 = inlined_call_operand.vmem [shape: f32[16,8], index: 0, kind: input, shape index: {}]   ;;  %s8200_s1 = inlined_call_operand.vmem [shape: f32[16,16], index: 1, kind: input, shape index: {}]   ;;  %s8201_s2 = inlined_call_operand.hbm [shape: bf16[8,384], index: 2, kind: input, shape index: {}]   ;;  %s8202_s3 = inlined_call_operand.hbm [shape: f32[1,384], index: 3, kind: input, shape index: {}]   ;;  %s8203_s4 = inlined_call_operand.vmem [shape: bf16[64,64], index: 4, kind: input, shape index: {}]   ;;  %s8204_s5 = inlined_call_operand.hbm [shape: f32[1,64], index: 5, kind: input, shape index: {}]   ;;  %s8205_s6 = inlined_call_operand.hbm [shape: bf16[64,384], index: 6, kind: input, shape index: {}]   ;;  %s8206_s7 = inlined_call_operand.vmem [shape: f32[1,384], index: 7, kind: input, shape index: {}]   ;;  %s8207_s8 = inlined_call_operand.hbm [shape: bf16[64,64], index: 8, kind: input, shape index: {}]   ;;  %s8208_s9 = inlined_call_operand.vmem [shape: f32[1,64], index: 9, kind: input, shape index: {}]   ;;  %s8209_s10 = inlined_call_operand.hbm [shape: bf16[64,384], index: 10, kind: input, shape index: {}]   ;;  %s8210_s11 = inlined_call_operand.vmem [shape: f32[1,384], index: 11, kind: input, shape index: {}]   ;;  %s8211_s12 = inlined_call_operand.hbm [shape: bf16[32,32], index: 12, kind: input, shape index: {}]   ;;  %s8212_s13 = inlined_call_operand.vmem [shape: f32[1,4], index: 13, kind: input, shape index: {}]   ;;  %s8213_s14 = inlined_call_operand.vmem [shape: bf16[32,4], index: 14, kind: input, shape index: {}]   ;;  %s8214_s15 = inlined_call_operand.vmem [shape: f32[16,128], index: 15, kind: output, shape index: {}]  }
   0x1   :  { %21 = vsyncpa [#allocation5], 0 }
   0x2   :  { %22 = vsyncpa [#allocation8], 0 }
   0x3   :  { %23 = vsyncpa [#allocation11], 0  ;;  %s6001_s18 = smov [#allocation4]   ;;  %s6002_s20 = smov [#allocation7]  }
   0x4   :  { %s44_s19 = sshll.u32 %s6001_s18, 4  ;;  %s65_s21 = sshll.u32 %s6002_s20, 4  ;;  %s45_s19 = int_to_ptr.vmem [resolvable:$true] %s44_s19  ;;  %s66_s21 = int_to_ptr.vmem [resolvable:$true] %s65_s21 }
   0x5   :  { %s5861_s22 = scalar_lea.vmem %s45_s19, 48  ;;  %s5865_s23 = scalar_lea.vmem %s45_s19, 64 }
   0x6   :  { %p5862_p0 = scmp.ne.s32.totalorder %s45_s19, %s5861_s22  ;;  %p5866_p1 = scmp.lt.s32.totalorder %s45_s19, %s45_s19 }
   0x7   :  { %p5867_p2 = scmp.lt.s32.totalorder %s5865_s23, %s5861_s22 }
   0x9   :  { %p5868_p3 = por %p5867_p2, %p5866_p1 }
   0xb   :  { %p5869_p4 = pnand %p5868_p3, %p5862_p0 }
   0xd   :  { %5872 = shalt.err (!%p5869_p4)
}
   0xe   :  { %47 = dma.hbm_to_vmem [thread:$0]  %s8202_s3, 48, %s45_s19, [#allocation5]  }
   0xf   :  { %s5881_s26 = scalar_lea.vmem %s66_s21, 1536  ;;  %p5886_p6 = scmp.lt.s32.totalorder %s66_s21, %s66_s21 }
  0x10   :  { %p5882_p5 = scmp.ne.s32.totalorder %s66_s21, %s5881_s26  ;;  %p5887_p7 = scmp.lt.s32.totalorder %s5881_s26, %s5881_s26 }
  0x12   :  { %p5888_p8 = por %p5887_p7, %p5886_p6 }
  0x14   :  { %p5889_p9 = pnand %p5888_p8, %p5882_p5 }
  0x16   :  { %5892 = shalt.err (!%p5889_p9)
}
  0x17   :  { %s6003_s27 = smov 192   ;;  %s6004_s28 = smov 12  }
  0x18   :  { %71 = dma.hbm_to_vmem [thread:$0]  %s8205_s6, 1536, %s66_s21, [#allocation8], %s6003_s27, %s6003_s27, %s6004_s28  }
  0x19   :  { %s6005_s16 = smov [#allocation10]   ;;  %s6006_s18 = smov [#allocation2]  }
  0x1a   :  { %s93_s17 = sshll.u32 %s6005_s16, 4  ;;  %s34_s20 = sshll.u32 %s6006_s18, 4  ;;  %s94_s17 = int_to_ptr.vmem [resolvable:$true] %s93_s17  ;;  %s35_s20 = int_to_ptr.vmem [resolvable:$true] %s34_s20 }
  0x1b   :  { %s5901_s3 = scalar_lea.vmem %s94_s17, 1536  ;;  %p5906_p11 = scmp.lt.s32.totalorder %s94_s17, %s94_s17 }
  0x1c   :  { %p5902_p10 = scmp.ne.s32.totalorder %s94_s17, %s5901_s3  ;;  %p5907_p12 = scmp.lt.s32.totalorder %s5901_s3, %s5901_s3 }
  0x1e   :  { %p5908_p13 = por %p5907_p12, %p5906_p11 }
  0x20   :  { %p5909_p0 = pnand %p5908_p13, %p5902_p10 }
  0x22   :  { %5912 = shalt.err (!%p5909_p0)
}
  0x23   :  { %99 = dma.hbm_to_vmem [thread:$0]  %s8209_s10, 1536, %s94_s17, [#allocation11], %s6003_s27, %s6003_s27, %s6004_s28  }
  0x24   :  { %s5921_s23 = scalar_lea.vmem %s35_s20, 192  ;;  %p5926_p2 = scmp.lt.s32.totalorder %s35_s20, %s35_s20 }
  0x25   :  { %p5922_p1 = scmp.ne.s32.totalorder %s35_s20, %s5921_s23  ;;  %p5927_p3 = scmp.lt.s32.totalorder %s5921_s23, %s5921_s23 }
  0x27   :  { %p5928_p4 = por %p5927_p3, %p5926_p2 }
  0x29   :  { %p5929_p5 = pnand %p5928_p4, %p5922_p1 }
  0x2b   :  { %5932 = shalt.err (!%p5929_p5)
}
  0x2c   :  { %37 = dma.hbm_to_vmem [thread:$0]  %s8201_s2, 192, %s35_s20, [#allocation3]  }
  0x2d   :  { %s6007_s24 = smov [#allocation6]   ;;  %s6008_s26 = smov [#allocation9]  }
  0x2e   :  { %s56_s25 = sshll.u32 %s6007_s24, 4  ;;  %s79_s29 = sshll.u32 %s6008_s26, 4  ;;  %s57_s25 = int_to_ptr.vmem [resolvable:$true] %s56_s25  ;;  %s80_s29 = int_to_ptr.vmem [resolvable:$true] %s79_s29 }
  0x2f   :  { %s5941_s30 = scalar_lea.vmem %s57_s25, 16  ;;  %s5945_s10 = scalar_lea.vmem %s57_s25, 32 }
  0x30   :  { %p5942_p6 = scmp.ne.s32.totalorder %s57_s25, %s5941_s30  ;;  %p5946_p7 = scmp.lt.s32.totalorder %s57_s25, %s57_s25 }
  0x31   :  { %p5947_p8 = scmp.lt.s32.totalorder %s5945_s10, %s5941_s30 }
  0x33   :  { %p5948_p9 = por %p5947_p8, %p5946_p7 }
  0x35   :  { %p5949_p10 = pnand %p5948_p9, %p5942_p6 }
  0x37   :  { %5952 = shalt.err (!%p5949_p10)
}
  0x38   :  { %59 = dma.hbm_to_vmem [thread:$0]  %s8204_s5, 16, %s57_s25, [#allocation5]  }
  0x39   :  { %s5961_s16 = scalar_lea.vmem %s80_s29, 512  ;;  %p5966_p12 = scmp.lt.s32.totalorder %s80_s29, %s80_s29 }
  0x3a   :  { %p5962_p11 = scmp.ne.s32.totalorder %s80_s29, %s5961_s16  ;;  %p5967_p13 = scmp.lt.s32.totalorder %s5961_s16, %s5961_s16 }
  0x3c   :  { %p5968_p0 = por %p5967_p13, %p5966_p12 }
  0x3e   :  { %p5969_p1 = pnand %p5968_p0, %p5962_p11 }
  0x40   :  { %5972 = shalt.err (!%p5969_p1)
}
  0x41   :  { %s6009_s2 = smov 64   ;;  %s6010_s17 = smov 4  }
  0x42   :  { %85 = dma.hbm_to_vmem [thread:$0]  %s8207_s8, 512, %s80_s29, [#allocation8], %s6009_s2, %s6009_s2, %s6010_s17  }
  0x43   :  { %s6011_s3 = smov [#allocation12]  }
  0x44   :  { %s107_s19 = sshll.u32 %s6011_s3, 4  ;;  %s108_s19 = int_to_ptr.vmem [resolvable:$true] %s107_s19 }
  0x45   :  { %s5981_s22 = scalar_lea.vmem %s108_s19, 256  ;;  %p5986_p3 = scmp.lt.s32.totalorder %s108_s19, %s108_s19 }
  0x46   :  { %p5982_p2 = scmp.ne.s32.totalorder %s108_s19, %s5981_s22  ;;  %p5987_p4 = scmp.lt.s32.totalorder %s5981_s22, %s5981_s22 }
  0x48   :  { %p5988_p5 = por %p5987_p4, %p5986_p3 }
  0x4a   :  { %p5989_p6 = pnand %p5988_p5, %p5982_p2 }
  0x4c   :  { %5992 = shalt.err (!%p5989_p6)
}
  0x4d   :  { %113 = dma.hbm_to_vmem [thread:$0]  %s8211_s12, 256, %s108_s19, [#allocation11], %s6009_s2, %s6009_s2, %s6010_s17  }
  0x4e   :  { %5993 = dma.done.wait [#allocation3], 192  }
  0x4f   :  { %5994 = vsyncadd [#allocation3], 4294967104 }
  0x50   :  { %5995 = dma.done.wait [#allocation5], 64  }
  0x51   :  { %5996 = vsyncadd [#allocation5], 4294967232 }
  0x52   :  { %5997 = dma.done.wait [#allocation8], 2048  }
  0x53   :  { %5998 = vsyncadd [#allocation8], 4294965248 }
  0x54   :  { %5999 = dma.done.wait [#allocation11], 1792  }
  0x55   :  { %6000 = vsyncadd [#allocation11], 4294965504  ;;  %v6012_v0 = vmov 0   ;;  %v145_v1 = vld [vmem:[#allocation2] sm:$0xff]  ;;  %vm176_vm0 = vcmask 1043456   ;;  %v143_v3 = vld [vmem:[%s8199_s0 + $0x8] sm:$0xff]  ;;  %v149_v15 = vlaneseq }
  0x56   :  { %218 = vmatprep.mubr.bf16.mxu0 %v6012_v0  ;;  %v142_v2 = vld [vmem:[%s8199_s0] sm:$0xff]  ;;  %v5072_v4 = vcombine.high %v145_v1, %v145_v1  ;;  %v5071_v5 = vcombine.low %v145_v1, %v145_v1  ;;  %vm172_vm1 = vcmask 64512   ;;  %v5453_v8 = vld [vmem:[%s8203_s4 + $0x18] sm:$0xff]   ;;  %v5454_v9 = vld [vmem:[#allocation2 + $0x8] ss:$0 sps:$4 sm:$0xff]   ;;  %v8215_v10 = vmov 0.0  }
  0x57   :  { %v144_v7 = vpack.c.bf16 %v143_v3, %v142_v2  ;;  %5274 = vmatprep.subr.bf16.mxu1 %v8215_v10  ;;  %v184_v11 = vsel %vm176_vm0, %v5454_v9, 0  ;;  %v5455_v12 = vld [vmem:[%s8203_s4 + $0x10] sm:$0xff]   ;;  %vm8276_vm2 = vmmov 0   ;;  %v5456_v13 = vld [vmem:[%s8203_s4 + $0x8] sm:$0xff]   ;;  %v5457_v14 = vld [vmem:[%s8203_s4] sm:$0xff]   ;;  %v6144_v16 = vshrl.u32 %v149_v15, 7 }
  0x58   :  { %5074 = vmatprep.subr.msk.bf16.mxu0 %vm176_vm0, %v5072_v4  ;;  %v178_v6 = vsel %vm176_vm0, %v5071_v5, 0  ;;  %5275 = vmatpush3.bf16.msra.mxu1 %v184_v11  ;;  %v141_v18 = vld [vmem:[%s8200_s1 + $0x8] sm:$0xff]  ;;  %v140_v19 = vld [vmem:[%s8200_s1] sm:$0xff]  ;;  %v6015_v42 = vmov 1966171168   ;;  %vm626_vm6 = vcmask 523264  }
  0x59   :  { %201 = vmatpush1.bf16.msra.mxu0 %v178_v6  ;;  %5428 = vmatprep.subr.bf16.mxu1 %v5453_v8  ;;  %v6147_v17 = vsub.s32 1, %v6144_v16  ;;  %v6158_v22 = vsub.s32 2, %v6144_v16  ;;  %v6163_v25 = vsub.s32 0, %v6144_v16  ;;  %v1111_v27 = vsub.s32 3, %v6144_v16  ;;  %v6172_v46 = vld [vmem:[#allocation4] sm:$0x7] }
  0x5a   :  { %5280 = vmatprep.subr.bf16.mxu0 %v5453_v8  ;;  %5276 = vmatprep.mubr.msk.bf16.mxu1 %vm8276_vm2, %v8215_v10  ;;  %v1122_v31 = vsub.s32 4, %v6144_v16  ;;  %v1133_v34 = vsub.s32 5, %v6144_v16  ;;  %v1144_v37 = vsub.s32 6, %v6144_v16  ;;  %v1155_v40 = vsub.s32 7, %v6144_v16 }
  0x5b   :  { %5277 = vmatmul.mubr.msk.bf16.vlgmr.msra.gmra.mxu1 %vm172_vm1, %v144_v7  ;;  %8277 = vst [vmem:[#allocation17_spill] sm:$0xff] %v6147_v17  ;;  %v1178_v20 = vrot.slane %v141_v18, %v6147_v17  ;;  %v1090_v21 = vrot.slane %v140_v19, %v6147_v17  ;;  %8278 = vst [vmem:[#allocation18_spill] sm:$0xff] %v6158_v22  ;;  %v1101_v23 = vrot.slane %v140_v19, %v6158_v22 }
  0x5c   :  { %5075 = vmatmul.mubr.msk.bf16.vlgmr.msra.gmra.mxu0 %vm172_vm1, %v144_v7  ;;  %5432 = vmatpush3.bf16.msra.mxu1 %v5453_v8  ;;  %v1189_v24 = vrot.slane %v141_v18, %v6158_v22  ;;  %8279 = vst [vmem:[#allocation19_spill] sm:$0xff] %v6163_v25  ;;  %v1079_v26 = vrot.slane %v140_v19, %v6163_v25  ;;  %v274_v43 = vunpack.c.l.s4 %v6015_v42 }
  0x5d   :  { %5281 = vmatpush3.bf16.msra.mxu0 %v5453_v8  ;;  %5429 = vmatprep.subr.bf16.mxu1 %v5455_v12  ;;  %v1112_v28 = vrot.slane %v140_v19, %v1111_v27  ;;  %v1167_v29 = vrot.slane %v141_v18, %v6163_v25  ;;  %v1200_v30 = vrot.slane %v141_v18, %v1111_v27 }
  0x5e   :  { %5282 = vmatprep.subr.bf16.mxu0 %v5455_v12  ;;  %1180 = vbcast.lane.b32.xlu1 %v1178_v20, 256  ;;  %v1123_v32 = vrot.slane %v140_v19, %v1122_v31  ;;  %v1211_v33 = vrot.slane %v141_v18, %v1122_v31  ;;  %v1134_v35 = vrot.slane %v140_v19, %v1133_v34  ;;  %v275_v45 = vunpack.c.0.s8 %v274_v43 }
  0x5f   :  { %1092 = vbcast.lane.b32.xlu0 %v1090_v21, 256  ;;  %v1222_v36 = vrot.slane %v141_v18, %v1133_v34  ;;  %v1145_v38 = vrot.slane %v140_v19, %v1144_v37  ;;  %v1233_v39 = vrot.slane %v141_v18, %v1144_v37  ;;  %v1156_v41 = vrot.slane %v140_v19, %v1155_v40 }
  0x60   :  { %5433 = vmatpush3.bf16.msra.mxu1 %v5455_v12  ;;  %v1244_v44 = vrot.slane %v141_v18, %v1155_v40  ;;  %v156_v47 = vrot.slane %v6172_v46, %v6147_v17  ;;  %v6177_v49 = vsub.s32 %v275_v45, %v6144_v16  ;;  %v152_v55 = vrot.slane %v6172_v46, %v6163_v25 }
  0x61   :  { %5283 = vmatpush3.bf16.msra.mxu0 %v5455_v12  ;;  %5430 = vmatprep.subr.bf16.mxu1 %v5456_v13 }
  0x62   :  { %5284 = vmatprep.subr.bf16.mxu0 %v5456_v13  ;;  %1184 = vbcast.lane.b32.xlu1 %v1178_v20, 264  ;;  %8280 = vst [vmem:[#allocation20_spill] sm:$0xff] %v6177_v49 }
  0x63   :  { %1096 = vbcast.lane.b32.xlu0 %v1090_v21, 264 }
  0x64   :  { %5434 = vmatpush3.bf16.msra.mxu1 %v5456_v13 }
  0x65   :  { %5285 = vmatpush3.bf16.msra.mxu0 %v5456_v13  ;;  %5431 = vmatprep.subr.bf16.mxu1 %v5457_v14 }
  0x66   :  { %5286 = vmatprep.subr.bf16.mxu0 %v5457_v14  ;;  %1107 = vbcast.lane.b32.xlu1 %v1101_v23, 264 }
  0x67   :  { %1103 = vbcast.lane.b32.xlu0 %v1101_v23, 256 }
  0x68   :  { %5435 = vmatpush3.bf16.msra.mxu1 %v5457_v14 }
  0x69   :  { %5287 = vmatpush3.bf16.msra.mxu0 %v5457_v14 }
  0x6a   :  { %1195 = vbcast.lane.b32.xlu1 %v1189_v24, 264 }
  0x6b   :  { %1191 = vbcast.lane.b32.xlu0 %v1189_v24, 256 }
  0x6e   :  { %1085 = vbcast.lane.b32.xlu1 %v1079_v26, 264 }
  0x6f   :  { %1081 = vbcast.lane.b32.xlu0 %v1079_v26, 256 }
  0x72   :  { %1118 = vbcast.lane.b32.xlu1 %v1112_v28, 264 }
  0x73   :  { %1114 = vbcast.lane.b32.xlu0 %v1112_v28, 256 }
  0x76   :  { %1173 = vbcast.lane.b32.xlu1 %v1167_v29, 264 }
  0x77   :  { %1169 = vbcast.lane.b32.xlu0 %v1167_v29, 256 }
  0x7a   :  { %1206 = vbcast.lane.b32.xlu1 %v1200_v30, 264 }
  0x7b   :  { %1202 = vbcast.lane.b32.xlu0 %v1200_v30, 256 }
  0x7e   :  { %1129 = vbcast.lane.b32.xlu1 %v1123_v32, 264 }
  0x7f   :  { %1125 = vbcast.lane.b32.xlu0 %v1123_v32, 256 }
  0x82   :  { %1217 = vbcast.lane.b32.xlu1 %v1211_v33, 264 }
  0x83   :  { %1213 = vbcast.lane.b32.xlu0 %v1211_v33, 256 }
  0x86   :  { %1140 = vbcast.lane.b32.xlu1 %v1134_v35, 264 }
  0x87   :  { %1136 = vbcast.lane.b32.xlu0 %v1134_v35, 256 }
  0x8a   :  { %1228 = vbcast.lane.b32.xlu1 %v1222_v36, 264 }
  0x8b   :  { %1224 = vbcast.lane.b32.xlu0 %v1222_v36, 256 }
  0x8e   :  { %1151 = vbcast.lane.b32.xlu1 %v1145_v38, 264 }
  0x8f   :  { %1147 = vbcast.lane.b32.xlu0 %v1145_v38, 256 }
  0x92   :  { %1239 = vbcast.lane.b32.xlu1 %v1233_v39, 264 }
  0x93   :  { %1235 = vbcast.lane.b32.xlu0 %v1233_v39, 256 }
  0x96   :  { %1162 = vbcast.lane.b32.xlu1 %v1156_v41, 264 }
  0x97   :  { %1158 = vbcast.lane.b32.xlu0 %v1156_v41, 256 }
  0x9a   :  { %1250 = vbcast.lane.b32.xlu1 %v1244_v44, 264 }
  0x9b   :  { %1246 = vbcast.lane.b32.xlu0 %v1244_v44, 256 }
 0x11c   :  { %v220_v48 = vpop.f32.mrf.mxu0 }
 0x11d   :  { %v6186_v2 = vadd.f32 %v220_v48, %v152_v55 }
 0x11e   :  { %v222_v50 = vpop.f32.mrf.mxu0 }
 0x11f   :  { %v223_v51 = vadd.f32 %v222_v50, %v156_v47 }
 0x120   :  { %v224_v52 = vpop.f32.mrf.mxu0 }
 0x121   :  { %v272_v53 = vcombine.high %v223_v51, %v223_v51  ;;  %v279_v54 = vrot.slane %v223_v51, %v6177_v49  ;;  %v6189_v4 = vadd.f32 %v224_v52, %v152_v55 }
 0x122   :  { %v226_v56 = vpop.f32.mrf.mxu0 }
 0x123   :  { %v286_v57 = vrot.slane %v272_v53, %v6177_v49  ;;  %v287_v58 = vcombine.high %v279_v54, %v279_v54  ;;  %v295_v59 = vrot.slane %v279_v54, %v6177_v49  ;;  %v227_v60 = vadd.f32 %v226_v56, %v156_v47 }
 0x125   :  { %v288_v61 = vcombine.high %v286_v57, %v286_v57  ;;  %v302_v62 = vrot.slane %v286_v57, %v6177_v49  ;;  %v309_v63 = vrot.slane %v287_v58, %v6177_v49  ;;  %v317_v1 = vcombine.high %v295_v59, %v295_v59 }
 0x126   :  { %v373_v3 = vrot.slane %v295_v59, %v6163_v25  ;;  %v321_v12 = vcombine.high %v227_v60, %v227_v60  ;;  %v328_v13 = vrot.slane %v227_v60, %v6177_v49 }
 0x127   :  { %v316_v5 = vrot.slane %v288_v61, %v6177_v49  ;;  %v318_v6 = vcombine.high %v302_v62, %v302_v62  ;;  %v319_v7 = vcombine.high %v309_v63, %v309_v63  ;;  %v377_v8 = vrot.slane %v309_v63, %v6163_v25 }
 0x128   :  { %v381_v9 = vrot.slane %v317_v1, %v6163_v25  ;;  %v389_v11 = vrot.slane %v302_v62, %v6163_v25  ;;  %v450_v19 = vadd.f32 %v373_v3, %v6186_v2  ;;  %v451_v23 = vadd.f32 %v373_v3, %v6189_v4 }
 0x129   :  { %v320_v14 = vcombine.high %v316_v5, %v316_v5  ;;  %v385_v15 = vrot.slane %v319_v7, %v6163_v25  ;;  %v393_v16 = vrot.slane %v316_v5, %v6163_v25  ;;  %v397_v18 = vrot.slane %v318_v6, %v6163_v25 }
 0x12a   :  { %v452_v20 = vadd.f32 %v377_v8, %v6186_v2  ;;  %v6202_v21 = vadd.f32 %v381_v9, %v6186_v2  ;;  %v6212_v27 = vadd.f32 %v389_v11, %v6186_v2  ;;  %v453_v28 = vadd.f32 %v377_v8, %v6189_v4 }
 0x12b   :  { %v6206_v24 = vrot.slane %v320_v14, %v6163_v25  ;;  %v6209_v26 = vadd.f32 %v385_v15, %v6186_v2  ;;  %v6216_v29 = vadd.f32 %v393_v16, %v6186_v2  ;;  %v6219_v30 = vadd.f32 %v397_v18, %v6186_v2 }
 0x12c   :  { %vm484_vm3 = vcmp.gt.f32.partialorder %v452_v20, 0.0  ;;  %v516_v31 = vmul.f32 0.2, %v452_v20  ;;  %v6222_v32 = vadd.f32 %v381_v9, %v6189_v4  ;;  %v6225_v33 = vadd.f32 %v385_v15, %v6189_v4 }
 0x12d   :  { %v6228_v34 = vadd.f32 %v389_v11, %v6189_v4  ;;  %v6231_v35 = vadd.f32 %v393_v16, %v6189_v4  ;;  %v6234_v36 = vadd.f32 %v397_v18, %v6189_v4  ;;  %v335_v37 = vrot.slane %v321_v12, %v6177_v49 }
 0x12e   :  { %v336_v38 = vcombine.high %v328_v13, %v328_v13  ;;  %v344_v39 = vrot.slane %v328_v13, %v6177_v49  ;;  %vm482_vm4 = vcmp.gt.f32.partialorder %v450_v19, 0.0  ;;  %vm483_vm5 = vcmp.gt.f32.partialorder %v451_v23, 0.0 }
 0x12f   :  { %v514_v40 = vmul.f32 0.2, %v450_v19  ;;  %v515_v41 = vmul.f32 0.2, %v451_v23  ;;  %v337_v42 = vcombine.high %v335_v37, %v335_v37  ;;  %v351_v43 = vrot.slane %v335_v37, %v6177_v49 }
 0x130   :  { %v358_v44 = vrot.slane %v336_v38, %v6177_v49  ;;  %v366_v45 = vcombine.high %v344_v39, %v344_v39  ;;  %vm485_vm7 = vcmp.gt.f32.partialorder %v453_v28, 0.0  ;;  %v517_v47 = vmul.f32 0.2, %v453_v28 }
 0x131   :  { %v405_v48 = vrot.slane %v344_v39, %v6163_v25  ;;  %v546_v50 = vsel %vm482_vm4, %v450_v19, %v514_v40  ;;  %v365_v51 = vrot.slane %v337_v42, %v6177_v49  ;;  %v367_v52 = vcombine.high %v351_v43, %v351_v43 }
 0x132   :  { %v368_v53 = vcombine.high %v358_v44, %v358_v44  ;;  %v547_v54 = vsel %vm483_vm5, %v451_v23, %v515_v41  ;;  %v6243_v55 = vrot.slane %v358_v44, %v6163_v25  ;;  %v413_v56 = vrot.slane %v366_v45, %v6163_v25 }
 0x133   :  { %v421_v57 = vrot.slane %v351_v43, %v6163_v25  ;;  %v548_v58 = vsel %vm484_vm3, %v452_v20, %v516_v31  ;;  %v369_v59 = vcombine.high %v365_v51, %v365_v51  ;;  %v425_v61 = vrot.slane %v365_v51, %v6163_v25 }
 0x134   :  { %v417_v60 = vrot.slane %v368_v53, %v6163_v25  ;;  %v429_v62 = vrot.slane %v367_v52, %v6163_v25  ;;  %v6252_v63 = vadd.f32 %v405_v48, %v6186_v2  ;;  %v6255_v1 = vadd.f32 %v405_v48, %v6189_v4 }
 0x135   :  { %v470_v3 = vadd.f32 %v413_v56, %v6186_v2  ;;  %v471_v5 = vadd.f32 %v413_v56, %v6189_v4  ;;  %v6260_v6 = vrot.slane %v369_v59, %v6163_v25  ;;  %v474_v9 = vadd.f32 %v421_v57, %v6186_v2 }
 0x136   :  { %v472_v7 = vadd.f32 %v417_v60, %v6186_v2  ;;  %v473_v8 = vadd.f32 %v417_v60, %v6189_v4  ;;  %v475_v11 = vadd.f32 %v421_v57, %v6189_v4  ;;  %v6267_v12 = vadd.f32 %v425_v61, %v6186_v2 }
 0x137   :  { %v6270_v13 = vadd.f32 %v425_v61, %v6189_v4  ;;  %v6273_v14 = vadd.f32 %v429_v62, %v6186_v2  ;;  %v6276_v15 = vadd.f32 %v429_v62, %v6189_v4  ;;  %v578_v19 = vpack.c.bf16 %v547_v54, %v546_v50 }
 0x138   :  { %v536_v16 = vmul.f32 0.2, %v472_v7  ;;  %v537_v18 = vmul.f32 0.2, %v473_v8  ;;  %v549_v20 = vsel %vm485_vm7, %v453_v28, %v517_v47  ;;  %vm486_vm8 = vcmp.gt.f32.partialorder %v6202_v21, 0.0 }
 0x139   :  { %vm487_vm9 = vcmp.gt.f32.partialorder %v6222_v32, 0.0  ;;  %v518_v23 = vmul.f32 0.2, %v6202_v21  ;;  %5288 = vmatprep.mubr.msk.bf16.mxu0 %vm626_vm6, %v578_v19  ;;  %v579_v31 = vpack.c.bf16 %v549_v20, %v548_v58  ;;  %v519_v37 = vmul.f32 0.2, %v6222_v32 }
 0x13a   :  { %vm502_vm10 = vcmp.gt.f32.partialorder %v470_v3, 0.0  ;;  %vm503_vm11 = vcmp.gt.f32.partialorder %v471_v5, 0.0  ;;  %v534_v39 = vmul.f32 0.2, %v470_v3  ;;  %v535_v40 = vmul.f32 0.2, %v471_v5 }
 0x13b   :  { %v550_v38 = vsel %vm486_vm8, %v6202_v21, %v518_v23  ;;  %vm504_vm12 = vcmp.gt.f32.partialorder %v472_v7, 0.0  ;;  %5289 = vmatmul.mubr.msk.bf16.vlgmr.msra.gmra.mxu0 %vm626_vm6, %v579_v31  ;;  %v551_v28 = vsel %vm487_vm9, %v6222_v32, %v519_v37  ;;  %vm505_vm13 = vcmp.gt.f32.partialorder %v473_v8, 0.0 }
 0x13c   :  { %v568_v41 = vsel %vm504_vm12, %v472_v7, %v536_v16  ;;  %vm506_vm14 = vcmp.gt.f32.partialorder %v474_v9, 0.0  ;;  %v580_v42 = vpack.c.bf16 %v551_v28, %v550_v38  ;;  %v566_v43 = vsel %vm502_vm10, %v470_v3, %v534_v39 }
 0x13d   :  { %v567_v44 = vsel %vm503_vm11, %v471_v5, %v535_v40  ;;  %v569_v45 = vsel %vm505_vm13, %v473_v8, %v537_v18  ;;  %vm507_vm15 = vcmp.gt.f32.partialorder %v475_v11, 0.0  ;;  %v538_v50 = vmul.f32 0.2, %v474_v9 }
 0x13e   :  { %v588_v47 = vpack.c.bf16 %v567_v44, %v566_v43  ;;  %v589_v48 = vpack.c.bf16 %v569_v45, %v568_v41  ;;  %5292 = vmatprep.mubr.msk.bf16.mxu0 %vm626_vm6, %v580_v42  ;;  %v539_v21 = vmul.f32 0.2, %v475_v11  ;;  %vm488_vm0 = vcmp.gt.f32.partialorder %v6209_v26, 0.0 }
 0x13f   :  { %vm489_vm1 = vcmp.gt.f32.partialorder %v6225_v33, 0.0  ;;  %v520_v32 = vmul.f32 0.2, %v6209_v26  ;;  %v570_v51 = vsel %vm506_vm14, %v474_v9, %v538_v50  ;;  %v521_v52 = vmul.f32 0.2, %v6225_v33 }
 0x140   :  { %5308 = vmatprep.mubr.msk.bf16.mxu1 %vm626_vm6, %v588_v47  ;;  %vm490_vm3 = vcmp.gt.f32.partialorder %v6212_v27, 0.0  ;;  %vm491_vm4 = vcmp.gt.f32.partialorder %v6228_v34, 0.0  ;;  %v571_v53 = vsel %vm507_vm15, %v475_v11, %v539_v21  ;;  %v522_v56 = vmul.f32 0.2, %v6212_v27 }
 0x141   :  { %5309 = vmatmul.mubr.msk.bf16.vlgmr.msra.gmra.mxu1 %vm626_vm6, %v589_v48  ;;  %v552_v54 = vsel %vm488_vm0, %v6209_v26, %v520_v32  ;;  %v523_v57 = vmul.f32 0.2, %v6228_v34  ;;  %v590_v58 = vpack.c.bf16 %v571_v53, %v570_v51  ;;  %v553_v59 = vsel %vm489_vm1, %v6225_v33, %v521_v52 }
 0x142   :  { %vm508_vm5 = vcmp.gt.f32.partialorder %v6267_v12, 0.0  ;;  %vm509_vm7 = vcmp.gt.f32.partialorder %v6270_v13, 0.0  ;;  %v581_v60 = vpack.c.bf16 %v553_v59, %v552_v54  ;;  %v554_v61 = vsel %vm490_vm3, %v6212_v27, %v522_v56 }
 0x143   :  { %v555_v62 = vsel %vm491_vm4, %v6228_v34, %v523_v57  ;;  %v540_v3 = vmul.f32 0.2, %v6267_v12  ;;  %5312 = vmatprep.mubr.msk.bf16.mxu1 %vm626_vm6, %v590_v58  ;;  %v541_v5 = vmul.f32 0.2, %v6270_v13  ;;  %vm510_vm8 = vcmp.gt.f32.partialorder %v6273_v14, 0.0 }
 0x144   :  { %v582_v26 = vpack.c.bf16 %v555_v62, %v554_v61  ;;  %vm511_vm9 = vcmp.gt.f32.partialorder %v6276_v15, 0.0  ;;  %5293 = vmatmul.mubr.msk.bf16.gmra.mxu0 %vm626_vm6, %v581_v60  ;;  %v542_v7 = vmul.f32 0.2, %v6273_v14  ;;  %v543_v27 = vmul.f32 0.2, %v6276_v15 }
 0x145   :  { %v572_v33 = vsel %vm508_vm5, %v6267_v12, %v540_v3  ;;  %vm492_vm10 = vcmp.gt.f32.partialorder %v6216_v29, 0.0  ;;  %v573_v34 = vsel %vm509_vm7, %v6270_v13, %v541_v5  ;;  %vm493_vm11 = vcmp.gt.f32.partialorder %v6231_v35, 0.0 }
 0x146   :  { %5296 = vmatprep.mubr.msk.bf16.mxu0 %vm626_vm6, %v582_v26  ;;  %v524_v8 = vmul.f32 0.2, %v6216_v29  ;;  %v525_v9 = vmul.f32 0.2, %v6231_v35  ;;  %v591_v11 = vpack.c.bf16 %v573_v34, %v572_v33  ;;  %v574_v12 = vsel %vm510_vm8, %v6273_v14, %v542_v7 }
 0x147   :  { %v575_v16 = vsel %vm511_vm9, %v6276_v15, %v543_v27  ;;  %vm494_vm12 = vcmp.gt.f32.partialorder %v6219_v30, 0.0  ;;  %vm495_vm13 = vcmp.gt.f32.partialorder %v6234_v36, 0.0  ;;  %v526_v23 = vmul.f32 0.2, %v6219_v30 }
 0x148   :  { %v592_v18 = vpack.c.bf16 %v575_v16, %v574_v12  ;;  %v556_v19 = vsel %vm492_vm10, %v6216_v29, %v524_v8  ;;  %v557_v20 = vsel %vm493_vm11, %v6231_v35, %v525_v9  ;;  %v527_v31 = vmul.f32 0.2, %v6234_v36 }
 0x149   :  { %5313 = vmatmul.mubr.msk.bf16.gmra.mxu1 %vm626_vm6, %v591_v11  ;;  %v583_v13 = vpack.c.bf16 %v557_v20, %v556_v19  ;;  %v480_v14 = vadd.f32 %v6260_v6, %v6186_v2  ;;  %v481_v15 = vadd.f32 %v6260_v6, %v6189_v4  ;;  %v464_v29 = vadd.f32 %v6206_v24, %v6186_v2 }
 0x14a   :  { %5316 = vmatprep.mubr.msk.bf16.mxu1 %vm626_vm6, %v592_v18  ;;  %v465_v35 = vadd.f32 %v6206_v24, %v6189_v4  ;;  %vm498_vm14 = vcmp.gt.f32.partialorder %v6252_v63, 0.0  ;;  %v558_v37 = vsel %vm494_vm12, %v6219_v30, %v526_v23  ;;  %v559_v38 = vsel %vm495_vm13, %v6234_v36, %v527_v31 }
 0x14b   :  { %vm512_vm15 = vcmp.gt.f32.partialorder %v480_v14, 0.0  ;;  %v544_v39 = vmul.f32 0.2, %v480_v14  ;;  %v584_v40 = vpack.c.bf16 %v559_v38, %v558_v37  ;;  %vm513_vm0 = vcmp.gt.f32.partialorder %v481_v15, 0.0 }
 0x14c   :  { %v545_v28 = vmul.f32 0.2, %v481_v15  ;;  %vm496_vm1 = vcmp.gt.f32.partialorder %v464_v29, 0.0  ;;  %5297 = vmatmul.mubr.msk.bf16.gmra.mxu0 %vm626_vm6, %v583_v13  ;;  %vm497_vm3 = vcmp.gt.f32.partialorder %v465_v35, 0.0  ;;  %v528_v41 = vmul.f32 0.2, %v464_v29 }
 0x14d   :  { %v576_v6 = vsel %vm512_vm15, %v480_v14, %v544_v39  ;;  %v529_v42 = vmul.f32 0.2, %v465_v35  ;;  %5300 = vmatprep.mubr.msk.bf16.mxu0 %vm626_vm6, %v584_v40  ;;  %vm499_vm4 = vcmp.gt.f32.partialorder %v6255_v1, 0.0  ;;  %v530_v30 = vmul.f32 0.2, %v6252_v63 }
 0x14e   :  { %v577_v24 = vsel %vm513_vm0, %v481_v15, %v545_v28  ;;  %v531_v36 = vmul.f32 0.2, %v6255_v1  ;;  %v468_v44 = vadd.f32 %v6243_v55, %v6186_v2  ;;  %v469_v45 = vadd.f32 %v6243_v55, %v6189_v4 }
 0x14f   :  { %v593_v43 = vpack.c.bf16 %v577_v24, %v576_v6  ;;  %v560_v47 = vsel %vm496_vm1, %v464_v29, %v528_v41  ;;  %v561_v48 = vsel %vm497_vm3, %v465_v35, %v529_v42  ;;  %v562_v50 = vsel %vm498_vm14, %v6252_v63, %v530_v30  ;;  %v6361_v63 = vpop.f32.mrf.mxu1 }
 0x150   :  { %v563_v21 = vsel %vm499_vm4, %v6255_v1, %v531_v36  ;;  %v585_v32 = vpack.c.bf16 %v561_v48, %v560_v47  ;;  %v532_v52 = vmul.f32 0.2, %v468_v44  ;;  %v533_v53 = vmul.f32 0.2, %v469_v45 }
 0x151   :  { %5317 = vmatmul.mubr.msk.bf16.gmra.mxu1 %vm626_vm6, %v593_v43  ;;  %v586_v51 = vpack.c.bf16 %v563_v21, %v562_v50  ;;  %vm500_vm5 = vcmp.gt.f32.partialorder %v468_v44, 0.0  ;;  %vm501_vm7 = vcmp.gt.f32.partialorder %v469_v45, 0.0  ;;  %v5278_v1 = vpop.f32.mrf.mxu1  ;;  %v6396_v50 = vpop.permute.xlu0 %1092 }
 0x152   :  { %2035 = vmatprep.mubr.bf16.mxu1 %v6012_v0  ;;  %v564_v55 = vsel %vm500_vm5, %v468_v44, %v532_v52  ;;  %v565_v54 = vsel %vm501_vm7, %v469_v45, %v533_v53  ;;  %v6394_v45 = vpop.permute.xlu1 %1180  ;;  %8282 = vst [vmem:[#allocation22_spill] sm:$0xff] %v6396_v50 }
 0x153   :  { %v587_v56 = vpack.c.bf16 %v565_v54, %v564_v55  ;;  %v6363_v57 = vpop.f32.mrf.mxu1  ;;  %8281 = vst [vmem:[#allocation21_spill] sm:$0xff] %v6394_v45 }
 0x154   :  { %5301 = vmatmul.mubr.msk.bf16.gmra.mxu0 %vm626_vm6, %v585_v32 }
 0x155   :  { %5304 = vmatprep.mubr.msk.bf16.mxu0 %vm626_vm6, %v586_v51  ;;  %v5279_v58 = vpop.f32.mrf.mxu1 }
 0x15c   :  { %5305 = vmatmul.mubr.msk.bf16.gmra.mxu0 %vm626_vm6, %v587_v56 }
 0x15d   :  { %3668 = vmatprep.mubr.bf16.mxu0 %v6012_v0 }
 0x1fb   :  { %v5290_v59 = vpop.f32.mrf.mxu0 }
 0x1fc   :  { %v845_v62 = vsel %vm626_vm6, %v5290_v59, -inf }
 0x1fd   :  { %v709_v60 = vpop.f32.mrf.mxu0 }
 0x1fe   :  { %v836_v7 = vsel %vm626_vm6, %v709_v60, -inf }
 0x1ff   :  { %v5291_v61 = vpop.f32.mrf.mxu0 }
 0x200   :  { %v846_v3 = vsel %vm626_vm6, %v5291_v61, -inf }
 0x201   :  { %v6367_v26 = vpop.f32.mrf.mxu1  ;;  %v847_v5 = vmax.f32 %v845_v62, %v846_v3  ;;  %v712_v33 = vpop.f32.mrf.mxu0 }
 0x202   :  { %v837_v0 = vsel %vm626_vm6, %v712_v33, -inf }
 0x203   :  { %v6371_v27 = vpop.f32.mrf.mxu1  ;;  %v848_v34 = vrot.slane %v847_v5, 4  ;;  %v838_v8 = vmax.f32 %v836_v7, %v837_v0  ;;  %v6398_v7 = vpop.permute.xlu1 %1184 }
 0x204   :  { %v6373_v9 = vpop.f32.mrf.mxu0  ;;  %v926_v23 = vsel %vm626_vm6, %v6371_v27, -inf  ;;  %8283 = vst [vmem:[#allocation23_spill] sm:$0xff] %v6398_v7 }
 0x205   :  { %v6375_v11 = vpop.f32.mrf.mxu1  ;;  %v849_v12 = vmax.f32 %v847_v5, %v848_v34  ;;  %v839_v16 = vrot.slane %v838_v8, 4  ;;  %v863_v38 = vsel %vm626_vm6, %v6373_v9, -inf  ;;  %v6400_v34 = vpop.permute.xlu0 %1096 }
 0x206   :  { %v6377_v18 = vpop.f32.mrf.mxu0  ;;  %8284 = vst [vmem:[#allocation24_spill] sm:$0xff] %v6400_v34 }
 0x207   :  { %v792_v19 = vpop.f32.mrf.mxu1  ;;  %v850_v20 = vrot.slane %v849_v12, 2  ;;  %v840_v13 = vmax.f32 %v838_v8, %v839_v16  ;;  %v854_v41 = vsel %vm626_vm6, %v6377_v18, -inf }
 0x208   :  { %v927_v31 = vsel %vm626_vm6, %v792_v19, -inf  ;;  %v6382_v14 = vpop.f32.mrf.mxu0 }
 0x209   :  { %v928_v15 = vmax.f32 %v926_v23, %v927_v31  ;;  %v851_v29 = vmax.f32 %v849_v12, %v850_v20  ;;  %v841_v35 = vrot.slane %v840_v13, 2  ;;  %v864_v37 = vsel %vm626_vm6, %v6382_v14, -inf  ;;  %v6405_v20 = vpop.f32.mrf.mxu1  ;;  %v6409_v31 = vpop.permute.xlu1 %1107 }
 0x20a   :  { %v6388_v40 = vpop.f32.mrf.mxu0  ;;  %v865_v24 = vmax.f32 %v863_v38, %v864_v37  ;;  %v936_v12 = vsel %vm626_vm6, %v6375_v11, -inf  ;;  %8285 = vst [vmem:[#allocation25_spill] sm:$0xff] %v6409_v31 }
 0x20b   :  { %v929_v39 = vrot.slane %v928_v15, 4  ;;  %v852_v28 = vrot.slane %v851_v29, 1  ;;  %v842_v6 = vmax.f32 %v840_v13, %v841_v35  ;;  %v855_v42 = vsel %vm626_vm6, %v6388_v40, -inf  ;;  %v6411_v35 = vpop.permute.xlu0 %1103 }
 0x20c   :  { %v856_v36 = vmax.f32 %v854_v41, %v855_v42  ;;  %v866_v52 = vrot.slane %v865_v24, 4  ;;  %v935_v13 = vsel %vm626_vm6, %v6367_v26, -inf  ;;  %8286 = vst [vmem:[#allocation26_spill] sm:$0xff] %v6411_v35 }
 0x20d   :  { %v930_v30 = vmax.f32 %v928_v15, %v929_v39  ;;  %v853_v43 = vmax.f32 %v851_v29, %v852_v28  ;;  %v843_v44 = vrot.slane %v842_v6, 1  ;;  %v937_v15 = vmax.f32 %v935_v13, %v936_v12  ;;  %v6413_v39 = vpop.f32.mrf.mxu1  ;;  %v6417_v42 = vpop.permute.xlu1 %1195 }
 0x20e   :  { %v857_v48 = vrot.slane %v856_v36, 4  ;;  %8287 = vst [vmem:[#allocation27_spill] sm:$0xff] %v6417_v42 }
 0x20f   :  { %v931_v47 = vrot.slane %v930_v30, 2  ;;  %v982_v21 = vsub.f32 %v5290_v59, %v853_v43  ;;  %v983_v32 = vsub.f32 %v5291_v61, %v853_v43  ;;  %v844_v51 = vmax.f32 %v842_v6, %v843_v44  ;;  %v6424_v43 = vpop.permute.xlu0 %1191 }
 0x210   :  { %v858_v55 = vmax.f32 %v856_v36, %v857_v48  ;;  %v867_v59 = vmax.f32 %v865_v24, %v866_v52  ;;  %v938_v28 = vrot.slane %v937_v15, 4  ;;  %v6419_v24 = vpop.f32.mrf.mxu1  ;;  %8288 = vst [vmem:[#allocation28_spill] sm:$0xff] %v6424_v43 }
 0x211   :  { %v932_v53 = vmax.f32 %v930_v30, %v931_v47  ;;  %v1016_v54 = vmul.f32 1.442695, %v982_v21  ;;  %v1018_v56 = vmul.f32 1.442695, %v983_v32  ;;  %v980_v1 = vsub.f32 %v709_v60, %v844_v51 }
 0x212   :  { %v981_v58 = vsub.f32 %v712_v33, %v844_v51  ;;  %v859_v3 = vrot.slane %v858_v55, 2  ;;  %v868_v23 = vrot.slane %v867_v59, 2  ;;  %v939_v48 = vmax.f32 %v937_v15, %v938_v28 }
 0x213   :  { %v933_v62 = vrot.slane %v932_v53, 1  ;;  %5498 = vpow2.f32 %v1016_v54  ;;  %v1012_v5 = vmul.f32 1.442695, %v980_v1  ;;  %v954_v32 = vsel %vm626_vm6, %v6419_v24, -inf }
 0x214   :  { %5500 = vpow2.f32 %v1018_v56  ;;  %v1014_v0 = vmul.f32 1.442695, %v981_v58  ;;  %v860_v8 = vmax.f32 %v858_v55, %v859_v3  ;;  %v953_v54 = vsel %vm626_vm6, %v6405_v20, -inf  ;;  %v6434_v58 = vpop.permute.xlu1 %1085  ;;  %v6436_v3 = vpop.permute.xlu0 %1081 }
 0x215   :  { %v934_v61 = vmax.f32 %v932_v53, %v933_v62  ;;  %5502 = vpow2.f32 %v1012_v5  ;;  %v940_v1 = vrot.slane %v939_v48, 2  ;;  %8289 = vst [vmem:[#allocation29_spill] sm:$0xff] %v6434_v58  ;;  %v955_v62 = vmax.f32 %v953_v54, %v954_v32  ;;  %8290 = vst [vmem:[#allocation30_spill] sm:$0xff] %v6436_v3  ;;  %v6438_v5 = vpop.f32.mrf.mxu0 }
 0x216   :  { %v861_v33 = vrot.slane %v860_v8, 1  ;;  %5504 = vpow2.f32 %v1014_v0 }
 0x217   :  { %v1000_v60 = vsub.f32 %v6371_v27, %v934_v61  ;;  %v1001_v16 = vsub.f32 %v792_v19, %v934_v61  ;;  %v869_v27 = vmax.f32 %v867_v59, %v868_v23  ;;  %v160_v61 = vrot.slane %v6172_v46, %v6158_v22  ;;  %v6450_v13 = vpop.f32.mrf.mxu0 }
 0x218   :  { %v862_v29 = vmax.f32 %v860_v8, %v861_v33 }
 0x219   :  { %v1052_v37 = vmul.f32 1.442695, %v1000_v60  ;;  %v1054_v38 = vmul.f32 1.442695, %v1001_v16  ;;  %v870_v44 = vrot.slane %v869_v27, 1  ;;  %v941_v60 = vmax.f32 %v939_v48, %v940_v1 }
 0x21a   :  { %v984_v19 = vsub.f32 %v6377_v18, %v862_v29  ;;  %v985_v6 = vsub.f32 %v6388_v40, %v862_v29  ;;  %v956_v16 = vrot.slane %v955_v62, 4 }
 0x21b   :  { %5506 = vpow2.f32 %v1052_v37  ;;  %v871_v55 = vmax.f32 %v869_v27, %v870_v44  ;;  %v942_v27 = vrot.slane %v941_v60, 1 }
 0x21c   :  { %5508 = vpow2.f32 %v1054_v38  ;;  %v1020_v18 = vmul.f32 1.442695, %v984_v19  ;;  %v1022_v21 = vmul.f32 1.442695, %v985_v6  ;;  %v6457_v38 = vadd.f32 %v6361_v63, %v160_v61 }
 0x21d   :  { %v986_v8 = vsub.f32 %v6373_v9, %v871_v55  ;;  %v987_v33 = vsub.f32 %v6382_v14, %v871_v55  ;;  %v957_v19 = vmax.f32 %v955_v62, %v956_v16  ;;  %v6460_v14 = vadd.f32 %v6363_v57, %v160_v61 }
 0x21e   :  { %5510 = vpow2.f32 %v1020_v18  ;;  %v943_v18 = vmax.f32 %v941_v60, %v942_v27  ;;  %v881_v62 = vsel %vm626_vm6, %v6438_v5, -inf  ;;  %v944_v61 = vsel %vm626_vm6, %v6413_v39, -inf }
 0x21f   :  { %5512 = vpow2.f32 %v1022_v21  ;;  %v1024_v46 = vmul.f32 1.442695, %v986_v8  ;;  %v1026_v28 = vmul.f32 1.442695, %v987_v33  ;;  %v6471_v21 = vpop.f32.mrf.mxu1 }
 0x220   :  { %v5499_v41 = vpop.eup %5498  ;;  %v945_v33 = vsel %vm626_vm6, %v6471_v21, -inf  ;;  %v1003_v27 = vsub.f32 %v6375_v11, %v943_v18 }
 0x221   :  { %v5501_v30 = vpop.eup %5500  ;;  %v6422_v36 = vmul.f32 %v5499_v41, %v6396_v50  ;;  %v6462_v41 = vpop.f32.mrf.mxu0  ;;  %5514 = vpow2.f32 %v1024_v46 }
 0x222   :  { %v1255_v47 = vmul.f32 %v5501_v30, %v6400_v34  ;;  %v5503_v51 = vpop.eup %5502  ;;  %5516 = vpow2.f32 %v1026_v28  ;;  %v882_v60 = vsel %vm626_vm6, %v6462_v41, -inf }
 0x223   :  { %v1293_v40 = vsel %vm626_vm6, %v6422_v36, 0.0  ;;  %v5505_v53 = vpop.eup %5504  ;;  %v6444_v59 = vmul.f32 %v5503_v51, %v6436_v3  ;;  %v6476_v55 = vpop.f32.mrf.mxu0  ;;  %v1462_v8 = vmul.f32 %v6422_v36, %v6186_v2  ;;  %v883_v51 = vmax.f32 %v881_v62, %v882_v60 }
 0x224   :  { %v1294_v52 = vsel %vm626_vm6, %v1255_v47, 0.0  ;;  %v6441_v0 = vmul.f32 %v5505_v53, %v6434_v58 }
 0x225   :  { %v1295_v56 = vadd.f32 %v1294_v52, %v1293_v40  ;;  %v1284_v29 = vsel %vm626_vm6, %v6444_v59, 0.0  ;;  %v958_v40 = vrot.slane %v957_v19, 2  ;;  %v6519_v52 = vpop.f32.mrf.mxu1 }
 0x226   :  { %v1285_v15 = vsel %vm626_vm6, %v6441_v0, 0.0  ;;  %v1461_v60 = vmul.f32 %v6441_v0, %v6189_v4 }
 0x227   :  { %v1296_v12 = vrot.slane %v1295_v56, 4  ;;  %v1286_v6 = vadd.f32 %v1285_v15, %v1284_v29  ;;  %v959_v15 = vmax.f32 %v957_v19, %v958_v40  ;;  %v873_v29 = vsel %vm626_vm6, %v6476_v55, -inf }
 0x228   :  { %v5507_v23 = vpop.eup %5506 }
 0x229   :  { %v5509_v37 = vpop.eup %5508  ;;  %v1297_v9 = vadd.f32 %v1296_v12, %v1295_v56  ;;  %v6465_v30 = vmul.f32 %v5507_v23, %v6424_v43  ;;  %v1287_v53 = vrot.slane %v1286_v6, 4  ;;  %v1463_v12 = vmul.f32 %v1255_v47, %v6189_v4 }
 0x22a   :  { %v6468_v44 = vmul.f32 %v5509_v37, %v6417_v42  ;;  %v1002_v23 = vsub.f32 %v6367_v26, %v943_v18  ;;  %v1501_v26 = vsel %vm626_vm6, %v1462_v8, 0.0  ;;  %v884_v8 = vrot.slane %v883_v51, 4  ;;  %v6526_v42 = vpop.f32.mrf.mxu0 }
 0x22b   :  { %v1298_v48 = vrot.slane %v1297_v9, 2  ;;  %v5511_v57 = vpop.eup %5510  ;;  %v1374_v56 = vsel %vm626_vm6, %v6465_v30, 0.0  ;;  %v1288_v47 = vadd.f32 %v1287_v53, %v1286_v6  ;;  %v1502_v19 = vsel %vm626_vm6, %v1463_v12, 0.0 }
 0x22c   :  { %v5513_v54 = vpop.eup %5512  ;;  %v1375_v1 = vsel %vm626_vm6, %v6468_v44, 0.0  ;;  %v6497_v46 = vmul.f32 %v5511_v57, %v6411_v35  ;;  %v1503_v62 = vadd.f32 %v1502_v19, %v1501_v26 }
 0x22d   :  { %v1299_v16 = vadd.f32 %v1298_v48, %v1297_v9  ;;  %v1376_v37 = vadd.f32 %v1375_v1, %v1374_v56  ;;  %v6500_v36 = vmul.f32 %v5513_v54, %v6409_v31  ;;  %v946_v9 = vmax.f32 %v944_v61, %v945_v33 }
 0x22e   :  { %v872_v48 = vsel %vm626_vm6, %v6450_v13, -inf  ;;  %v1056_v56 = vmul.f32 1.442695, %v1002_v23  ;;  %v960_v54 = vrot.slane %v959_v15, 1  ;;  %v1302_v11 = vsel %vm626_vm6, %v6497_v46, 0.0 }
 0x22f   :  { %v1300_v57 = vrot.slane %v1299_v16, 1  ;;  %v874_v1 = vmax.f32 %v872_v48, %v873_v29  ;;  %v1377_v6 = vrot.slane %v1376_v37, 4  ;;  %v1303_v18 = vsel %vm626_vm6, %v6500_v36, 0.0  ;;  %v5515_v48 = vpop.eup %5514 }
 0x230   :  { %v1289_v53 = vrot.slane %v1288_v47, 2  ;;  %v1058_v61 = vmul.f32 1.442695, %v1003_v27  ;;  %v947_v12 = vrot.slane %v946_v9, 4  ;;  %v1460_v33 = vmul.f32 %v6444_v59, %v6186_v2  ;;  %v5517_v26 = vpop.eup %5516  ;;  %v6524_v59 = vpop.permute.xlu0 %1114 }
 0x231   :  { %v1301_v28 = vadd.f32 %v1300_v57, %v1299_v16  ;;  %v1304_v40 = vadd.f32 %v1303_v18, %v1302_v11  ;;  %v875_v32 = vrot.slane %v874_v1, 4  ;;  %5518 = vpow2.f32 %v1056_v56  ;;  %8291 = vst [vmem:[#allocation31_spill] sm:$0xff] %v6524_v59  ;;  %v6530_v11 = vpop.permute.xlu1 %1118 }
 0x232   :  { %v1378_v19 = vadd.f32 %v1377_v6, %v1376_v37  ;;  %v1290_v10 = vadd.f32 %v1289_v53, %v1288_v47  ;;  %v6522_v0 = vmax.f32 %v959_v15, %v960_v54  ;;  %v1504_v63 = vrot.slane %v1503_v62, 4  ;;  %8292 = vst [vmem:[#allocation32_spill] sm:$0xff] %v6530_v11 }
 0x233   :  { %5520 = vpow2.f32 %v1058_v61  ;;  %v885_v23 = vmax.f32 %v883_v51, %v884_v8  ;;  %v948_v29 = vmax.f32 %v946_v9, %v947_v12  ;;  %v1493_v16 = vsel %vm626_vm6, %v1461_v60, 0.0  ;;  %v6544_v60 = vpop.f32.mrf.mxu1 }
 0x234   :  { %v1492_v57 = vsel %vm626_vm6, %v1460_v33, 0.0  ;;  %v1258_v56 = vmul.f32 %v5515_v48, %v6524_v59  ;;  %v6535_v15 = vsel %vm626_vm6, %v6519_v52, -inf  ;;  %vm1429_vm8 = vcmp.eq.f32.partialorder %v1301_v28, 0.0  ;;  %v6563_v31 = vpop.permute.xlu0 %1169 }
 0x235   :  { %v1305_v37 = vrot.slane %v1304_v40, 4  ;;  %v1259_v47 = vmul.f32 %v5517_v26, %v6530_v11  ;;  %v876_v51 = vmax.f32 %v874_v1, %v875_v32  ;;  %v1379_v9 = vrot.slane %v1378_v19, 2  ;;  %8294 = vst [vmem:[#allocation34_spill] sm:$0xff] %v6563_v31 }
 0x236   :  { %v1291_v54 = vrot.slane %v1290_v10, 1  ;;  %v1006_v6 = vsub.f32 %v6405_v20, %v6522_v0  ;;  %v6542_v18 = vsel %vm626_vm6, %v6526_v42, -inf  ;;  %v1505_v53 = vadd.f32 %v1504_v63, %v1503_v62 }
 0x237   :  { %v1494_v61 = vadd.f32 %v1493_v16, %v1492_v57  ;;  %v949_v8 = vrot.slane %v948_v29, 2  ;;  %v877_v12 = vrot.slane %v876_v51, 2  ;;  %v1445_v33 = vsel %vm1429_vm8, 1.0, %v1301_v28 }
 0x238   :  { %v1480_v48 = vmul.f32 %v6465_v30, %v6186_v2  ;;  %v1481_v32 = vmul.f32 %v6468_v44, %v6189_v4  ;;  %v1464_v20 = vmul.f32 %v6497_v46, %v6186_v2  ;;  %v1306_v1 = vadd.f32 %v1305_v37, %v1304_v40  ;;  %v6560_v46 = vpop.permute.xlu1 %1173  ;;  %v6585_v34 = vpop.permute.xlu0 %1202 }
 0x239   :  { %v1465_v26 = vmul.f32 %v6500_v36, %v6189_v4  ;;  %v1312_v63 = vsel %vm626_vm6, %v1259_v47, 0.0  ;;  %v1311_v62 = vsel %vm626_vm6, %v1258_v56, 0.0  ;;  %v1380_v16 = vadd.f32 %v1379_v9, %v1378_v19  ;;  %8293 = vst [vmem:[#allocation33_spill] sm:$0xff] %v6560_v46  ;;  %v6565_v19 = vpop.f32.mrf.mxu0  ;;  %8296 = vst [vmem:[#allocation36_spill] sm:$0xff] %v6585_v34 }
 0x23a   :  { %v1292_v57 = vadd.f32 %v1291_v54, %v1290_v10  ;;  %v886_v28 = vrot.slane %v885_v23, 2  ;;  %v6558_v30 = vsel %vm626_vm6, %v6544_v60, -inf  ;;  %5522 = vrcp.f32 %v1445_v33 }
 0x23b   :  { %v1064_v44 = vmul.f32 1.442695, %v1006_v6  ;;  %v950_v27 = vmax.f32 %v948_v29, %v949_v8  ;;  %v878_v43 = vmax.f32 %v876_v51, %v877_v12  ;;  %v1506_v40 = vrot.slane %v1505_v53, 2  ;;  %v6578_v11 = vpop.f32.mrf.mxu0 }
 0x23c   :  { %v1582_v36 = vsel %vm626_vm6, %v1480_v48, 0.0  ;;  %v1495_v37 = vrot.slane %v1494_v61, 4  ;;  %v1313_v22 = vadd.f32 %v1312_v63, %v1311_v62  ;;  %v1583_v10 = vsel %vm626_vm6, %v1481_v32, 0.0 }
 0x23d   :  { %v1307_v9 = vrot.slane %v1306_v1, 2  ;;  %v1510_v54 = vsel %vm626_vm6, %v1464_v20, 0.0  ;;  %v1511_v6 = vsel %vm626_vm6, %v1465_v26, 0.0  ;;  %v1381_v29 = vrot.slane %v1380_v16, 1 }
 0x23e   :  { %vm1428_vm9 = vcmp.eq.f32.partialorder %v1292_v57, 0.0  ;;  %v1467_v51 = vmul.f32 %v1259_v47, %v6189_v4  ;;  %v1466_v8 = vmul.f32 %v1258_v56, %v6186_v2  ;;  %v5519_v12 = vpop.eup %5518  ;;  %v1007_v33 = vsub.f32 %v6419_v24, %v6522_v0 }
 0x23f   :  { %v6574_v48 = vmax.f32 %v885_v23, %v886_v28  ;;  %v879_v63 = vrot.slane %v878_v43, 1  ;;  %v890_v32 = vsel %vm626_vm6, %v6565_v19, -inf  ;;  %v1507_v20 = vadd.f32 %v1506_v40, %v1505_v53  ;;  %v6583_v28 = vpop.permute.xlu1 %1206  ;;  %v6587_v40 = vpop.f32.mrf.mxu1 }
 0x240   :  { %v5521_v62 = vpop.eup %5520  ;;  %v1584_v35 = vadd.f32 %v1583_v10, %v1582_v36  ;;  %5524 = vpow2.f32 %v1064_v44  ;;  %v1314_v26 = vrot.slane %v1313_v22, 4  ;;  %v1308_v47 = vadd.f32 %v1307_v9, %v1306_v1  ;;  %8295 = vst [vmem:[#allocation35_spill] sm:$0xff] %v6583_v28 }
 0x241   :  { %v1512_v59 = vadd.f32 %v1511_v6, %v1510_v54  ;;  %v1444_v56 = vsel %vm1428_vm9, 1.0, %v1292_v57  ;;  %v1496_v58 = vadd.f32 %v1495_v37, %v1494_v61  ;;  %v1382_v3 = vadd.f32 %v1381_v29, %v1380_v16  ;;  %v6596_v37 = vpop.f32.mrf.mxu0 }
 0x242   :  { %v1520_v24 = vsel %vm626_vm6, %v1467_v51, 0.0  ;;  %v1519_v23 = vsel %vm626_vm6, %v1466_v8, 0.0  ;;  %v951_v0 = vrot.slane %v950_v27, 1  ;;  %v1066_v53 = vmul.f32 1.442695, %v1007_v33 }
 0x243   :  { %v880_v44 = vmax.f32 %v878_v43, %v879_v63  ;;  %v6590_v1 = vmul.f32 %v5521_v62, %v6583_v28  ;;  %v6593_v57 = vmul.f32 %v5519_v12, %v6585_v34  ;;  %v1508_v61 = vrot.slane %v1507_v20, 1 }
 0x244   :  { %5526 = vrcp.f32 %v1444_v56  ;;  %v1315_v16 = vadd.f32 %v1314_v26, %v1313_v22  ;;  %v888_v36 = vrot.slane %v6574_v48, 1  ;;  %v1585_v10 = vrot.slane %v1584_v35, 4 }
 0x245   :  { %v1513_v9 = vrot.slane %v1512_v59, 4  ;;  %v1497_v54 = vrot.slane %v1496_v58, 2  ;;  %v1521_v6 = vadd.f32 %v1520_v24, %v1519_v23  ;;  %vm1438_vm10 = vcmp.eq.f32.partialorder %v1382_v3, 0.0 }
 0x246   :  { %v1309_v43 = vrot.slane %v1308_v47, 1  ;;  %v952_v29 = vmax.f32 %v950_v27, %v951_v0  ;;  %v972_v51 = vsel %vm626_vm6, %v6587_v40, -inf  ;;  %v989_v8 = vsub.f32 %v6476_v55, %v880_v44 }
 0x247   :  { %v1384_v12 = vsel %vm626_vm6, %v6590_v1, 0.0  ;;  %v1383_v22 = vsel %vm626_vm6, %v6593_v57, 0.0  ;;  %v891_v33 = vsel %vm626_vm6, %v6596_v37, -inf  ;;  %v5523_v63 = vpop.eup %5522  ;;  %v1509_v62 = vadd.f32 %v1508_v61, %v1507_v20 }
 0x248   :  { %5528 = vpow2.f32 %v1066_v53  ;;  %v1316_v26 = vrot.slane %v1315_v16, 2  ;;  %v988_v27 = vsub.f32 %v6450_v13, %v880_v44  ;;  %v1586_v56 = vadd.f32 %v1585_v10, %v1584_v35 }
 0x249   :  { %v1514_v24 = vadd.f32 %v1513_v9, %v1512_v59  ;;  %v1498_v23 = vadd.f32 %v1497_v54, %v1496_v58  ;;  %v1522_v0 = vrot.slane %v1521_v6, 4  ;;  %v1454_v55 = vsel %vm1438_vm10, 1.0, %v1382_v3  ;;  %v6614_v58 = vld [vmem:[#allocation6] ss:$0 sm:$0xff] }
 0x24a   :  { %v973_v28 = vmax.f32 %v6535_v15, %v972_v51  ;;  %v1385_v34 = vadd.f32 %v1384_v12, %v1383_v22  ;;  %v892_v50 = vmax.f32 %v890_v32, %v891_v33  ;;  %v1653_v25 = vmul.f32 %v5523_v63, %v1509_v62  ;;  %v6620_v63 = vpop.f32.mrf.mxu0 }
 0x24b   :  { %v1310_v49 = vadd.f32 %v1309_v43, %v1308_v47  ;;  %v1004_v17 = vsub.f32 %v6413_v39, %v952_v29  ;;  %v1030_v46 = vmul.f32 1.442695, %v989_v8  ;;  %v1317_v20 = vadd.f32 %v1316_v26, %v1315_v16 }
 0x24c   :  { %v1005_v53 = vsub.f32 %v6471_v21, %v952_v29  ;;  %v1028_v61 = vmul.f32 1.442695, %v988_v27  ;;  %v893_v13 = vrot.slane %v892_v50, 4  ;;  %v1587_v59 = vrot.slane %v1586_v56, 2 }
 0x24d   :  { %v6612_v35 = vpop.eup %5524  ;;  %v1515_v3 = vrot.slane %v1514_v24, 2  ;;  %v1499_v44 = vrot.slane %v1498_v23, 1  ;;  %v1523_v15 = vadd.f32 %v1522_v0, %v1521_v6  ;;  %5530 = vrcp.f32 %v1454_v55  ;;  %v6638_v0 = vpop.f32.mrf.mxu0 }
 0x24e   :  { %v974_v32 = vrot.slane %v973_v28, 4  ;;  %v1386_v10 = vrot.slane %v1385_v34, 4  ;;  %v894_v47 = vmax.f32 %v892_v50, %v893_v13  ;;  %vm1430_vm11 = vcmp.eq.f32.partialorder %v1310_v49, 0.0 }
 0x24f   :  { %v889_v39 = vmax.f32 %v6574_v48, %v888_v36  ;;  %v1060_v16 = vmul.f32 1.442695, %v1004_v17  ;;  %5532 = vpow2.f32 %v1030_v46  ;;  %v1676_v21 = vadd.f32 %v6614_v58, %v1653_v25 }
 0x250   :  { %v1318_v9 = vrot.slane %v1317_v20, 1  ;;  %v1062_v54 = vmul.f32 1.442695, %v1005_v53  ;;  %5534 = vpow2.f32 %v1028_v61  ;;  %v1588_v29 = vadd.f32 %v1587_v59, %v1586_v56 }
 0x251   :  { %v5527_v43 = vpop.eup %5526  ;;  %v1516_v51 = vadd.f32 %v1515_v3, %v1514_v24  ;;  %v1524_v8 = vrot.slane %v1523_v15, 2  ;;  %v895_v12 = vrot.slane %v894_v47, 2  ;;  %v1500_v6 = vadd.f32 %v1499_v44, %v1498_v23 }
 0x252   :  { %v975_v22 = vmax.f32 %v973_v28, %v974_v32  ;;  %v1387_v33 = vadd.f32 %v1386_v10, %v1385_v34  ;;  %v900_v50 = vsel %vm626_vm6, %v6578_v11, -inf  ;;  %v1446_v17 = vsel %vm1430_vm11, 1.0, %v1310_v49  ;;  %v6629_v34 = vpop.f32.mrf.mxu1 }
 0x253   :  { %v990_v25 = vsub.f32 %v6438_v5, %v889_v39  ;;  %v991_v46 = vsub.f32 %v6462_v41, %v889_v39  ;;  %5536 = vpow2.f32 %v1060_v16  ;;  %v8297_v48 = vrot.slane %v6457_v38, 1  ;;  %v6647_v39 = vpop.f32.mrf.mxu0 }
 0x254   :  { %v1652_v62 = vmul.f32 %v5527_v43, %v1500_v6  ;;  %v1319_v26 = vadd.f32 %v1318_v9, %v1317_v20  ;;  %5538 = vpow2.f32 %v1062_v54  ;;  %v1525_v27 = vadd.f32 %v1524_v8, %v1523_v15 }
 0x255   :  { %v6627_v36 = vadd.f32 %v8297_v48, %v1676_v21  ;;  %v6631_v28 = vpop.eup %5528  ;;  %v1483_v49 = vmul.f32 %v6590_v1, %v6189_v4  ;;  %v901_v5 = vmax.f32 %v6542_v18, %v900_v50  ;;  %v896_v56 = vmax.f32 %v894_v47, %v895_v12 }
 0x256   :  { %5540 = vrcp.f32 %v1446_v17  ;;  %v976_v41 = vrot.slane %v975_v22, 2  ;;  %v1388_v24 = vrot.slane %v1387_v33, 2  ;;  %v1482_v23 = vmul.f32 %v6593_v57, %v6186_v2  ;;  %v6656_v17 = vpop.permute.xlu1 %1129 }
 0x257   :  { %v1589_v55 = vrot.slane %v1588_v29, 1  ;;  %v1032_v20 = vmul.f32 1.442695, %v990_v25  ;;  %v963_v53 = vsel %vm626_vm6, %v6629_v34, -inf  ;;  %v897_v61 = vrot.slane %v896_v56, 1  ;;  %8298 = vst [vmem:[#allocation37_spill] sm:$0xff] %v6656_v17 }
 0x258   :  { %v1757_v13 = vmul.f32 1.442695, %v6627_v36  ;;  %v1517_v1 = vrot.slane %v1516_v51, 1  ;;  %v1675_v18 = vadd.f32 %v6614_v58, %v1652_v62  ;;  %v1034_v59 = vmul.f32 1.442695, %v991_v46  ;;  %v6662_v62 = vpop.f32.mrf.mxu0 }
 0x259   :  { %vm1431_vm12 = vcmp.eq.f32.partialorder %v1319_v26, 0.0  ;;  %v1526_v3 = vrot.slane %v1525_v27, 1  ;;  %v1592_v44 = vsel %vm626_vm6, %v1483_v49, 0.0  ;;  %v902_v15 = vrot.slane %v901_v5, 4 }
 0x25a   :  { %v977_v57 = vmax.f32 %v975_v22, %v976_v41  ;;  %v1389_v32 = vadd.f32 %v1388_v24, %v1387_v33  ;;  %v1591_v10 = vsel %vm626_vm6, %v1482_v23, 0.0  ;;  %v964_v47 = vmax.f32 %v6558_v30, %v963_v53  ;;  %v5531_v16 = vpop.eup %5530 }
 0x25b   :  { %v1590_v21 = vadd.f32 %v1589_v55, %v1588_v29  ;;  %5542 = vpow2.f32 %v1032_v20  ;;  %v898_v9 = vmax.f32 %v896_v56, %v897_v61  ;;  %v1518_v8 = vadd.f32 %v1517_v1, %v1516_v51  ;;  %v6658_v29 = vpop.permute.xlu0 %1125 }
 0x25c   :  { %v5533_v43 = vpop.eup %5532  ;;  %v6651_v12 = vadd.f32 %v1675_v18, %v6457_v38  ;;  %v1447_v6 = vsel %vm1431_vm12, 1.0, %v1319_v26  ;;  %5544 = vpow2.f32 %v1034_v59  ;;  %v6654_v33 = vadd.f32 %v1526_v3, %v1525_v27  ;;  %v5460_v3 = vld [vmem:[#allocation7 + $0x4c] ss:$12 sps:$4 sm:$0xff]  }
 0x25d   :  { %v5535_v22 = vpop.eup %5534  ;;  %5546 = vpow2.f32 %v1757_v13  ;;  %v1593_v30 = vadd.f32 %v1592_v44, %v1591_v10  ;;  %v903_v50 = vmax.f32 %v901_v5, %v902_v15  ;;  %v978_v25 = vrot.slane %v977_v57, 1  ;;  %2011 = vmatprep.subr.bf16.mxu1 %v5460_v3 }
 0x25e   :  { %v1390_v46 = vrot.slane %v1389_v32, 1  ;;  %v965_v48 = vrot.slane %v964_v47, 4  ;;  %v918_v51 = vsel %vm626_vm6, %v6647_v39, -inf  ;;  %v1662_v26 = vmul.f32 %v5531_v16, %v1590_v21  ;;  %v6678_v16 = vpop.permute.xlu1 %1217 }
 0x25f   :  { %5548 = vrcp.f32 %v1447_v6  ;;  %v992_v49 = vsub.f32 %v6565_v19, %v898_v9  ;;  %v1261_v27 = vmul.f32 %v5533_v43, %v6656_v17  ;;  %v1755_v5 = vmul.f32 1.442695, %v6651_v12  ;;  %8299 = vst [vmem:[#allocation38_spill] sm:$0xff] %v6678_v16  ;;  %v6680_v21 = vpop.permute.xlu0 %1213  ;;  %v5463_v6 = vld [vmem:[#allocation7 + $0x34] ss:$12 sps:$4 sm:$0xff]  }
 0x260   :  { %v5537_v56 = vpop.eup %5536  ;;  %v993_v41 = vsub.f32 %v6596_v37, %v898_v9  ;;  %v1260_v24 = vmul.f32 %v5535_v22, %v6658_v29  ;;  %v917_v23 = vsel %vm626_vm6, %v6620_v63, -inf  ;;  %v1594_v20 = vrot.slane %v1593_v30, 4  ;;  %v5458_v37 = vld [vmem:[#allocation7 + $0x48] ss:$12 sps:$4 sm:$0xff]   ;;  %8300 = vst [vmem:[#allocation39_spill] sm:$0xff] %v6680_v21 }
 0x261   :  { %v5539_v55 = vpop.eup %5538  ;;  %v904_v53 = vrot.slane %v903_v50, 2  ;;  %v919_v61 = vmax.f32 %v917_v23, %v918_v51  ;;  %v909_v13 = vsel %vm626_vm6, %v6662_v62, -inf  ;;  %v6673_v19 = vmax.f32 %v977_v57, %v978_v25  ;;  %2012 = vmatpush1.bf16.msra.mxu1 %v5458_v37 }
 0x262   :  { %v1391_v1 = vadd.f32 %v1390_v46, %v1389_v32  ;;  %v966_v18 = vmax.f32 %v964_v47, %v965_v48  ;;  %v908_v59 = vsel %vm626_vm6, %v6638_v0, -inf  ;;  %v1036_v15 = vmul.f32 1.442695, %v992_v49  ;;  %v5461_v49 = vld [vmem:[#allocation7 + $0x30] ss:$12 sps:$4 sm:$0xff]   ;;  %2013 = vmatprep.subr.bf16.mxu1 %v5463_v6 }
 0x263   :  { %v5541_v44 = vpop.eup %5540  ;;  %v1321_v10 = vsel %vm626_vm6, %v1261_v27, 0.0  ;;  %v920_v9 = vrot.slane %v919_v61, 4  ;;  %v910_v43 = vmax.f32 %v908_v59, %v909_v13  ;;  %v1038_v57 = vmul.f32 1.442695, %v993_v41  ;;  %v5466_v59 = vld [vmem:[#allocation7 + $0x1c] ss:$12 sps:$4 sm:$0xff]  }
 0x264   :  { %v1320_v32 = vsel %vm626_vm6, %v1260_v24, 0.0  ;;  %v6684_v47 = vmul.f32 %v5539_v55, %v6678_v16  ;;  %v6687_v22 = vmul.f32 %v5537_v56, %v6680_v21  ;;  %v1595_v25 = vadd.f32 %v1594_v20, %v1593_v30 }
 0x265   :  { %v905_v46 = vmax.f32 %v903_v50, %v904_v53  ;;  %v921_v48 = vmax.f32 %v919_v61, %v920_v9  ;;  %v911_v51 = vrot.slane %v910_v43, 4  ;;  %v1654_v23 = vmul.f32 %v5541_v44, %v1518_v8  ;;  %2014 = vmatpush1.bf16.msra.mxu1 %v5461_v49  ;;  %v5464_v61 = vld [vmem:[#allocation7 + $0x18] ss:$12 sps:$4 sm:$0xff]  }
 0x266   :  { %v967_v54 = vrot.slane %v966_v18, 2  ;;  %v1469_v13 = vmul.f32 %v1261_v27, %v6189_v4  ;;  %v1468_v41 = vmul.f32 %v1260_v24, %v6186_v2  ;;  %5550 = vpow2.f32 %v1036_v15  ;;  %2015 = vmatprep.subr.bf16.mxu1 %v5466_v59  ;;  %v5469_v9 = vld [vmem:[#allocation7 + $0x4] ss:$12 sps:$4 sm:$0xff]   ;;  %v5467_v59 = vld [vmem:[#allocation7] ss:$12 sps:$4 sm:$0xff]  }
 0x267   :  { %v1322_v55 = vadd.f32 %v1321_v10, %v1320_v32  ;;  %v922_v16 = vrot.slane %v921_v48, 2  ;;  %v912_v56 = vmax.f32 %v910_v43, %v911_v51  ;;  %vm1439_vm13 = vcmp.eq.f32.partialorder %v1391_v1, 0.0 }
 0x268   :  { %v5543_v21 = vpop.eup %5542  ;;  %5552 = vpow2.f32 %v1038_v57  ;;  %v1393_v30 = vsel %vm626_vm6, %v6684_v47, 0.0  ;;  %v1392_v8 = vsel %vm626_vm6, %v6687_v22, 0.0  ;;  %v6696_v27 = vadd.f32 %v6614_v58, %v1662_v26  ;;  %v6707_v57 = vpop.permute.xlu0 %1136 }
 0x269   :  { %v5545_v50 = vpop.eup %5544  ;;  %v1010_v24 = vsub.f32 %v6519_v52, %v6673_v19  ;;  %v1596_v20 = vrot.slane %v1595_v25, 2  ;;  %v906_v53 = vrot.slane %v905_v46, 1  ;;  %v1529_v3 = vsel %vm626_vm6, %v1469_v13, 0.0  ;;  %v6705_v52 = vpop.permute.xlu1 %1140  ;;  %8302 = vst [vmem:[#allocation41_spill] sm:$0xff] %v6707_v57  ;;  %2016 = vmatpush1.bf16.msra.mxu1 %v5464_v61 }
 0x26a   :  { %v6700_v37 = vpop.eup %5546  ;;  %v1528_v44 = vsel %vm626_vm6, %v1468_v41, 0.0  ;;  %v923_v15 = vmax.f32 %v921_v48, %v922_v16  ;;  %v913_v10 = vrot.slane %v912_v56, 2  ;;  %5554 = vpow2.f32 %v1755_v5  ;;  %8301 = vst [vmem:[#allocation40_spill] sm:$0xff] %v6705_v52  ;;  %2017 = vmatprep.subr.bf16.mxu1 %v5469_v9 }
 0x26b   :  { %v1455_v26 = vsel %vm1439_vm13, 1.0, %v1391_v1  ;;  %v1323_v43 = vrot.slane %v1322_v55, 4  ;;  %v1394_v6 = vadd.f32 %v1393_v30, %v1392_v8  ;;  %v6712_v51 = vadd.f32 %v6614_v58, %v1654_v23 }
 0x26c   :  { %v6709_v32 = vpop.eup %5548  ;;  %v968_v49 = vmax.f32 %v966_v18, %v967_v54  ;;  %v924_v13 = vrot.slane %v923_v15, 1  ;;  %v914_v16 = vmax.f32 %v912_v56, %v913_v10  ;;  %v1011_v48 = vsub.f32 %v6587_v40, %v6673_v19 }
 0x26d   :  { %v6716_v5 = vmul.f32 1.442695, %v1010_v24  ;;  %v6718_v1 = vmax.f32 %v905_v46, %v906_v53  ;;  %v1530_v41 = vadd.f32 %v1529_v3, %v1528_v44  ;;  %v6720_v30 = vadd.f32 %v1596_v20, %v1595_v25  ;;  %v6736_v53 = vpop.permute.xlu1 %1228  ;;  %2018 = vmatpush1.bf16.msra.mxu1 %v5467_v59 }
 0x26e   :  { %5556 = vrcp.f32 %v1455_v26  ;;  %v925_v8 = vmax.f32 %v923_v15, %v924_v13  ;;  %v915_v17 = vrot.slane %v914_v16, 1  ;;  %v1324_v23 = vadd.f32 %v1323_v43, %v1322_v55  ;;  %8303 = vst [vmem:[#allocation42_spill] sm:$0xff] %v6736_v53 }
 0x26f   :  { %v1395_v54 = vrot.slane %v1394_v6, 4  ;;  %v6723_v18 = vmul.f32 %v5545_v50, %v6705_v52  ;;  %v6726_v40 = vmul.f32 %v5543_v21, %v6707_v57  ;;  %v969_v19 = vrot.slane %v968_v49, 1  ;;  %v6738_v21 = vpop.permute.xlu0 %1224 }
 0x270   :  { %v998_v46 = vsub.f32 %v6620_v63, %v925_v8  ;;  %v999_v56 = vsub.f32 %v6647_v39, %v925_v8  ;;  %v916_v24 = vmax.f32 %v914_v16, %v915_v17  ;;  %v994_v25 = vsub.f32 %v6526_v42, %v6718_v1  ;;  %8304 = vst [vmem:[#allocation43_spill] sm:$0xff] %v6738_v21 }
 0x271   :  { %v1531_v20 = vrot.slane %v1530_v41, 4  ;;  %v1485_v55 = vmul.f32 %v6684_v47, %v6189_v4  ;;  %v1484_v50 = vmul.f32 %v6687_v22, %v6186_v2  ;;  %v8305_v3 = vmov 0.0  }
 0x272   :  { %v1048_v61 = vmul.f32 1.442695, %v998_v46  ;;  %v1050_v63 = vmul.f32 1.442695, %v999_v56  ;;  %v996_v39 = vsub.f32 %v6638_v0, %v916_v24  ;;  %v997_v17 = vsub.f32 %v6662_v62, %v916_v24  ;;  %5320 = vmatprep.subr.bf16.mxu1 %v8305_v3 }
 0x273   :  { %v1325_v42 = vrot.slane %v1324_v23, 2  ;;  %v1396_v44 = vadd.f32 %v1395_v54, %v1394_v6  ;;  %v1330_v47 = vsel %vm626_vm6, %v6723_v18, 0.0  ;;  %v1329_v22 = vsel %vm626_vm6, %v6726_v40, 0.0  ;;  %v5551_v15 = vpop.eup %5550 }
 0x274   :  { %v970_v10 = vmax.f32 %v968_v49, %v969_v19  ;;  %5558 = vpow2.f32 %v1048_v61  ;;  %v1044_v9 = vmul.f32 1.442695, %v996_v39  ;;  %v1046_v26 = vmul.f32 1.442695, %v997_v17 }
 0x275   :  { %v5553_v43 = vpop.eup %5552  ;;  %v995_v0 = vsub.f32 %v6578_v11, %v6718_v1  ;;  %5560 = vpow2.f32 %v1050_v63  ;;  %v6751_v62 = vmul.f32 %v6631_v28, %v6736_v53  ;;  %v6755_v6 = vmul.f32 %v6612_v35, %v6738_v21  ;;  %v6759_v11 = vpop.permute.xlu1 %1151 }
 0x276   :  { %v1532_v13 = vadd.f32 %v1531_v20, %v1530_v41  ;;  %v1601_v16 = vsel %vm626_vm6, %v1485_v55, 0.0  ;;  %5562 = vpow2.f32 %v1044_v9  ;;  %v1331_v49 = vadd.f32 %v1330_v47, %v1329_v22  ;;  %8306 = vst [vmem:[#allocation44_spill] sm:$0xff] %v6759_v11  ;;  %v6761_v1 = vpop.permute.xlu0 %1147 }
 0x277   :  { %v1326_v59 = vadd.f32 %v1325_v42, %v1324_v23  ;;  %v1397_v8 = vrot.slane %v1396_v44, 2  ;;  %v1600_v54 = vsel %vm626_vm6, %v1484_v50, 0.0  ;;  %5564 = vpow2.f32 %v1046_v26  ;;  %8307 = vst [vmem:[#allocation45_spill] sm:$0xff] %v6761_v1  ;;  %v6763_v28 = vpop.eup %5554 }
 0x278   :  { %v1074_v19 = vmul.f32 1.442695, %v1011_v48  ;;  %v1008_v35 = vsub.f32 %v6544_v60, %v970_v10  ;;  %v6767_v41 = vmul.f32 %v5553_v43, %v6759_v11  ;;  %v6770_v46 = vmul.f32 %v5551_v15, %v6761_v1 }
 0x279   :  { %v1598_v23 = vrot.slane %v6720_v30, 1  ;;  %v1009_v56 = vsub.f32 %v6629_v34, %v970_v10  ;;  %v1402_v24 = vsel %vm626_vm6, %v6751_v62, 0.0  ;;  %v1401_v20 = vsel %vm626_vm6, %v6755_v6, 0.0 }
 0x27a   :  { %v1040_v55 = vmul.f32 1.442695, %v994_v25  ;;  %v1533_v48 = vrot.slane %v1532_v13, 2  ;;  %v1602_v50 = vadd.f32 %v1601_v16, %v1600_v54  ;;  %v1332_v60 = vrot.slane %v1331_v49, 4 }
 0x27b   :  { %v5557_v61 = vpop.eup %5556  ;;  %5566 = vpow2.f32 %v6716_v5  ;;  %v1042_v63 = vmul.f32 1.442695, %v995_v0  ;;  %v1327_v39 = vrot.slane %v1326_v59, 1  ;;  %v1398_v17 = vadd.f32 %v1397_v8, %v1396_v44 }
 0x27c   :  { %v1068_v42 = vmul.f32 1.442695, %v1008_v35  ;;  %v1403_v47 = vadd.f32 %v1402_v24, %v1401_v20  ;;  %v1339_v34 = vsel %vm626_vm6, %v6767_v41, 0.0  ;;  %v1338_v22 = vsel %vm626_vm6, %v6770_v46, 0.0 }
 0x27d   :  { %v8308_v25 = vrot.slane %v6460_v14, 2  ;;  %5568 = vpow2.f32 %v1074_v19  ;;  %v1599_v10 = vadd.f32 %v1598_v23, %v6720_v30  ;;  %v1070_v5 = vmul.f32 1.442695, %v1009_v56 }
 0x27e   :  { %5570 = vpow2.f32 %v1040_v55  ;;  %v1534_v9 = vadd.f32 %v1533_v48, %v1532_v13  ;;  %v1603_v44 = vrot.slane %v1602_v50, 4  ;;  %v1333_v26 = vadd.f32 %v1332_v60, %v1331_v49 }
 0x27f   :  { %v6786_v15 = vadd.f32 %v8308_v25, %v6696_v27  ;;  %5572 = vpow2.f32 %v1042_v63  ;;  %v1328_v43 = vadd.f32 %v1327_v39, %v1326_v59  ;;  %v1399_v0 = vrot.slane %v1398_v17, 1 }
 0x280   :  { %v1340_v16 = vadd.f32 %v1339_v34, %v1338_v22  ;;  %v8309_v8 = vrot.slane %v6457_v38, 2  ;;  %v6796_v27 = vmul.f32 %v6709_v32, %v6654_v33  ;;  %5574 = vpow2.f32 %v1068_v42  ;;  %v8310_v34 = vld [vmem:[#allocation33_spill] sm:$0xff] }
 0x281   :  { %v1404_v30 = vrot.slane %v1403_v47, 4  ;;  %v5559_v19 = vpop.eup %5558  ;;  %v6798_v35 = vmul.f32 %v5557_v61, %v1599_v10  ;;  %5576 = vpow2.f32 %v1070_v5  ;;  %v1471_v13 = vmul.f32 %v6723_v18, %v6189_v4 }
 0x282   :  { %v6792_v54 = vadd.f32 %v8309_v8, %v6712_v51  ;;  %v1470_v49 = vmul.f32 %v6726_v40, %v6186_v2  ;;  %v5561_v59 = vpop.eup %5560  ;;  %v1535_v23 = vrot.slane %v1534_v9, 1  ;;  %v6804_v51 = vadd.f32 %v1603_v44, %v1602_v50 }
 0x283   :  { %v1270_v56 = vmul.f32 %v5559_v19, %v6394_v45  ;;  %v1334_v33 = vrot.slane %v1333_v26, 2  ;;  %v5563_v32 = vpop.eup %5562  ;;  %vm1432_vm14 = vcmp.eq.f32.partialorder %v1328_v43, 0.0  ;;  %v6807_v24 = vadd.f32 %v1399_v0, %v1398_v17 }
 0x284   :  { %v1271_v20 = vmul.f32 %v5561_v59, %v6398_v7  ;;  %v1341_v55 = vrot.slane %v1340_v16, 4  ;;  %v5565_v48 = vpop.eup %5564  ;;  %v1268_v40 = vmul.f32 %v5563_v32, %v6563_v31  ;;  %v1405_v61 = vadd.f32 %v1404_v30, %v1403_v47 }
 0x285   :  { %v1365_v18 = vsel %vm626_vm6, %v1270_v56, 0.0  ;;  %v1478_v60 = vmul.f32 %v1270_v56, %v6186_v2  ;;  %v1538_v39 = vsel %vm626_vm6, %v1471_v13, 0.0  ;;  %v1537_v17 = vsel %vm626_vm6, %v1470_v49, 0.0 }
 0x286   :  { %v1366_v50 = vsel %vm626_vm6, %v1271_v20, 0.0  ;;  %v1479_v63 = vmul.f32 %v1271_v20, %v6189_v4  ;;  %v1269_v22 = vmul.f32 %v5565_v48, %v8310_v34  ;;  %v1356_v25 = vsel %vm626_vm6, %v1268_v40, 0.0 }
 0x287   :  { %v1367_v42 = vadd.f32 %v1366_v50, %v1365_v18  ;;  %v1335_v10 = vadd.f32 %v1334_v33, %v1333_v26  ;;  %v1573_v5 = vsel %vm626_vm6, %v1478_v60, 0.0  ;;  %v1476_v47 = vmul.f32 %v1268_v40, %v6186_v2 }
 0x288   :  { %v1574_v44 = vsel %vm626_vm6, %v1479_v63, 0.0  ;;  %v1342_v0 = vadd.f32 %v1341_v55, %v1340_v16  ;;  %v6822_v8 = vpop.eup %5566  ;;  %v1357_v19 = vsel %vm626_vm6, %v1269_v22, 0.0  ;;  %v1477_v13 = vmul.f32 %v1269_v22, %v6189_v4 }
 0x289   :  { %v1368_v30 = vrot.slane %v1367_v42, 4  ;;  %v1406_v49 = vrot.slane %v1405_v61, 2  ;;  %v1358_v59 = vadd.f32 %v1357_v19, %v1356_v25  ;;  %v1539_v56 = vadd.f32 %v1538_v39, %v1537_v17 }
 0x28a   :  { %v1487_v26 = vmul.f32 %v6751_v62, %v6189_v4  ;;  %v1486_v33 = vmul.f32 %v6755_v6, %v6186_v2  ;;  %v6830_v32 = vpop.eup %5568  ;;  %v1575_v16 = vadd.f32 %v1574_v44, %v1573_v5  ;;  %v1564_v55 = vsel %vm626_vm6, %v1476_v47, 0.0 }
 0x28b   :  { %v1369_v20 = vadd.f32 %v1368_v30, %v1367_v42  ;;  %v1565_v48 = vsel %vm626_vm6, %v1477_v13, 0.0  ;;  %v6834_v18 = vpop.eup %5570  ;;  %v1448_v60 = vsel %vm1432_vm14, 1.0, %v1328_v43  ;;  %v6837_v40 = vadd.f32 %v1535_v23, %v1534_v9 }
 0x28c   :  { %v1359_v50 = vrot.slane %v1358_v59, 4  ;;  %v1343_v63 = vrot.slane %v1342_v0, 2  ;;  %v6839_v62 = vpop.eup %5572  ;;  %v1605_v6 = vrot.slane %v6804_v51, 2  ;;  %v1336_v17 = vrot.slane %v1335_v10, 1 }
 0x28d   :  { %v1370_v39 = vrot.slane %v1369_v20, 2  ;;  %v1407_v42 = vadd.f32 %v1406_v49, %v1405_v61  ;;  %v5575_v22 = vpop.eup %5574  ;;  %v1566_v5 = vadd.f32 %v1565_v48, %v1564_v55  ;;  %v1610_v44 = vsel %vm626_vm6, %v1487_v26, 0.0  ;;  %v6849_v48 = vpop.permute.xlu1 %1239 }
 0x28e   :  { %v1360_v25 = vadd.f32 %v1359_v50, %v1358_v59  ;;  %v1609_v47 = vsel %vm626_vm6, %v1486_v33, 0.0  ;;  %v5577_v30 = vpop.eup %5576  ;;  %vm1440_vm15 = vcmp.eq.f32.partialorder %v6807_v24, 0.0  ;;  %v1576_v43 = vrot.slane %v1575_v16, 4  ;;  %8311 = vst [vmem:[#allocation46_spill] sm:$0xff] %v6849_v48 }
 0x28f   :  { %v1371_v9 = vadd.f32 %v1370_v39, %v1369_v20  ;;  %v1540_v23 = vrot.slane %v1539_v56, 4  ;;  %v1473_v13 = vmul.f32 %v6767_v41, %v6189_v4  ;;  %v1344_v53 = vadd.f32 %v1343_v63, %v1342_v0  ;;  %v6854_v39 = vpop.permute.xlu0 %1235 }
 0x290   :  { %v1361_v19 = vrot.slane %v1360_v25, 2  ;;  %v1472_v61 = vmul.f32 %v6770_v46, %v6186_v2  ;;  %v1337_v59 = vadd.f32 %v1336_v17, %v1335_v10  ;;  %v1408_v55 = vrot.slane %v1407_v42, 1  ;;  %8312 = vst [vmem:[#allocation47_spill] sm:$0xff] %v6854_v39 }
 0x291   :  { %v1372_v49 = vrot.slane %v1371_v9, 1  ;;  %v1611_v26 = vadd.f32 %v1610_v44, %v1609_v47  ;;  %5578 = vrcp.f32 %v1448_v60  ;;  %v6852_v33 = vadd.f32 %v1605_v6, %v6804_v51 }
 0x292   :  { %v1362_v20 = vadd.f32 %v1361_v19, %v1360_v25  ;;  %v1567_v50 = vrot.slane %v1566_v5, 4  ;;  %v1456_v41 = vsel %vm1440_vm15, 1.0, %v6807_v24  ;;  %v1577_v46 = vadd.f32 %v1576_v43, %v1575_v16 }
 0x293   :  { %v1373_v0 = vadd.f32 %v1372_v49, %v1371_v9  ;;  %v6859_v63 = vadd.f32 %v1540_v23, %v1539_v56  ;;  %v1547_v17 = vsel %vm626_vm6, %v1473_v13, 0.0  ;;  %v1345_v44 = vrot.slane %v1344_v53, 1  ;;  %v6865_v9 = vpop.permute.xlu1 %1162  ;;  %v6868_v13 = vpop.permute.xlu0 %1158 }
 0x294   :  { %v1363_v10 = vrot.slane %v1362_v20, 1  ;;  %v1546_v60 = vsel %vm626_vm6, %v1472_v61, 0.0  ;;  %vm1433_vm1 = vcmp.eq.f32.partialorder %v1337_v59, 0.0  ;;  %v1409_v51 = vadd.f32 %v1408_v55, %v1407_v42  ;;  %8313 = vst [vmem:[#allocation48_spill] sm:$0xff] %v6865_v9  ;;  %8314 = vst [vmem:[#allocation49_spill] sm:$0xff] %v6868_v13 }
 0x295   :  { %vm1437_vm0 = vcmp.eq.f32.partialorder %v1373_v0, 0.0  ;;  %v1612_v6 = vrot.slane %v1611_v26, 4  ;;  %v1568_v19 = vadd.f32 %v1567_v50, %v1566_v5  ;;  %v1281_v21 = vmul.f32 %v5577_v30, %v6849_v48 }
 0x296   :  { %v1453_v25 = vsel %vm1437_vm0, 1.0, %v1373_v0  ;;  %v1364_v47 = vadd.f32 %v1363_v10, %v1362_v20  ;;  %v1607_v24 = vrot.slane %v6852_v33, 1  ;;  %v1578_v16 = vrot.slane %v1577_v46, 2 }
 0x297   :  { %5580 = vrcp.f32 %v1453_v25  ;;  %v1548_v56 = vadd.f32 %v1547_v17, %v1546_v60  ;;  %v1542_v43 = vrot.slane %v6859_v63, 2  ;;  %v1346_v23 = vadd.f32 %v1345_v44, %v1344_v53 }
 0x298   :  { %5582 = vrcp.f32 %v1456_v41  ;;  %vm1436_vm3 = vcmp.eq.f32.partialorder %v1364_v47, 0.0  ;;  %v1449_v61 = vsel %vm1433_vm1, 1.0, %v1337_v59  ;;  %vm1441_vm4 = vcmp.eq.f32.partialorder %v1409_v51, 0.0 }
 0x299   :  { %v1452_v42 = vsel %vm1436_vm3, 1.0, %v1364_v47  ;;  %v1613_v5 = vadd.f32 %v1612_v6, %v1611_v26  ;;  %v1569_v30 = vrot.slane %v1568_v19, 2  ;;  %v1411_v49 = vsel %vm626_vm6, %v1281_v21, 0.0  ;;  %v6886_v6 = vpop.permute.xlu0 %1246 }
 0x29a   :  { %5584 = vrcp.f32 %v1452_v42  ;;  %v1280_v55 = vmul.f32 %v5575_v22, %v6854_v39  ;;  %v1579_v20 = vadd.f32 %v1578_v16, %v1577_v46  ;;  %v1549_v50 = vrot.slane %v1548_v56, 4  ;;  %v6881_v46 = vpop.permute.xlu1 %1250 }
 0x29b   :  { %v1267_v41 = vmul.f32 %v6839_v62, %v6865_v9  ;;  %v1266_v53 = vmul.f32 %v6834_v18, %v6868_v13  ;;  %vm1434_vm5 = vcmp.eq.f32.partialorder %v1346_v23, 0.0  ;;  %v1489_v0 = vmul.f32 %v1281_v21, %v6189_v4  ;;  %8315 = vst [vmem:[#allocation50_spill] sm:$0xff] %v6881_v46 }
 0x29c   :  { %v1410_v59 = vsel %vm626_vm6, %v1280_v55, 0.0  ;;  %v1488_v26 = vmul.f32 %v1280_v55, %v6186_v2  ;;  %5586 = vrcp.f32 %v1449_v61  ;;  %v1457_v10 = vsel %vm1441_vm4, 1.0, %v1409_v51 }
 0x29d   :  { %v1412_v17 = vadd.f32 %v1411_v49, %v1410_v59  ;;  %v1348_v22 = vsel %vm626_vm6, %v1267_v41, 0.0  ;;  %v1570_v44 = vadd.f32 %v1569_v30, %v1568_v19  ;;  %v1475_v62 = vmul.f32 %v1267_v41, %v6189_v4 }
 0x29e   :  { %v1347_v60 = vsel %vm626_vm6, %v1266_v53, 0.0  ;;  %v1474_v18 = vmul.f32 %v1266_v53, %v6186_v2  ;;  %v5579_v21 = vpop.eup %5578  ;;  %v1580_v25 = vrot.slane %v1579_v20, 1  ;;  %v1450_v47 = vsel %vm1434_vm5, 1.0, %v1346_v23 }
 0x29f   :  { %v1550_v16 = vadd.f32 %v1549_v50, %v1548_v56  ;;  %v1413_v51 = vrot.slane %v1412_v17, 4  ;;  %v1619_v42 = vsel %vm626_vm6, %v1489_v0, 0.0  ;;  %v1618_v61 = vsel %vm626_vm6, %v1488_v26, 0.0 }
 0x2a0   :  { %v1349_v49 = vadd.f32 %v1348_v22, %v1347_v60  ;;  %v1283_v19 = vmul.f32 %v6830_v32, %v6881_v46  ;;  %v1614_v30 = vrot.slane %v1613_v5, 2  ;;  %5588 = vrcp.f32 %v1457_v10 }
 0x2a1   :  { %v1414_v55 = vadd.f32 %v1413_v51, %v1412_v17  ;;  %v1282_v41 = vmul.f32 %v6822_v8, %v6886_v6  ;;  %v1571_v53 = vrot.slane %v1570_v44, 1  ;;  %v1556_v59 = vsel %vm626_vm6, %v1475_v62, 0.0 }
 0x2a2   :  { %v1350_v23 = vrot.slane %v1349_v49, 4  ;;  %v1555_v56 = vsel %vm626_vm6, %v1474_v18, 0.0  ;;  %v1581_v50 = vadd.f32 %v1580_v25, %v1579_v20  ;;  %5590 = vrcp.f32 %v1450_v47 }
 0x2a3   :  { %v1415_v0 = vrot.slane %v1414_v55, 2  ;;  %v1620_v26 = vadd.f32 %v1619_v42, %v1618_v61  ;;  %v1608_v60 = vadd.f32 %v1607_v24, %v6852_v33  ;;  %v1551_v32 = vrot.slane %v1550_v16, 2 }
 0x2a4   :  { %v5581_v22 = vpop.eup %5580  ;;  %v1351_v48 = vadd.f32 %v1350_v23, %v1349_v49  ;;  %v1420_v10 = vsel %vm626_vm6, %v1283_v19, 0.0  ;;  %v1557_v39 = vadd.f32 %v1556_v59, %v1555_v56  ;;  %v1419_v62 = vsel %vm626_vm6, %v1282_v41, 0.0 }
 0x2a5   :  { %v5583_v17 = vpop.eup %5582  ;;  %v1661_v51 = vmul.f32 %v5581_v22, %v1581_v50  ;;  %v1416_v8 = vadd.f32 %v1415_v0, %v1414_v55  ;;  %v1572_v46 = vadd.f32 %v1571_v53, %v1570_v44  ;;  %v1543_v18 = vadd.f32 %v1542_v43, %v6859_v63 }
 0x2a6   :  { %v1615_v20 = vadd.f32 %v1614_v30, %v1613_v5  ;;  %v1352_v25 = vrot.slane %v1351_v48, 2  ;;  %v1621_v61 = vrot.slane %v1620_v26, 4  ;;  %v1491_v33 = vmul.f32 %v1283_v19, %v6189_v4 }
 0x2a7   :  { %v5585_v47 = vpop.eup %5584  ;;  %v1417_v42 = vrot.slane %v1416_v8, 1  ;;  %v1490_v24 = vmul.f32 %v1282_v41, %v6186_v2  ;;  %v1684_v49 = vadd.f32 %v6614_v58, %v1661_v51  ;;  %v1421_v55 = vadd.f32 %v1420_v10, %v1419_v62 }
 0x2a8   :  { %v1660_v23 = vmul.f32 %v5585_v47, %v1572_v46  ;;  %v1353_v50 = vadd.f32 %v1352_v25, %v1351_v48  ;;  %v1656_v59 = vmul.f32 %v5579_v21, %v6837_v40  ;;  %v1552_v56 = vadd.f32 %v1551_v32, %v1550_v16 }
 0x2a9   :  { %v1418_v44 = vadd.f32 %v1417_v42, %v1416_v8  ;;  %v1558_v53 = vrot.slane %v1557_v39, 4  ;;  %v5587_v63 = vpop.eup %5586  ;;  %v1664_v43 = vmul.f32 %v5583_v17, %v1608_v60  ;;  %v1544_v5 = vrot.slane %v1543_v18, 1 }
 0x2aa   :  { %v1616_v30 = vrot.slane %v1615_v20, 1  ;;  %v1354_v0 = vrot.slane %v1353_v50, 1  ;;  %v1686_v4 = vadd.f32 %v6614_v58, %v6798_v35  ;;  %v1622_v2 = vadd.f32 %v1621_v61, %v1620_v26 }
 0x2ab   :  { %vm1442_vm7 = vcmp.eq.f32.partialorder %v1418_v44, 0.0  ;;  %v1628_v19 = vsel %vm626_vm6, %v1491_v33, 0.0  ;;  %v8316_v48 = vrot.slane %v6460_v14, 1  ;;  %v1683_v40 = vadd.f32 %v6614_v58, %v1660_v23 }
 0x2ac   :  { %v1422_v21 = vrot.slane %v1421_v55, 4  ;;  %v1627_v16 = vsel %vm626_vm6, %v1490_v24, 0.0  ;;  %v1553_v41 = vrot.slane %v1552_v56, 1  ;;  %v1458_v22 = vsel %vm1442_vm7, 1.0, %v1418_v44 }
 0x2ad   :  { %v6910_v46 = vadd.f32 %v8316_v48, %v1684_v49  ;;  %v1355_v60 = vadd.f32 %v1354_v0, %v1353_v50  ;;  %v1559_v32 = vadd.f32 %v1558_v53, %v1557_v39  ;;  %v5589_v10 = vpop.eup %5588  ;;  %v1679_v35 = vadd.f32 %v6614_v58, %v1656_v59 }
 0x2ae   :  { %v1687_v26 = vadd.f32 %v6614_v58, %v1664_v43  ;;  %v1545_v17 = vadd.f32 %v1544_v5, %v1543_v18  ;;  %v1617_v51 = vadd.f32 %v1616_v30, %v1615_v20  ;;  %v1623_v8 = vrot.slane %v1622_v2, 2 }
 0x2af   :  { %5592 = vrcp.f32 %v1458_v22  ;;  %vm1435_vm8 = vcmp.eq.f32.partialorder %v1355_v60, 0.0  ;;  %v1629_v62 = vadd.f32 %v1628_v19, %v1627_v16  ;;  %v5591_v25 = vpop.eup %5590  ;;  %v1773_v47 = vmul.f32 1.442695, %v6910_v46 }
 0x2b0   :  { %v6918_v42 = vadd.f32 %v1683_v40, %v6460_v14  ;;  %v1451_v61 = vsel %vm1435_vm8, 1.0, %v1355_v60  ;;  %v1423_v33 = vadd.f32 %v1422_v21, %v1421_v55  ;;  %v1657_v39 = vmul.f32 %v5587_v63, %v1545_v17 }
 0x2b1   :  { %v1554_v24 = vadd.f32 %v1553_v41, %v1552_v56  ;;  %v1560_v49 = vrot.slane %v1559_v32, 2  ;;  %5594 = vrcp.f32 %v1451_v61  ;;  %v1678_v18 = vadd.f32 %v6614_v58, %v6796_v27 }
 0x2b2   :  { %v8317_v20 = vrot.slane %v6460_v14, 3  ;;  %v1665_v50 = vmul.f32 %v5589_v10, %v1617_v51  ;;  %v1424_v59 = vrot.slane %v1423_v33, 2  ;;  %v1775_v44 = vmul.f32 1.442695, %v6786_v15 }
 0x2b3   :  { %v8318_v53 = vrot.slane %v6457_v38, 4  ;;  %v1658_v55 = vmul.f32 %v5591_v25, %v1554_v24  ;;  %v1624_v63 = vadd.f32 %v1623_v8, %v1622_v2  ;;  %5596 = vpow2.f32 %v1773_v47 }
 0x2b4   :  { %v6924_v23 = vadd.f32 %v8317_v20, %v1686_v4  ;;  %v1771_v56 = vmul.f32 1.442695, %v6918_v42  ;;  %v1425_v5 = vadd.f32 %v1424_v59, %v1423_v33  ;;  %v1630_v30 = vrot.slane %v1629_v62, 4 }
 0x2b5   :  { %v6929_v43 = vadd.f32 %v8318_v53, %v1679_v35  ;;  %v1759_v27 = vmul.f32 1.442695, %v6792_v54  ;;  %v8319_v0 = vrot.slane %v6460_v14, 4  ;;  %v1680_v19 = vadd.f32 %v6614_v58, %v1657_v39 }
 0x2b6   :  { %v1561_v48 = vadd.f32 %v1560_v49, %v1559_v32  ;;  %v8320_v40 = vrot.slane %v6457_v38, 3  ;;  %v1777_v2 = vmul.f32 1.442695, %v6924_v23  ;;  %v1688_v16 = vadd.f32 %v6614_v58, %v1665_v50 }
 0x2b7   :  { %v6935_v4 = vadd.f32 %v8319_v0, %v1687_v26  ;;  %v1426_v41 = vrot.slane %v1425_v5, 1  ;;  %5598 = vpow2.f32 %v1775_v44  ;;  %v1763_v22 = vmul.f32 1.442695, %v6929_v43 }
 0x2b8   :  { %v6940_v21 = vadd.f32 %v8320_v40, %v1678_v18  ;;  %v1681_v60 = vadd.f32 %v6614_v58, %v1658_v55  ;;  %v1625_v10 = vrot.slane %v1624_v63, 1  ;;  %5600 = vpow2.f32 %v1771_v56  ;;  %v5850_v56 = vld [vmem:[#allocation6] ss:$0 sm:$0xff] }
 0x2b9   :  { %v1698_v35 = vrot.slane %v6457_v38, 6  ;;  %v1427_v26 = vadd.f32 %v1426_v41, %v1425_v5  ;;  %v1631_v32 = vadd.f32 %v1630_v30, %v1629_v62  ;;  %5602 = vpow2.f32 %v1759_v27 }
 0x2ba   :  { %v1779_v17 = vmul.f32 1.442695, %v6935_v4  ;;  %v8321_v51 = vrot.slane %v6457_v38, 5  ;;  %v1562_v25 = vrot.slane %v1561_v48, 1  ;;  %v1761_v47 = vmul.f32 1.442695, %v6940_v21 }
 0x2bb   :  { %5604 = vpow2.f32 %v1777_v2  ;;  %v8322_v61 = vrot.slane %v6460_v14, 5  ;;  %vm1443_vm9 = vcmp.eq.f32.partialorder %v1427_v26, 0.0  ;;  %v6957_v33 = vadd.f32 %v1698_v35, %v1681_v60 }
 0x2bc   :  { %v6950_v8 = vadd.f32 %v8321_v51, %v1680_v19  ;;  %5606 = vpow2.f32 %v1763_v22  ;;  %v1626_v62 = vadd.f32 %v1625_v10, %v1624_v63  ;;  %v1459_v39 = vsel %vm1443_vm9, 1.0, %v1427_v26  ;;  %v5593_v24 = vpop.eup %5592 }
 0x2bd   :  { %v6955_v58 = vadd.f32 %v8322_v61, %v1688_v16  ;;  %v1632_v49 = vrot.slane %v1631_v32, 2  ;;  %5608 = vrcp.f32 %v1459_v39  ;;  %v1563_v50 = vadd.f32 %v1562_v25, %v1561_v48 }
 0x2be   :  { %5610 = vpow2.f32 %v1779_v17  ;;  %v1765_v18 = vmul.f32 1.442695, %v6950_v8  ;;  %v1666_v20 = vmul.f32 %v5593_v24, %v1626_v62  ;;  %v5595_v59 = vpop.eup %5594  ;;  %v1767_v53 = vmul.f32 1.442695, %v6957_v33 }
 0x2bf   :  { %5612 = vpow2.f32 %v1761_v47  ;;  %v1781_v44 = vmul.f32 1.442695, %v6955_v58  ;;  %v1705_v55 = vrot.slane %v6460_v14, 6  ;;  %v1659_v63 = vmul.f32 %v5595_v59, %v1563_v50 }
 0x2c0   :  { %v1689_v5 = vadd.f32 %v5850_v56, %v1666_v20  ;;  %v5099_v30 = vadd.f32 -1.0, %v6700_v37  ;;  %v1633_v27 = vadd.f32 %v1632_v49, %v1631_v32  ;;  %v5597_v0 = vpop.eup %5596  ;;  %5614 = vpow2.f32 %v1765_v18 }
 0x2c1   :  { %v1699_v48 = vrot.slane %v6457_v38, 7  ;;  %v1682_v40 = vadd.f32 %v5850_v56, %v1659_v63  ;;  %5616 = vpow2.f32 %v1781_v44  ;;  %vm1740_vm10 = vcmp.gt.f32.partialorder %v6627_v36, 0.0 }
 0x2c2   :  { %v6964_v19 = vadd.f32 %v1705_v55, %v1689_v5  ;;  %5618 = vpow2.f32 %v1767_v53  ;;  %v1804_v22 = vsel %vm1740_vm10, %v6627_v36, %v5099_v30  ;;  %v1634_v37 = vrot.slane %v1633_v27, 1 }
 0x2c3   :  { %v6969_v16 = vadd.f32 %v1699_v48, %v1682_v40  ;;  %v5107_v60 = vadd.f32 -1.0, %v5597_v0  ;;  %v5098_v38 = vadd.f32 -1.0, %v6763_v28  ;;  %v1820_v17 = vpack.c.bf16 %v1804_v22, %v1804_v22 }
 0x2c4   :  { %v1783_v2 = vmul.f32 1.442695, %v6964_v19  ;;  %v5599_v41 = vpop.eup %5598  ;;  %vm1748_vm11 = vcmp.gt.f32.partialorder %v6910_v46, 0.0  ;;  %v1635_v25 = vadd.f32 %v1634_v37, %v1633_v27  ;;  %vm1739_vm12 = vcmp.gt.f32.partialorder %v6651_v12, 0.0 }
 0x2c5   :  { %v5601_v10 = vpop.eup %5600  ;;  %v1769_v35 = vmul.f32 1.442695, %v6969_v16  ;;  %v1812_v61 = vsel %vm1748_vm11, %v6910_v46, %v5107_v60  ;;  %v5108_v62 = vadd.f32 -1.0, %v5599_v41  ;;  %v1803_v24 = vsel %vm1739_vm12, %v6651_v12, %v5098_v38 }
 0x2c6   :  { %5620 = vpow2.f32 %v1783_v2  ;;  %v5603_v26 = vpop.eup %5602  ;;  %v5106_v47 = vadd.f32 -1.0, %v5601_v10  ;;  %v1706_v49 = vrot.slane %v6460_v14, 7  ;;  %vm1747_vm13 = vcmp.gt.f32.partialorder %v6918_v42, 0.0 }
 0x2c7   :  { %5622 = vpow2.f32 %v1769_v35  ;;  %v5100_v50 = vadd.f32 -1.0, %v5603_v26  ;;  %v1828_v59 = vpack.c.bf16 %v1812_v61, %v1812_v61  ;;  %v6980_v44 = vunpack.c.l.b16 %v1820_v17 }
 0x2c8   :  { %v5605_v32 = vpop.eup %5604  ;;  %vm1749_vm14 = vcmp.gt.f32.partialorder %v6786_v15, 0.0  ;;  %v1811_v46 = vsel %vm1747_vm13, %v6918_v42, %v5106_v47  ;;  %v1819_v55 = vpack.c.bf16 %v1803_v24, %v1803_v24  ;;  %vm1901_vm15 = vcmask 1041409  }
 0x2c9   :  { %v5607_v51 = vpop.eup %5606  ;;  %v5109_v20 = vadd.f32 -1.0, %v5605_v32  ;;  %v1813_v12 = vsel %vm1749_vm14, %v6786_v15, %v5108_v62  ;;  %vm1750_vm0 = vcmp.gt.f32.partialorder %v6924_v23, 0.0  ;;  %vm1741_vm1 = vcmp.gt.f32.partialorder %v6792_v54, 0.0 }
 0x2ca   :  { %v5609_v36 = vpop.eup %5608  ;;  %v5102_v5 = vadd.f32 -1.0, %v5607_v51  ;;  %v1805_v48 = vsel %vm1741_vm1, %v6792_v54, %v5100_v50  ;;  %v1827_v42 = vpack.c.bf16 %v1811_v46, %v1811_v46  ;;  %v1893_v40 = vunpack.c.l.b16 %v1828_v59 }
 0x2cb   :  { %v5611_v39 = vpop.eup %5610  ;;  %v1667_v28 = vmul.f32 %v5609_v36, %v1635_v25  ;;  %vm1743_vm3 = vcmp.gt.f32.partialorder %v6929_v43, 0.0  ;;  %vm1751_vm4 = vcmp.gt.f32.partialorder %v6935_v4, 0.0  ;;  %v1829_v41 = vpack.c.bf16 %v1813_v12, %v1813_v12 }
 0x2cc   :  { %v5613_v18 = vpop.eup %5612  ;;  %v5110_v63 = vadd.f32 -1.0, %v5611_v39  ;;  %v1900_v22 = vrot.slane %v6980_v44, 7  ;;  %vm1742_vm5 = vcmp.gt.f32.partialorder %v6940_v21, 0.0  ;;  %v1807_v37 = vsel %vm1743_vm3, %v6929_v43, %v5102_v5 }
 0x2cd   :  { %v1690_v53 = vadd.f32 %v5850_v56, %v1667_v28  ;;  %v5615_v14 = vpop.eup %5614  ;;  %v5101_v30 = vadd.f32 -1.0, %v5613_v18  ;;  %v1814_v56 = vsel %vm1750_vm0, %v6924_v23, %v5109_v20  ;;  %v1821_v35 = vpack.c.bf16 %v1805_v48, %v1805_v48 }
 0x2ce   :  { %v5617_v0 = vpop.eup %5616  ;;  %v1815_v23 = vsel %vm1751_vm4, %v6935_v4, %v5110_v63  ;;  %v5103_v54 = vadd.f32 -1.0, %v5615_v14  ;;  %v1830_v26 = vpack.c.bf16 %v1814_v56, %v1814_v56  ;;  %v1892_v32 = vunpack.c.l.b16 %v1827_v42 }
 0x2cf   :  { %v6986_v27 = vadd.f32 %v1706_v49, %v1690_v53  ;;  %v5619_v2 = vpop.eup %5618  ;;  %v5111_v10 = vadd.f32 -1.0, %v5617_v0  ;;  %v1921_v17 = vrot.slane %v1893_v40, 7  ;;  %v1884_v51 = vunpack.c.l.b16 %v1819_v55 }
 0x2d0   :  { %v5104_v38 = vadd.f32 -1.0, %v5619_v2  ;;  %v1806_v25 = vsel %vm1742_vm5, %v6940_v21, %v5101_v30  ;;  %v1823_v47 = vpack.c.bf16 %v1807_v37, %v1807_v37  ;;  %v1894_v61 = vunpack.c.l.b16 %v1829_v41 }
 0x2d1   :  { %v1785_v15 = vmul.f32 1.442695, %v6986_v27  ;;  %v1831_v62 = vpack.c.bf16 %v1815_v23, %v1815_v23  ;;  %vm1744_vm7 = vcmp.gt.f32.partialorder %v6950_v8, 0.0  ;;  %vm1752_vm8 = vcmp.gt.f32.partialorder %v6955_v58, 0.0 }
 0x2d2   :  { %v1808_v4 = vsel %vm1744_vm7, %v6950_v8, %v5103_v54  ;;  %v1816_v39 = vsel %vm1752_vm8, %v6955_v58, %v5111_v10  ;;  %vm1745_vm9 = vcmp.gt.f32.partialorder %v6957_v33, 0.0  ;;  %v1886_v24 = vunpack.c.l.b16 %v1821_v35 }
 0x2d3   :  { %v5621_v60 = vpop.eup %5620  ;;  %5624 = vpow2.f32 %v1785_v15  ;;  %v1822_v49 = vpack.c.bf16 %v1806_v25, %v1806_v25  ;;  %v1895_v28 = vunpack.c.l.b16 %v1830_v26  ;;  %v1809_v21 = vsel %vm1745_vm9, %v6957_v33, %v5104_v38 }
 0x2d4   :  { %v5623_v36 = vpop.eup %5622  ;;  %v5112_v43 = vadd.f32 -1.0, %v5621_v60  ;;  %v1922_v18 = vsel %vm1901_vm15, %v1921_v17, %v1892_v32  ;;  %v1888_v20 = vunpack.c.l.b16 %v1823_v47  ;;  %vm1753_vm10 = vcmp.gt.f32.partialorder %v6964_v19, 0.0 }
 0x2d5   :  { %v5105_v50 = vadd.f32 -1.0, %v5623_v36  ;;  %v1923_v59 = vrot.slane %v1894_v61, 6  ;;  %v1824_v44 = vpack.c.bf16 %v1808_v4, %v1808_v4  ;;  %v1832_v53 = vpack.c.bf16 %v1816_v39, %v1816_v39 }
 0x2d6   :  { %v1817_v8 = vsel %vm1753_vm10, %v6964_v19, %v5112_v43  ;;  %vm1904_vm11 = vcmask 1042434   ;;  %v1896_v58 = vunpack.c.l.b16 %v1831_v62  ;;  %v1825_v46 = vpack.c.bf16 %v1809_v21, %v1809_v21  ;;  %v5472_v21 = vld [vmem:[#allocation7 + $0x20] ss:$12 sps:$4 sm:$0xff]  }
 0x2d7   :  { %v1903_v55 = vrot.slane %v1886_v24, 6  ;;  %v1924_v5 = vsel %vm1904_vm11, %v1923_v59, %v1922_v18  ;;  %v1887_v63 = vunpack.c.l.b16 %v1822_v49  ;;  %v1925_v12 = vrot.slane %v1895_v28, 5  ;;  %v5470_v24 = vld [vmem:[#allocation7 + $0x50] ss:$12 sps:$4 sm:$0xff]   ;;  %v5471_v28 = vld [vmem:[#allocation7 + $0x38] ss:$12 sps:$4 sm:$0xff]  }
 0x2d8   :  { %vm1746_vm12 = vcmp.gt.f32.partialorder %v6969_v16, 0.0  ;;  %v1833_v33 = vpack.c.bf16 %v1817_v8, %v1817_v8  ;;  %vm1907_vm13 = vcmask 1043459   ;;  %v1902_v30 = vsel %vm1901_vm15, %v1900_v22, %v1884_v51  ;;  %v5473_v18 = vld [vmem:[#allocation7 + $0x8] ss:$12 sps:$4 sm:$0xff]  }
 0x2d9   :  { %v1810_v14 = vsel %vm1746_vm12, %v6969_v16, %v5105_v50  ;;  %v1889_v0 = vunpack.c.l.b16 %v1824_v44  ;;  %v1897_v56 = vunpack.c.l.b16 %v1832_v53  ;;  %v1926_v19 = vsel %vm1907_vm13, %v1925_v12, %v1924_v5  ;;  %v5475_v50 = vld [vmem:[#allocation9 + $0x10] sm:$0xff]   ;;  %v5476_v59 = vld [vmem:[#allocation9 + $0x8] sm:$0xff]   ;;  %v5477_v44 = vld [vmem:[#allocation9] sm:$0xff]  }
 0x2da   :  { %v1909_v48 = vrot.slane %v1888_v20, 4  ;;  %v1927_v42 = vrot.slane %v1896_v58, 4  ;;  %v1890_v40 = vunpack.c.l.b16 %v1825_v46  ;;  %v1905_v2 = vsel %vm1904_vm11, %v1903_v55, %v1902_v30  ;;  %v5474_v20 = vld [vmem:[#allocation9 + $0x18] sm:$0xff]   ;;  %v7036_v53 = vld [vmem:[%s8206_s7] sm:$0x7] }
 0x2db   :  { %v1906_v41 = vrot.slane %v1887_v63, 5  ;;  %v1826_v37 = vpack.c.bf16 %v1810_v14, %v1810_v14  ;;  %vm1910_vm14 = vcmask 1044484   ;;  %v1898_v60 = vunpack.c.l.b16 %v1833_v33  ;;  %v8323_v8 = vld [vmem:[#allocation17_spill] sm:$0xff]  ;;  %v8324_v63 = vld [vmem:[#allocation20_spill] sm:$0xff] }
 0x2dc   :  { %v1928_v16 = vsel %vm1910_vm14, %v1927_v42, %v1926_v19  ;;  %v1912_v54 = vrot.slane %v1889_v0, 3  ;;  %v1929_v10 = vrot.slane %v1897_v56, 3  ;;  %vm1754_vm0 = vcmp.gt.f32.partialorder %v6986_v27, 0.0  ;;  %v8325_v19 = vld [vmem:[#allocation19_spill] sm:$0xff] }
 0x2dd   :  { %v1908_v22 = vsel %vm1907_vm13, %v1906_v41, %v1905_v2  ;;  %vm1913_vm1 = vcmask 1045509   ;;  %v1915_v38 = vrot.slane %v1890_v40, 2  ;;  %v1891_v17 = vunpack.c.l.b16 %v1826_v37 }
 0x2de   :  { %v1911_v26 = vsel %vm1910_vm14, %v1909_v48, %v1908_v22  ;;  %vm1916_vm3 = vcmask 1046534   ;;  %v1930_v51 = vsel %vm1913_vm1, %v1929_v10, %v1928_v16  ;;  %v1931_v25 = vrot.slane %v1898_v60, 2 }
 0x2df   :  { %v1914_v61 = vsel %vm1913_vm1, %v1912_v54, %v1911_v26  ;;  %vm1919_vm4 = vcmask 1047559   ;;  %v1918_v43 = vrot.slane %v1891_v17, 1  ;;  %v1860_v58 = vrot.slane %v7036_v53, %v8323_v8 }
 0x2e0   :  { %v5625_v15 = vpop.eup %5624  ;;  %v1917_v36 = vsel %vm1916_vm3, %v1915_v38, %v1914_v61  ;;  %v1932_v62 = vsel %vm1916_vm3, %v1931_v25, %v1930_v51  ;;  %v1856_v48 = vrot.slane %v7036_v53, %v8325_v19 }
 0x2e1   :  { %v5113_v23 = vadd.f32 -1.0, %v5625_v15  ;;  %v1920_v4 = vsel %vm1919_vm4, %v1918_v43, %v1917_v36 }
 0x2e3   :  { %v1818_v35 = vsel %vm1754_vm0, %v6986_v27, %v5113_v23 }
 0x2e4   :  { %v1834_v32 = vpack.c.bf16 %v1818_v35, %v1818_v35 }
 0x2e6   :  { %v1899_v47 = vunpack.c.l.b16 %v1834_v32 }
 0x2e8   :  { %v1933_v27 = vrot.slane %v1899_v47, 1 }
 0x2ea   :  { %v1934_v39 = vsel %vm1919_vm4, %v1933_v27, %v1932_v62 }
 0x2eb   :  { %v1935_v49 = vpack.c.b16 %v1934_v39, %v1920_v4 }
 0x2ed   :  { %5126 = vmatmul.mubr.msk.bf16.vlgmr.msra.gmra.mxu1 %vm626_vm6, %v1935_v49 }
 0x2ee   :  { %5321 = vmatpush3.bf16.msra.mxu1 %v5470_v24  ;;  %5328 = vmatprep.mubr.msk.bf16.mxu1 %vm8276_vm2, %v8305_v3 }
 0x2ef   :  { %5322 = vmatprep.subr.bf16.mxu1 %v8305_v3 }
 0x2f2   :  { %5323 = vmatpush3.bf16.msra.mxu1 %v5471_v28 }
 0x2f3   :  { %5324 = vmatprep.subr.bf16.mxu1 %v8305_v3 }
 0x2f6   :  { %5325 = vmatpush3.bf16.msra.mxu1 %v5472_v21 }
 0x2f7   :  { %5326 = vmatprep.subr.bf16.mxu1 %v8305_v3 }
 0x2fa   :  { %5327 = vmatpush3.bf16.msra.mxu1 %v5473_v18 }
 0x2fb   :  { %5332 = vmatprep.subr.bf16.mxu1 %v5474_v20 }
 0x2fd   :  { %5329 = vmatmul.mubr.msk.bf16.vlgmr.msra.gmra.mxu1 %vm626_vm6, %v1935_v49 }
 0x2fe   :  { %5333 = vmatpush3.bf16.msra.mxu1 %v5474_v20 }
 0x2ff   :  { %5334 = vmatprep.subr.bf16.mxu1 %v5475_v50 }
 0x302   :  { %5335 = vmatpush3.bf16.msra.mxu1 %v5475_v50 }
 0x303   :  { %5336 = vmatprep.subr.bf16.mxu1 %v5476_v59 }
 0x306   :  { %5337 = vmatpush3.bf16.msra.mxu1 %v5476_v59 }
 0x307   :  { %5338 = vmatprep.subr.bf16.mxu1 %v5477_v44 }
 0x30a   :  { %5339 = vmatpush3.bf16.msra.mxu1 %v5477_v44 }
 0x30b   :  { %5420 = vmatprep.subr.bf16.mxu1 %v8305_v3 }
 0x3ad   :  { %v2037_v46 = vpop.f32.mrf.mxu1 }
 0x3ae   :  { %v7049_v23 = vadd.f32 %v2037_v46, %v1856_v48 }
 0x3af   :  { %v2039_v55 = vpop.f32.mrf.mxu1 }
 0x3b0   :  { %v2040_v5 = vadd.f32 %v2039_v55, %v1860_v58 }
 0x3b1   :  { %v2041_v14 = vpop.f32.mrf.mxu1 }
 0x3b2   :  { %v2096_v12 = vrot.slane %v2040_v5, %v8324_v63  ;;  %v2089_v42 = vcombine.high %v2040_v5, %v2040_v5  ;;  %v7052_v16 = vadd.f32 %v2041_v14, %v1856_v48 }
 0x3b3   :  { %v2043_v56 = vpop.f32.mrf.mxu1 }
 0x3b4   :  { %v2104_v33 = vcombine.high %v2096_v12, %v2096_v12  ;;  %v2112_v30 = vrot.slane %v2096_v12, %v8324_v63  ;;  %v2103_v60 = vrot.slane %v2089_v42, %v8324_v63  ;;  %v7065_v4 = vadd.f32 %v2043_v56, %v1860_v58 }
 0x3b6   :  { %v2126_v0 = vrot.slane %v2104_v33, %v8324_v63  ;;  %v2190_v2 = vrot.slane %v2112_v30, %v8325_v19  ;;  %v2134_v15 = vcombine.high %v2112_v30, %v2112_v30  ;;  %v2119_v17 = vrot.slane %v2103_v60, %v8324_v63 }
 0x3b7   :  { %v2105_v51 = vcombine.high %v2103_v60, %v2103_v60  ;;  %v2145_v5 = vrot.slane %v7065_v4, %v8324_v63 }
 0x3b8   :  { %v2194_v41 = vrot.slane %v2126_v0, %v8325_v19  ;;  %v2136_v10 = vcombine.high %v2126_v0, %v2126_v0  ;;  %v2267_v22 = vadd.f32 %v2190_v2, %v7049_v23  ;;  %v2198_v35 = vrot.slane %v2134_v15, %v8325_v19 }
 0x3b9   :  { %v2268_v25 = vadd.f32 %v2190_v2, %v7052_v16  ;;  %v2206_v27 = vrot.slane %v2119_v17, %v8325_v19  ;;  %v2133_v39 = vrot.slane %v2105_v51, %v8324_v63  ;;  %v2135_v24 = vcombine.high %v2119_v17, %v2119_v17 }
 0x3ba   :  { %v2269_v26 = vadd.f32 %v2194_v41, %v7049_v23  ;;  %v2270_v38 = vadd.f32 %v2194_v41, %v7052_v16  ;;  %v2202_v47 = vrot.slane %v2136_v10, %v8325_v19  ;;  %v2331_v61 = vmul.f32 0.2, %v2267_v22 }
 0x3bb   :  { %v2271_v36 = vadd.f32 %v2198_v35, %v7049_v23  ;;  %vm2299_vm5 = vcmp.gt.f32.partialorder %v2267_v22, 0.0  ;;  %v2272_v49 = vadd.f32 %v2198_v35, %v7052_v16  ;;  %vm2300_vm9 = vcmp.gt.f32.partialorder %v2268_v25, 0.0 }
 0x3bc   :  { %v2333_v62 = vmul.f32 0.2, %v2269_v26  ;;  %v2334_v43 = vmul.f32 0.2, %v2270_v38  ;;  %vm2301_vm7 = vcmp.gt.f32.partialorder %v2269_v26, 0.0  ;;  %vm2302_vm8 = vcmp.gt.f32.partialorder %v2270_v38, 0.0 }
 0x3bd   :  { %v7045_v40 = vpop.f32.mrf.mxu1  ;;  %v2273_v28 = vadd.f32 %v2202_v47, %v7049_v23  ;;  %v2274_v21 = vadd.f32 %v2202_v47, %v7052_v16  ;;  %v2332_v18 = vmul.f32 0.2, %v2268_v25  ;;  %v2363_v20 = vsel %vm2299_vm5, %v2267_v22, %v2331_v61 }
 0x3be   :  { %v2365_v50 = vsel %vm2301_vm7, %v2269_v26, %v2333_v62  ;;  %v2366_v59 = vsel %vm2302_vm8, %v2270_v38, %v2334_v43  ;;  %vm2303_vm10 = vcmp.gt.f32.partialorder %v2271_v36, 0.0  ;;  %v2335_v44 = vmul.f32 0.2, %v2271_v36 }
 0x3bf   :  { %v5330_v37 = vpop.f32.mrf.mxu1  ;;  %v2275_v46 = vadd.f32 %v2206_v27, %v7049_v23  ;;  %v2276_v58 = vadd.f32 %v2206_v27, %v7052_v16  ;;  %v2364_v55 = vsel %vm2300_vm9, %v2268_v25, %v2332_v18  ;;  %vm2304_vm12 = vcmp.gt.f32.partialorder %v2272_v49, 0.0 }
 0x3c0   :  { %v2395_v12 = vpack.c.bf16 %v2364_v55, %v2363_v20  ;;  %v2210_v33 = vrot.slane %v2133_v39, %v8325_v19  ;;  %v2396_v14 = vpack.c.bf16 %v2366_v59, %v2365_v50  ;;  %v2336_v30 = vmul.f32 0.2, %v2272_v49 }
 0x3c1   :  { %v7054_v54 = vpop.f32.mrf.mxu1  ;;  %v2367_v0 = vsel %vm2303_vm10, %v2271_v36, %v2335_v44  ;;  %v2214_v56 = vrot.slane %v2135_v24, %v8325_v19  ;;  %vm2305_vm0 = vcmp.gt.f32.partialorder %v2273_v28, 0.0  ;;  %v2337_v48 = vmul.f32 0.2, %v2273_v28 }
 0x3c2   :  { %5340 = vmatprep.mubr.msk.bf16.mxu1 %vm626_vm6, %v2395_v12  ;;  %v2338_v42 = vmul.f32 0.2, %v2274_v21  ;;  %v2368_v2 = vsel %vm2304_vm12, %v2272_v49, %v2336_v30  ;;  %vm2306_vm5 = vcmp.gt.f32.partialorder %v2274_v21, 0.0  ;;  %v2339_v15 = vmul.f32 0.2, %v2275_v46 }
 0x3c3   :  { %v5331_v32 = vpop.f32.mrf.mxu1  ;;  %5341 = vmatmul.mubr.msk.bf16.vlgmr.msra.gmra.mxu1 %vm626_vm6, %v2396_v14  ;;  %v2340_v41 = vmul.f32 0.2, %v2276_v58  ;;  %v2397_v37 = vpack.c.bf16 %v2368_v2, %v2367_v0  ;;  %vm2307_vm7 = vcmp.gt.f32.partialorder %v2275_v46, 0.0  ;;  %vm2308_vm8 = vcmp.gt.f32.partialorder %v2276_v58, 0.0 }
 0x3c4   :  { %v2137_v60 = vcombine.high %v2133_v39, %v2133_v39  ;;  %v2277_v10 = vadd.f32 %v2210_v33, %v7049_v23  ;;  %v2278_v22 = vadd.f32 %v2210_v33, %v7052_v16  ;;  %v2161_v35 = vrot.slane %v2145_v5, %v8324_v63 }
 0x3c5   :  { %5344 = vmatprep.mubr.msk.bf16.mxu1 %vm626_vm6, %v2397_v37  ;;  %v2369_v26 = vsel %vm2305_vm0, %v2273_v28, %v2337_v48  ;;  %v2370_v38 = vsel %vm2306_vm5, %v2274_v21, %v2338_v42  ;;  %v2279_v32 = vadd.f32 %v2214_v56, %v7049_v23  ;;  %v2280_v17 = vadd.f32 %v2214_v56, %v7052_v16 }
 0x3c6   :  { %v2371_v51 = vsel %vm2307_vm7, %v2275_v46, %v2339_v15  ;;  %v2372_v25 = vsel %vm2308_vm8, %v2276_v58, %v2340_v41  ;;  %v2218_v47 = vrot.slane %v2137_v60, %v8325_v19  ;;  %v2153_v61 = vcombine.high %v2145_v5, %v2145_v5 }
 0x3c7   :  { %v2398_v36 = vpack.c.bf16 %v2370_v38, %v2369_v26  ;;  %v2222_v62 = vrot.slane %v2161_v35, %v8325_v19  ;;  %v2399_v43 = vpack.c.bf16 %v2372_v25, %v2371_v51  ;;  %v2341_v27 = vmul.f32 0.2, %v2277_v10 }
 0x3c8   :  { %v2342_v39 = vmul.f32 0.2, %v2278_v22  ;;  %vm2309_vm9 = vcmp.gt.f32.partialorder %v2277_v10, 0.0  ;;  %vm2310_vm10 = vcmp.gt.f32.partialorder %v2278_v22, 0.0  ;;  %v2343_v24 = vmul.f32 0.2, %v2279_v32 }
 0x3c9   :  { %v2344_v49 = vmul.f32 0.2, %v2280_v17  ;;  %vm2311_vm12 = vcmp.gt.f32.partialorder %v2279_v32, 0.0  ;;  %vm2312_vm0 = vcmp.gt.f32.partialorder %v2280_v17, 0.0  ;;  %v2138_v28 = vcombine.high %v7065_v4, %v7065_v4 }
 0x3ca   :  { %v2175_v21 = vrot.slane %v2153_v61, %v8324_v63  ;;  %v2183_v18 = vcombine.high %v2161_v35, %v2161_v35  ;;  %v2373_v20 = vsel %vm2309_vm9, %v2277_v10, %v2341_v27  ;;  %v2374_v50 = vsel %vm2310_vm10, %v2278_v22, %v2342_v39 }
 0x3cb   :  { %5345 = vmatmul.mubr.msk.bf16.gmra.mxu1 %vm626_vm6, %v2398_v36  ;;  %v2281_v59 = vadd.f32 %v2218_v47, %v7049_v23  ;;  %v2282_v44 = vadd.f32 %v2218_v47, %v7052_v16  ;;  %v2283_v46 = vadd.f32 %v2222_v62, %v7049_v23  ;;  %v2284_v58 = vadd.f32 %v2222_v62, %v7052_v16 }
 0x3cc   :  { %5348 = vmatprep.mubr.msk.bf16.mxu1 %vm626_vm6, %v2399_v43  ;;  %v2375_v55 = vsel %vm2311_vm12, %v2279_v32, %v2343_v24  ;;  %v2376_v5 = vsel %vm2312_vm0, %v2280_v17, %v2344_v49  ;;  %v2152_v12 = vrot.slane %v2138_v28, %v8324_v63  ;;  %v2226_v33 = vrot.slane %v2175_v21, %v8325_v19 }
 0x3cd   :  { %v2400_v4 = vpack.c.bf16 %v2374_v50, %v2373_v20  ;;  %v2230_v14 = vrot.slane %v2183_v18, %v8325_v19  ;;  %v2401_v30 = vpack.c.bf16 %v2376_v5, %v2375_v55  ;;  %v2345_v0 = vmul.f32 0.2, %v2281_v59 }
 0x3ce   :  { %v2346_v56 = vmul.f32 0.2, %v2282_v44  ;;  %vm2313_vm5 = vcmp.gt.f32.partialorder %v2281_v59, 0.0  ;;  %vm2314_vm7 = vcmp.gt.f32.partialorder %v2282_v44, 0.0  ;;  %v2347_v48 = vmul.f32 0.2, %v2283_v46 }
 0x3cf   :  { %v2348_v42 = vmul.f32 0.2, %v2284_v58  ;;  %vm2315_vm8 = vcmp.gt.f32.partialorder %v2283_v46, 0.0  ;;  %vm2316_vm9 = vcmp.gt.f32.partialorder %v2284_v58, 0.0  ;;  %v2168_v2 = vrot.slane %v2152_v12, %v8324_v63 }
 0x3d0   :  { %v2185_v15 = vcombine.high %v2175_v21, %v2175_v21  ;;  %v2285_v41 = vadd.f32 %v2226_v33, %v7049_v23  ;;  %v2286_v37 = vadd.f32 %v2226_v33, %v7052_v16  ;;  %v2377_v60 = vsel %vm2313_vm5, %v2281_v59, %v2345_v0 }
 0x3d1   :  { %v2378_v10 = vsel %vm2314_vm7, %v2282_v44, %v2346_v56  ;;  %v2287_v22 = vadd.f32 %v2230_v14, %v7049_v23  ;;  %v2288_v35 = vadd.f32 %v2230_v14, %v7052_v16  ;;  %v2379_v26 = vsel %vm2315_vm8, %v2283_v46, %v2347_v48 }
 0x3d2   :  { %v2380_v38 = vsel %vm2316_vm9, %v2284_v58, %v2348_v42  ;;  %v2154_v32 = vcombine.high %v2152_v12, %v2152_v12  ;;  %v2238_v17 = vrot.slane %v2168_v2, %v8325_v19  ;;  %v2402_v51 = vpack.c.bf16 %v2378_v10, %v2377_v60 }
 0x3d3   :  { %5349 = vmatmul.mubr.msk.bf16.gmra.mxu1 %vm626_vm6, %v2400_v4  ;;  %v2234_v25 = vrot.slane %v2185_v15, %v8325_v19  ;;  %v2403_v47 = vpack.c.bf16 %v2380_v38, %v2379_v26  ;;  %v2349_v61 = vmul.f32 0.2, %v2285_v41  ;;  %v2350_v36 = vmul.f32 0.2, %v2286_v37 }
 0x3d4   :  { %5352 = vmatprep.mubr.msk.bf16.mxu1 %vm626_vm6, %v2401_v30  ;;  %vm2317_vm10 = vcmp.gt.f32.partialorder %v2285_v41, 0.0  ;;  %vm2318_vm12 = vcmp.gt.f32.partialorder %v2286_v37, 0.0  ;;  %v2351_v62 = vmul.f32 0.2, %v2287_v22  ;;  %v2352_v43 = vmul.f32 0.2, %v2288_v35 }
 0x3d5   :  { %vm2319_vm0 = vcmp.gt.f32.partialorder %v2287_v22, 0.0  ;;  %vm2320_vm5 = vcmp.gt.f32.partialorder %v2288_v35, 0.0  ;;  %v2182_v27 = vrot.slane %v2154_v32, %v8324_v63  ;;  %v2184_v39 = vcombine.high %v2168_v2, %v2168_v2 }
 0x3d6   :  { %v2289_v24 = vadd.f32 %v2234_v25, %v7049_v23  ;;  %v2290_v49 = vadd.f32 %v2234_v25, %v7052_v16  ;;  %v2381_v28 = vsel %vm2317_vm10, %v2285_v41, %v2349_v61  ;;  %v2382_v21 = vsel %vm2318_vm12, %v2286_v37, %v2350_v36 }
 0x3d7   :  { %v2291_v18 = vadd.f32 %v2238_v17, %v7049_v23  ;;  %v2292_v20 = vadd.f32 %v2238_v17, %v7052_v16  ;;  %v2383_v50 = vsel %vm2319_vm0, %v2287_v22, %v2351_v62  ;;  %v2384_v59 = vsel %vm2320_vm5, %v2288_v35, %v2352_v43 }
 0x3d8   :  { %v2242_v44 = vrot.slane %v2182_v27, %v8325_v19  ;;  %v2404_v46 = vpack.c.bf16 %v2382_v21, %v2381_v28  ;;  %v2246_v58 = vrot.slane %v2184_v39, %v8325_v19  ;;  %v2405_v55 = vpack.c.bf16 %v2384_v59, %v2383_v50 }
 0x3d9   :  { %v2353_v5 = vmul.f32 0.2, %v2289_v24  ;;  %v2354_v12 = vmul.f32 0.2, %v2290_v49  ;;  %vm2321_vm7 = vcmp.gt.f32.partialorder %v2289_v24, 0.0  ;;  %vm2322_vm8 = vcmp.gt.f32.partialorder %v2290_v49, 0.0 }
 0x3da   :  { %v2355_v33 = vmul.f32 0.2, %v2291_v18  ;;  %v2356_v4 = vmul.f32 0.2, %v2292_v20  ;;  %vm2323_vm9 = vcmp.gt.f32.partialorder %v2291_v18, 0.0  ;;  %vm2324_vm10 = vcmp.gt.f32.partialorder %v2292_v20, 0.0 }
 0x3db   :  { %5353 = vmatmul.mubr.msk.bf16.gmra.mxu1 %vm626_vm6, %v2402_v51  ;;  %v2186_v14 = vcombine.high %v2182_v27, %v2182_v27  ;;  %v2293_v30 = vadd.f32 %v2242_v44, %v7049_v23  ;;  %v2294_v0 = vadd.f32 %v2242_v44, %v7052_v16  ;;  %v2385_v56 = vsel %vm2321_vm7, %v2289_v24, %v2353_v5 }
 0x3dc   :  { %5356 = vmatprep.mubr.msk.bf16.mxu1 %vm626_vm6, %v2403_v47  ;;  %v2386_v48 = vsel %vm2322_vm8, %v2290_v49, %v2354_v12  ;;  %v2295_v42 = vadd.f32 %v2246_v58, %v7049_v23  ;;  %v2296_v2 = vadd.f32 %v2246_v58, %v7052_v16  ;;  %v2387_v15 = vsel %vm2323_vm9, %v2291_v18, %v2355_v33 }
 0x3dd   :  { %v2388_v41 = vsel %vm2324_vm10, %v2292_v20, %v2356_v4  ;;  %v2406_v37 = vpack.c.bf16 %v2386_v48, %v2385_v56  ;;  %v2250_v60 = vrot.slane %v2186_v14, %v8325_v19  ;;  %v2357_v22 = vmul.f32 0.2, %v2293_v30 }
 0x3de   :  { %v2407_v10 = vpack.c.bf16 %v2388_v41, %v2387_v15  ;;  %v2358_v35 = vmul.f32 0.2, %v2294_v0  ;;  %vm2325_vm12 = vcmp.gt.f32.partialorder %v2293_v30, 0.0  ;;  %vm2326_vm0 = vcmp.gt.f32.partialorder %v2294_v0, 0.0 }
 0x3df   :  { %v2359_v26 = vmul.f32 0.2, %v2295_v42  ;;  %v2360_v38 = vmul.f32 0.2, %v2296_v2  ;;  %vm2327_vm5 = vcmp.gt.f32.partialorder %v2295_v42, 0.0  ;;  %vm2328_vm7 = vcmp.gt.f32.partialorder %v2296_v2, 0.0 }
 0x3e0   :  { %v2389_v32 = vsel %vm2325_vm12, %v2293_v30, %v2357_v22  ;;  %v2390_v17 = vsel %vm2326_vm0, %v2294_v0, %v2358_v35  ;;  %v2297_v51 = vadd.f32 %v2250_v60, %v7049_v23  ;;  %v2298_v25 = vadd.f32 %v2250_v60, %v7052_v16 }
 0x3e1   :  { %v2391_v47 = vsel %vm2327_vm5, %v2295_v42, %v2359_v26  ;;  %v2392_v61 = vsel %vm2328_vm7, %v2296_v2, %v2360_v38  ;;  %v2408_v36 = vpack.c.bf16 %v2390_v17, %v2389_v32 }
 0x3e2   :  { %v2409_v62 = vpack.c.bf16 %v2392_v61, %v2391_v47  ;;  %v2361_v43 = vmul.f32 0.2, %v2297_v51  ;;  %v2362_v27 = vmul.f32 0.2, %v2298_v25  ;;  %vm2329_vm8 = vcmp.gt.f32.partialorder %v2297_v51, 0.0 }
 0x3e3   :  { %5357 = vmatmul.mubr.msk.bf16.gmra.mxu1 %vm626_vm6, %v2404_v46  ;;  %vm2330_vm9 = vcmp.gt.f32.partialorder %v2298_v25, 0.0 }
 0x3e4   :  { %5360 = vmatprep.mubr.msk.bf16.mxu1 %vm626_vm6, %v2405_v55  ;;  %v2393_v39 = vsel %vm2329_vm8, %v2297_v51, %v2361_v43  ;;  %v2394_v24 = vsel %vm2330_vm9, %v2298_v25, %v2362_v27 }
 0x3e5   :  { %v2410_v49 = vpack.c.bf16 %v2394_v24, %v2393_v39 }
 0x3eb   :  { %5361 = vmatmul.mubr.msk.bf16.gmra.mxu1 %vm626_vm6, %v2406_v37 }
 0x3ec   :  { %5364 = vmatprep.mubr.msk.bf16.mxu1 %vm626_vm6, %v2407_v10 }
 0x3f3   :  { %5365 = vmatmul.mubr.msk.bf16.gmra.mxu1 %vm626_vm6, %v2408_v36 }
 0x3f4   :  { %5368 = vmatprep.mubr.msk.bf16.mxu1 %vm626_vm6, %v2409_v62 }
 0x3fb   :  { %5369 = vmatmul.mubr.msk.bf16.gmra.mxu1 %vm626_vm6, %v2410_v49 }
 0x3fc   :  { %5424 = vmatprep.mubr.msk.bf16.mxu1 %vm8276_vm2, %v8305_v3 }
 0x483   :  { %v5342_v28 = vpop.f32.mrf.mxu1 }
 0x484   :  { %v2661_v20 = vsel %vm626_vm6, %v5342_v28, -inf }
 0x485   :  { %v2525_v21 = vpop.f32.mrf.mxu1 }
 0x486   :  { %v2652_v46 = vsel %vm626_vm6, %v2525_v21, -inf }
 0x487   :  { %v5343_v18 = vpop.f32.mrf.mxu1 }
 0x488   :  { %v2662_v50 = vsel %vm626_vm6, %v5343_v18, -inf }
 0x489   :  { %v2663_v59 = vmax.f32 %v2661_v20, %v2662_v50  ;;  %v2528_v44 = vpop.f32.mrf.mxu1 }
 0x48a   :  { %v2653_v58 = vsel %vm626_vm6, %v2528_v44, -inf }
 0x48b   :  { %v2664_v55 = vrot.slane %v2663_v59, 4  ;;  %v2654_v5 = vmax.f32 %v2652_v46, %v2653_v58  ;;  %v7138_v12 = vpop.f32.mrf.mxu1 }
 0x48c   :  { %v2679_v48 = vsel %vm626_vm6, %v7138_v12, -inf }
 0x48d   :  { %v2665_v33 = vmax.f32 %v2663_v59, %v2664_v55  ;;  %v2655_v4 = vrot.slane %v2654_v5, 4  ;;  %v7140_v14 = vpop.f32.mrf.mxu1 }
 0x48e   :  { %v2670_v60 = vsel %vm626_vm6, %v7140_v14, -inf }
 0x48f   :  { %v2666_v30 = vrot.slane %v2665_v33, 2  ;;  %v2656_v0 = vmax.f32 %v2654_v5, %v2655_v4  ;;  %v5347_v56 = vpop.f32.mrf.mxu1 }
 0x490   :  { %v2680_v42 = vsel %vm626_vm6, %v5347_v56, -inf }
 0x491   :  { %v2667_v2 = vmax.f32 %v2665_v33, %v2666_v30  ;;  %v2657_v15 = vrot.slane %v2656_v0, 2  ;;  %v2681_v41 = vmax.f32 %v2679_v48, %v2680_v42  ;;  %v2544_v37 = vpop.f32.mrf.mxu1 }
 0x492   :  { %v2671_v10 = vsel %vm626_vm6, %v2544_v37, -inf }
 0x493   :  { %v2668_v22 = vrot.slane %v2667_v2, 1  ;;  %v2658_v35 = vmax.f32 %v2656_v0, %v2657_v15  ;;  %v2682_v26 = vrot.slane %v2681_v41, 4  ;;  %v2672_v38 = vmax.f32 %v2670_v60, %v2671_v10  ;;  %v7148_v32 = vpop.f32.mrf.mxu1 }
 0x494   :  { %v2697_v49 = vsel %vm626_vm6, %v7148_v32, -inf }
 0x495   :  { %v2669_v17 = vmax.f32 %v2667_v2, %v2668_v22  ;;  %v2659_v51 = vrot.slane %v2658_v35, 1  ;;  %v2683_v25 = vmax.f32 %v2681_v41, %v2682_v26  ;;  %v2673_v47 = vrot.slane %v2672_v38, 4  ;;  %v7150_v61 = vpop.f32.mrf.mxu1 }
 0x496   :  { %v2688_v20 = vsel %vm626_vm6, %v7150_v61, -inf }
 0x497   :  { %v2798_v36 = vsub.f32 %v5342_v28, %v2669_v17  ;;  %v2799_v62 = vsub.f32 %v5343_v18, %v2669_v17  ;;  %v2660_v43 = vmax.f32 %v2658_v35, %v2659_v51  ;;  %v2684_v27 = vrot.slane %v2683_v25, 2  ;;  %v7152_v39 = vpop.f32.mrf.mxu1 }
 0x498   :  { %v2674_v24 = vmax.f32 %v2672_v38, %v2673_v47  ;;  %v2698_v50 = vsel %vm626_vm6, %v7152_v39, -inf }
 0x499   :  { %v2832_v59 = vmul.f32 1.442695, %v2798_v36  ;;  %v2834_v46 = vmul.f32 1.442695, %v2799_v62  ;;  %v2796_v58 = vsub.f32 %v2525_v21, %v2660_v43  ;;  %v2797_v55 = vsub.f32 %v2528_v44, %v2660_v43  ;;  %v7160_v28 = vpop.f32.mrf.mxu1 }
 0x49a   :  { %v2685_v18 = vmax.f32 %v2683_v25, %v2684_v27  ;;  %v2675_v5 = vrot.slane %v2674_v24, 2  ;;  %v2699_v33 = vmax.f32 %v2697_v49, %v2698_v50  ;;  %v2689_v4 = vsel %vm626_vm6, %v7160_v28, -inf }
 0x49b   :  { %5626 = vpow2.f32 %v2832_v59  ;;  %v2828_v30 = vmul.f32 1.442695, %v2796_v58  ;;  %v2830_v0 = vmul.f32 1.442695, %v2797_v55  ;;  %v2690_v48 = vmax.f32 %v2688_v20, %v2689_v4  ;;  %v7164_v42 = vpop.f32.mrf.mxu1 }
 0x49c   :  { %5628 = vpow2.f32 %v2834_v46  ;;  %v2686_v2 = vrot.slane %v2685_v18, 1  ;;  %v2676_v15 = vmax.f32 %v2674_v24, %v2675_v5  ;;  %v2700_v41 = vrot.slane %v2699_v33, 4  ;;  %v8326_v5 = vld [vmem:[#allocation22_spill] sm:$0xff] }
 0x49d   :  { %5630 = vpow2.f32 %v2828_v30  ;;  %v2691_v21 = vrot.slane %v2690_v48, 4  ;;  %v7166_v44 = vpop.f32.mrf.mxu1  ;;  %v2715_v55 = vsel %vm626_vm6, %v7164_v42, -inf }
 0x49e   :  { %5632 = vpow2.f32 %v2830_v0  ;;  %v2687_v60 = vmax.f32 %v2685_v18, %v2686_v2  ;;  %v2677_v10 = vrot.slane %v2676_v15, 1  ;;  %v2701_v22 = vmax.f32 %v2699_v33, %v2700_v41  ;;  %v8327_v2 = vld [vmem:[#allocation24_spill] sm:$0xff] }
 0x49f   :  { %v2692_v35 = vmax.f32 %v2690_v48, %v2691_v21  ;;  %v7169_v25 = vpop.f32.mrf.mxu1  ;;  %v2706_v0 = vsel %vm626_vm6, %v7166_v44, -inf }
 0x4a0   :  { %v2802_v26 = vsub.f32 %v7138_v12, %v2687_v60  ;;  %v2803_v38 = vsub.f32 %v5347_v56, %v2687_v60  ;;  %v2678_v17 = vmax.f32 %v2676_v15, %v2677_v10  ;;  %v2702_v51 = vrot.slane %v2701_v22, 2 }
 0x4a1   :  { %v2693_v47 = vrot.slane %v2692_v35, 2  ;;  %v7172_v59 = vpop.f32.mrf.mxu1  ;;  %v2716_v58 = vsel %vm626_vm6, %v7169_v25, -inf }
 0x4a2   :  { %v2840_v36 = vmul.f32 1.442695, %v2802_v26  ;;  %v2842_v62 = vmul.f32 1.442695, %v2803_v38  ;;  %v2800_v43 = vsub.f32 %v7140_v14, %v2678_v17  ;;  %v2801_v27 = vsub.f32 %v2544_v37, %v2678_v17 }
 0x4a3   :  { %v2703_v24 = vmax.f32 %v2701_v22, %v2702_v51  ;;  %v2694_v49 = vmax.f32 %v2692_v35, %v2693_v47  ;;  %v2707_v14 = vsel %vm626_vm6, %v7172_v59, -inf  ;;  %v7188_v21 = vmax.f32 %v2715_v55, %v2716_v58  ;;  %v8329_v51 = vld [vmem:[#allocation29_spill] sm:$0xff] }
 0x4a4   :  { %5634 = vpow2.f32 %v2840_v36  ;;  %v2836_v20 = vmul.f32 1.442695, %v2800_v43  ;;  %v2838_v50 = vmul.f32 1.442695, %v2801_v27  ;;  %v7190_v60 = vmax.f32 %v2706_v0, %v2707_v14 }
 0x4a5   :  { %5636 = vpow2.f32 %v2842_v62  ;;  %v2704_v12 = vrot.slane %v2703_v24, 1  ;;  %v2695_v56 = vrot.slane %v2694_v49, 1 }
 0x4a6   :  { %5638 = vpow2.f32 %v2836_v20 }
 0x4a7   :  { %5640 = vpow2.f32 %v2838_v50  ;;  %v2705_v46 = vmax.f32 %v2703_v24, %v2704_v12  ;;  %v7186_v41 = vmax.f32 %v2694_v49, %v2695_v56 }
 0x4a8   :  { %v5627_v37 = vpop.eup %5626 }
 0x4a9   :  { %v5629_v18 = vpop.eup %5628  ;;  %v2894_v33 = vmul.f32 %v5627_v37, %v8326_v5  ;;  %v2806_v4 = vsub.f32 %v7148_v32, %v2705_v46  ;;  %v2807_v30 = vsub.f32 %v7152_v39, %v2705_v46  ;;  %v8328_v32 = vld [vmem:[#allocation30_spill] sm:$0xff] }
 0x4aa   :  { %v5631_v48 = vpop.eup %5630  ;;  %v2895_v15 = vmul.f32 %v5629_v18, %v8327_v2 }
 0x4ab   :  { %v5633_v10 = vpop.eup %5632  ;;  %v2933_v22 = vsel %vm626_vm6, %v2894_v33, 0.0  ;;  %v3102_v35 = vmul.f32 %v2894_v33, %v7049_v23  ;;  %v2892_v26 = vmul.f32 %v5631_v48, %v8328_v32  ;;  %v2848_v39 = vmul.f32 1.442695, %v2806_v4 }
 0x4ac   :  { %v2934_v38 = vsel %vm626_vm6, %v2895_v15, 0.0  ;;  %v3103_v17 = vmul.f32 %v2895_v15, %v7052_v16  ;;  %v2893_v47 = vmul.f32 %v5633_v10, %v8329_v51  ;;  %v2850_v36 = vmul.f32 1.442695, %v2807_v30  ;;  %v8330_v30 = vld [vmem:[#allocation31_spill] sm:$0xff] }
 0x4ad   :  { %v2935_v62 = vadd.f32 %v2934_v38, %v2933_v22  ;;  %v3141_v43 = vsel %vm626_vm6, %v3102_v35, 0.0  ;;  %v2924_v27 = vsel %vm626_vm6, %v2892_v26, 0.0  ;;  %v3100_v24 = vmul.f32 %v2892_v26, %v7049_v23 }
 0x4ae   :  { %v3142_v49 = vsel %vm626_vm6, %v3103_v17, 0.0  ;;  %v2925_v20 = vsel %vm626_vm6, %v2893_v47, 0.0  ;;  %v3101_v50 = vmul.f32 %v2893_v47, %v7052_v16  ;;  %5642 = vpow2.f32 %v2848_v39  ;;  %v8331_v17 = vld [vmem:[#allocation32_spill] sm:$0xff] }
 0x4af   :  { %v2936_v12 = vrot.slane %v2935_v62, 4  ;;  %v3143_v56 = vadd.f32 %v3142_v49, %v3141_v43  ;;  %v2926_v46 = vadd.f32 %v2925_v20, %v2924_v27  ;;  %v3132_v58 = vsel %vm626_vm6, %v3100_v24, 0.0 }
 0x4b0   :  { %v3133_v14 = vsel %vm626_vm6, %v3101_v50, 0.0  ;;  %5644 = vpow2.f32 %v2850_v36  ;;  %v2718_v48 = vrot.slane %v7188_v21, 4  ;;  %v2804_v35 = vsub.f32 %v7150_v61, %v7186_v41  ;;  %v8332_v36 = vld [vmem:[#allocation26_spill] sm:$0xff]  ;;  %v8333_v61 = vld [vmem:[#allocation25_spill] sm:$0xff] }
 0x4b1   :  { %v5635_v37 = vpop.eup %5634  ;;  %v2937_v55 = vadd.f32 %v2936_v12, %v2935_v62  ;;  %v2927_v18 = vrot.slane %v2926_v46, 4  ;;  %v3134_v33 = vadd.f32 %v3133_v14, %v3132_v58  ;;  %v2709_v26 = vrot.slane %v7190_v60, 4 }
 0x4b2   :  { %v5637_v4 = vpop.eup %5636  ;;  %v2898_v0 = vmul.f32 %v5635_v37, %v8330_v30  ;;  %v3144_v38 = vrot.slane %v3143_v56, 4  ;;  %v2805_v58 = vsub.f32 %v7160_v28, %v7186_v41  ;;  %v2719_v28 = vmax.f32 %v7188_v21, %v2718_v48  ;;  %v7226_v21 = vpop.f32.mrf.mxu1  ;;  %v8334_v48 = vld [vmem:[#allocation18_spill] sm:$0xff] }
 0x4b3   :  { %v5639_v15 = vpop.eup %5638  ;;  %v2938_v10 = vrot.slane %v2937_v55, 2  ;;  %v2928_v22 = vadd.f32 %v2927_v18, %v2926_v46  ;;  %v2899_v47 = vmul.f32 %v5637_v4, %v8331_v17  ;;  %v3135_v49 = vrot.slane %v3134_v33, 4 }
 0x4b4   :  { %v5641_v39 = vpop.eup %5640  ;;  %v3106_v62 = vmul.f32 %v2898_v0, %v7049_v23  ;;  %v2896_v43 = vmul.f32 %v5639_v15, %v8332_v36  ;;  %v2951_v20 = vsel %vm626_vm6, %v2898_v0, 0.0  ;;  %v2844_v4 = vmul.f32 1.442695, %v2804_v35 }
 0x4b5   :  { %v2939_v27 = vadd.f32 %v2938_v10, %v2937_v55  ;;  %v2929_v24 = vrot.slane %v2928_v22, 2  ;;  %v2952_v50 = vsel %vm626_vm6, %v2899_v47, 0.0  ;;  %v3107_v12 = vmul.f32 %v2899_v47, %v7052_v16 }
 0x4b6   :  { %v2897_v46 = vmul.f32 %v5641_v39, %v8333_v61  ;;  %v3159_v18 = vsel %vm626_vm6, %v3106_v62, 0.0  ;;  %v2953_v15 = vadd.f32 %v2952_v50, %v2951_v20  ;;  %v2942_v10 = vsel %vm626_vm6, %v2896_v43, 0.0 }
 0x4b7   :  { %v2940_v14 = vrot.slane %v2939_v27, 1  ;;  %v2930_v37 = vadd.f32 %v2929_v24, %v2928_v22  ;;  %v3160_v55 = vsel %vm626_vm6, %v3107_v12, 0.0  ;;  %v3145_v17 = vadd.f32 %v3144_v38, %v3143_v56 }
 0x4b8   :  { %v2943_v0 = vsel %vm626_vm6, %v2897_v46, 0.0  ;;  %v3136_v30 = vadd.f32 %v3135_v49, %v3134_v33  ;;  %v2954_v39 = vrot.slane %v2953_v15, 4  ;;  %v3161_v61 = vadd.f32 %v3160_v55, %v3159_v18 }
 0x4b9   :  { %v2941_v36 = vadd.f32 %v2940_v14, %v2939_v27  ;;  %v2931_v47 = vrot.slane %v2930_v37, 1  ;;  %v2944_v51 = vadd.f32 %v2943_v0, %v2942_v10  ;;  %v2846_v35 = vmul.f32 1.442695, %v2805_v58 }
 0x4ba   :  { %v2710_v62 = vmax.f32 %v7190_v60, %v2709_v26  ;;  %v2955_v20 = vadd.f32 %v2954_v39, %v2953_v15  ;;  %5646 = vpow2.f32 %v2844_v4  ;;  %v3146_v12 = vrot.slane %v3145_v17, 2 }
 0x4bb   :  { %v5643_v41 = vpop.eup %5642  ;;  %vm3069_vm10 = vcmp.eq.f32.partialorder %v2941_v36, 0.0  ;;  %v2932_v22 = vadd.f32 %v2931_v47, %v2930_v37  ;;  %v2945_v50 = vrot.slane %v2944_v51, 4  ;;  %v3137_v56 = vrot.slane %v3136_v30, 2 }
 0x4bc   :  { %v3085_v24 = vsel %vm3069_vm10, 1.0, %v2941_v36  ;;  %v2956_v27 = vrot.slane %v2955_v20, 2  ;;  %v3162_v49 = vrot.slane %v3161_v61, 4  ;;  %v7230_v58 = vrot.slane %v7036_v53, %v8334_v48  ;;  %v7236_v53 = vpop.f32.mrf.mxu1 }
 0x4bd   :  { %5648 = vrcp.f32 %v3085_v24  ;;  %vm3068_vm12 = vcmp.eq.f32.partialorder %v2932_v22, 0.0  ;;  %v5645_v33 = vpop.eup %5644  ;;  %v2946_v14 = vadd.f32 %v2945_v50, %v2944_v51  ;;  %v2902_v60 = vmul.f32 %v5643_v41, %v6707_v57 }
 0x4be   :  { %v3084_v38 = vsel %vm3068_vm12, 1.0, %v2932_v22  ;;  %v2720_v26 = vrot.slane %v2719_v28, 2  ;;  %v2957_v36 = vadd.f32 %v2956_v27, %v2955_v20  ;;  %v3104_v18 = vmul.f32 %v2896_v43, %v7049_v23 }
 0x4bf   :  { %5650 = vrcp.f32 %v3084_v38  ;;  %v2947_v37 = vrot.slane %v2946_v14, 2  ;;  %v3105_v4 = vmul.f32 %v2897_v46, %v7052_v16  ;;  %v3147_v15 = vadd.f32 %v3146_v12, %v3145_v17 }
 0x4c0   :  { %v2903_v55 = vmul.f32 %v5645_v33, %v6705_v52  ;;  %5652 = vpow2.f32 %v2846_v35  ;;  %v2711_v51 = vrot.slane %v2710_v62, 2  ;;  %v3138_v10 = vadd.f32 %v3137_v56, %v3136_v30  ;;  %v7246_v56 = vpop.f32.mrf.mxu1 }
 0x4c1   :  { %v2958_v0 = vrot.slane %v2957_v36, 1  ;;  %v3163_v47 = vadd.f32 %v3162_v49, %v3161_v61  ;;  %v7240_v39 = vadd.f32 %v7045_v40, %v7230_v58  ;;  %v2948_v41 = vadd.f32 %v2947_v37, %v2946_v14 }
 0x4c2   :  { %v2969_v22 = vsel %vm626_vm6, %v2902_v60, 0.0  ;;  %v2970_v43 = vsel %vm626_vm6, %v2903_v55, 0.0  ;;  %v3150_v17 = vsel %vm626_vm6, %v3104_v18, 0.0  ;;  %v3151_v35 = vsel %vm626_vm6, %v3105_v4, 0.0  ;;  %v7257_v4 = vld [vmem:[%s8208_s9] ss:$0 sm:$0xff] }
 0x4c3   :  { %v2959_v46 = vadd.f32 %v2958_v0, %v2957_v36  ;;  %v2721_v24 = vmax.f32 %v2719_v28, %v2720_v26  ;;  %v3148_v30 = vrot.slane %v3147_v15, 1  ;;  %v2712_v20 = vmax.f32 %v2710_v62, %v2711_v51 }
 0x4c4   :  { %v3139_v61 = vrot.slane %v3138_v10, 1  ;;  %v3164_v50 = vrot.slane %v3163_v47, 2  ;;  %v2971_v12 = vadd.f32 %v2970_v43, %v2969_v22  ;;  %v2949_v33 = vrot.slane %v2948_v41, 1 }
 0x4c5   :  { %vm3071_vm0 = vcmp.eq.f32.partialorder %v2959_v46, 0.0  ;;  %v3152_v38 = vadd.f32 %v3151_v35, %v3150_v17  ;;  %v3333_v27 = vrot.slane %v7240_v39, 1  ;;  %v3110_v49 = vmul.f32 %v2902_v60, %v7049_v23 }
 0x4c6   :  { %v3087_v40 = vsel %vm3071_vm0, 1.0, %v2959_v46  ;;  %v2722_v14 = vrot.slane %v2721_v24, 1  ;;  %v3149_v37 = vadd.f32 %v3148_v30, %v3147_v15  ;;  %v2713_v28 = vrot.slane %v2712_v20, 1 }
 0x4c7   :  { %5654 = vrcp.f32 %v3087_v40  ;;  %v5647_v36 = vpop.eup %5646  ;;  %v2733_v62 = vsel %vm626_vm6, %v7226_v21, -inf  ;;  %v2734_v26 = vsel %vm626_vm6, %v7246_v56, -inf  ;;  %v3140_v51 = vadd.f32 %v3139_v61, %v3138_v10 }
 0x4c8   :  { %v3165_v0 = vadd.f32 %v3164_v50, %v3163_v47  ;;  %v2972_v22 = vrot.slane %v2971_v12, 4  ;;  %v2723_v60 = vmax.f32 %v2721_v24, %v2722_v14  ;;  %v2950_v46 = vadd.f32 %v2949_v33, %v2948_v41  ;;  %v7265_v33 = vpop.f32.mrf.mxu1  ;;  %v8335_v14 = vld [vmem:[#allocation37_spill] sm:$0xff] }
 0x4c9   :  { %v3153_v15 = vrot.slane %v3152_v38, 4  ;;  %v2714_v17 = vmax.f32 %v2712_v20, %v2713_v28  ;;  %v3111_v30 = vmul.f32 %v2903_v55, %v7052_v16  ;;  %v3177_v40 = vsel %vm626_vm6, %v3110_v49, 0.0 }
 0x4ca   :  { %v5649_v18 = vpop.eup %5648  ;;  %v2810_v48 = vsub.f32 %v7164_v42, %v2723_v60  ;;  %v2811_v52 = vsub.f32 %v7169_v25, %v2723_v60  ;;  %v2900_v10 = vmul.f32 %v5647_v36, %v6658_v29  ;;  %v2735_v47 = vmax.f32 %v2733_v62, %v2734_v26 }
 0x4cb   :  { %v3293_v43 = vmul.f32 %v5649_v18, %v3149_v37  ;;  %v3166_v61 = vrot.slane %v3165_v0, 1  ;;  %v2973_v41 = vadd.f32 %v2972_v22, %v2971_v12  ;;  %vm3070_vm5 = vcmp.eq.f32.partialorder %v2950_v46, 0.0 }
 0x4cc   :  { %v5651_v35 = vpop.eup %5650  ;;  %v2856_v50 = vmul.f32 1.442695, %v2810_v48  ;;  %v2858_v20 = vmul.f32 1.442695, %v2811_v52  ;;  %v2808_v42 = vsub.f32 %v7166_v44, %v2714_v17  ;;  %v3154_v25 = vadd.f32 %v3153_v15, %v3152_v38  ;;  %v7279_v44 = vpop.f32.mrf.mxu1 }
 0x4cd   :  { %v3316_v57 = vadd.f32 %v7257_v4, %v3293_v43  ;;  %v3292_v32 = vmul.f32 %v5651_v35, %v3140_v51  ;;  %v5653_v24 = vpop.eup %5652  ;;  %v2809_v36 = vsub.f32 %v7172_v59, %v2714_v17  ;;  %v3178_v52 = vsel %vm626_vm6, %v3111_v30, 0.0 }
 0x4ce   :  { %v2901_v37 = vmul.f32 %v5653_v24, %v8335_v14  ;;  %5656 = vpow2.f32 %v2856_v50  ;;  %v2960_v48 = vsel %vm626_vm6, %v2900_v10, 0.0  ;;  %v3086_v12 = vsel %vm3070_vm5, 1.0, %v2950_v46  ;;  %v7285_v24 = vpop.f32.mrf.mxu1 }
 0x4cf   :  { %v7267_v55 = vadd.f32 %v3333_v27, %v3316_v57  ;;  %v3315_v49 = vadd.f32 %v7257_v4, %v3292_v32  ;;  %v2736_v57 = vrot.slane %v2735_v47, 4  ;;  %v2974_v27 = vrot.slane %v2973_v41, 2 }
 0x4d0   :  { %v2961_v32 = vsel %vm626_vm6, %v2901_v37, 0.0  ;;  %5658 = vpow2.f32 %v2858_v20  ;;  %v2852_v38 = vmul.f32 1.442695, %v2808_v42  ;;  %v2724_v62 = vsel %vm626_vm6, %v7236_v53, -inf }
 0x4d1   :  { %v7274_v28 = vadd.f32 %v3315_v49, %v7240_v39  ;;  %v3167_v59 = vadd.f32 %v3166_v61, %v3165_v0  ;;  %v3155_v26 = vrot.slane %v3154_v25, 2  ;;  %v2962_v18 = vadd.f32 %v2961_v32, %v2960_v48 }
 0x4d2   :  { %v2854_v51 = vmul.f32 1.442695, %v2809_v36  ;;  %5660 = vrcp.f32 %v3086_v12  ;;  %v3179_v60 = vadd.f32 %v3178_v52, %v3177_v40  ;;  %v2737_v43 = vmax.f32 %v2735_v47, %v2736_v57  ;;  %v7293_v57 = vpop.f32.mrf.mxu1 }
 0x4d3   :  { %v2725_v46 = vsel %vm626_vm6, %v7265_v33, -inf  ;;  %v2975_v17 = vadd.f32 %v2974_v27, %v2973_v41  ;;  %v2963_v35 = vrot.slane %v2962_v18, 4  ;;  %v3108_v50 = vmul.f32 %v2900_v10, %v7049_v23 }
 0x4d4   :  { %v5655_v22 = vpop.eup %5654  ;;  %v2726_v30 = vmax.f32 %v2724_v62, %v2725_v46  ;;  %v3109_v0 = vmul.f32 %v2901_v37, %v7052_v16  ;;  %5662 = vpow2.f32 %v2852_v38  ;;  %v2738_v61 = vrot.slane %v2737_v43, 2 }
 0x4d5   :  { %v3295_v15 = vmul.f32 %v5655_v22, %v3167_v59  ;;  %v3335_v20 = vrot.slane %v7240_v39, 3  ;;  %v2964_v47 = vadd.f32 %v2963_v35, %v2962_v18  ;;  %5664 = vpow2.f32 %v2854_v51 }
 0x4d6   :  { %v3156_v49 = vadd.f32 %v3155_v26, %v3154_v25  ;;  %v2739_v42 = vmax.f32 %v2737_v43, %v2738_v61  ;;  %v2727_v36 = vrot.slane %v2726_v30, 4  ;;  %v2976_v52 = vrot.slane %v2975_v17, 1 }
 0x4d7   :  { %v3318_v40 = vadd.f32 %v7257_v4, %v3295_v15  ;;  %v3180_v48 = vrot.slane %v3179_v60, 4  ;;  %v3168_v10 = vsel %vm626_vm6, %v3108_v50, 0.0  ;;  %v3169_v37 = vsel %vm626_vm6, %v3109_v0, 0.0 }
 0x4d8   :  { %v2740_v12 = vrot.slane %v2739_v42, 1  ;;  %v2728_v27 = vmax.f32 %v2726_v30, %v2727_v36  ;;  %v3334_v32 = vrot.slane %v7240_v39, 2  ;;  %v2965_v62 = vrot.slane %v2964_v47, 2 }
 0x4d9   :  { %v7291_v41 = vadd.f32 %v3335_v20, %v3318_v40  ;;  %v3157_v59 = vrot.slane %v3156_v49, 1  ;;  %v2752_v51 = vsel %vm626_vm6, %v7293_v57, -inf  ;;  %v7301_v22 = vadd.f32 %v2976_v52, %v2975_v17 }
 0x4da   :  { %v2741_v26 = vmax.f32 %v2739_v42, %v2740_v12  ;;  %v2729_v18 = vrot.slane %v2728_v27, 2  ;;  %v7303_v43 = vadd.f32 %v3180_v48, %v3179_v60  ;;  %v3170_v46 = vadd.f32 %v3169_v37, %v3168_v10  ;;  %v5478_v12 = vld [vmem:[#allocation10 + $0x48] ss:$12 sps:$4 sm:$0xff]  }
 0x4db   :  { %v5657_v25 = vpop.eup %5656  ;;  %v2751_v61 = vsel %vm626_vm6, %v7279_v44, -inf  ;;  %v2966_v20 = vadd.f32 %v2965_v62, %v2964_v47  ;;  %vm3073_vm7 = vcmp.eq.f32.partialorder %v7301_v22, 0.0  ;;  %v3397_v38 = vmul.f32 1.442695, %v7267_v55 }
 0x4dc   :  { %v2906_v15 = vmul.f32 %v5657_v25, %v6868_v13  ;;  %v2814_v30 = vsub.f32 %v7226_v21, %v2741_v26  ;;  %v2815_v50 = vsub.f32 %v7246_v56, %v2741_v26  ;;  %v2730_v0 = vmax.f32 %v2728_v27, %v2729_v18  ;;  %v5480_v26 = vld [vmem:[#allocation10 + $0x4c] ss:$12 sps:$4 sm:$0xff]  }
 0x4dd   :  { %v5659_v35 = vpop.eup %5658  ;;  %v2753_v42 = vmax.f32 %v2751_v61, %v2752_v51  ;;  %v7316_v21 = vadd.f32 %v7054_v54, %v7230_v58  ;;  %v3158_v56 = vadd.f32 %v3157_v59, %v3156_v49  ;;  %v3182_v27 = vrot.slane %v7303_v43, 2  ;;  %v5483_v54 = vld [vmem:[#allocation10 + $0x34] ss:$12 sps:$4 sm:$0xff]   ;;  %3644 = vmatprep.subr.bf16.mxu0 %v5480_v26 }
 0x4de   :  { %v2907_v40 = vmul.f32 %v5659_v35, %v6865_v9  ;;  %v2987_v17 = vsel %vm626_vm6, %v2906_v15, 0.0  ;;  %v2864_v52 = vmul.f32 1.442695, %v2814_v30  ;;  %v2866_v48 = vmul.f32 1.442695, %v2815_v50  ;;  %v7321_v50 = vpop.f32.mrf.mxu1  ;;  %3645 = vmatpush1.bf16.msra.mxu0 %v5478_v12 }
 0x4df   :  { %v5661_v10 = vpop.eup %5660  ;;  %v2731_v47 = vrot.slane %v2730_v0, 1  ;;  %v3171_v62 = vrot.slane %v3170_v46, 4  ;;  %v2967_v51 = vrot.slane %v2966_v20, 1  ;;  %v2754_v30 = vrot.slane %v2753_v42, 4  ;;  %3646 = vmatprep.subr.bf16.mxu0 %v5483_v54  ;;  %v5484_v54 = vld [vmem:[#allocation10 + $0x18] ss:$12 sps:$4 sm:$0xff]  }
 0x4e0   :  { %v2988_v37 = vsel %vm626_vm6, %v2907_v40, 0.0  ;;  %5666 = vpow2.f32 %v2864_v52  ;;  %v3114_v49 = vmul.f32 %v2906_v15, %v7049_v23  ;;  %v3115_v59 = vmul.f32 %v2907_v40, %v7052_v16 }
 0x4e1   :  { %v2989_v25 = vadd.f32 %v2988_v37, %v2987_v17  ;;  %v5663_v18 = vpop.eup %5662  ;;  %v2732_v35 = vmax.f32 %v2730_v0, %v2731_v47  ;;  %5668 = vpow2.f32 %v2866_v48  ;;  %v5481_v47 = vld [vmem:[#allocation10 + $0x30] ss:$12 sps:$4 sm:$0xff]   ;;  %v3294_v36 = vmul.f32 %v5661_v10, %v3158_v56 }
 0x4e2   :  { %v5665_v58 = vpop.eup %5664  ;;  %v7326_v61 = vmul.f32 %v5663_v18, %v6761_v1  ;;  %v3172_v60 = vadd.f32 %v3171_v62, %v3170_v46  ;;  %v2743_v40 = vsel %vm626_vm6, %v7321_v50, -inf  ;;  %v5486_v48 = vld [vmem:[#allocation10 + $0x1c] ss:$12 sps:$4 sm:$0xff]   ;;  %v3195_v10 = vsel %vm626_vm6, %v3114_v49, 0.0  ;;  %3647 = vmatpush1.bf16.msra.mxu0 %v5481_v47 }
 0x4e3   :  { %v2990_v17 = vrot.slane %v2989_v25, 4  ;;  %v7329_v52 = vmul.f32 %v5665_v58, %v6759_v11  ;;  %v2812_v0 = vsub.f32 %v7236_v53, %v2732_v35  ;;  %v2813_v37 = vsub.f32 %v7265_v33, %v2732_v35  ;;  %3648 = vmatprep.subr.bf16.mxu0 %v5486_v48 }
 0x4e4   :  { %v2978_v15 = vsel %vm626_vm6, %v7326_v61, 0.0  ;;  %v2742_v53 = vsel %vm626_vm6, %v7285_v24, -inf  ;;  %v2968_v33 = vadd.f32 %v2967_v51, %v2966_v20  ;;  %v3196_v46 = vsel %vm626_vm6, %v3115_v59, 0.0  ;;  %v5489_v51 = vld [vmem:[#allocation10 + $0x4] ss:$12 sps:$4 sm:$0xff]  }
 0x4e5   :  { %v2979_v26 = vsel %vm626_vm6, %v7329_v52, 0.0  ;;  %v2860_v18 = vmul.f32 1.442695, %v2812_v0  ;;  %v2862_v58 = vmul.f32 1.442695, %v2813_v37  ;;  %v2991_v12 = vadd.f32 %v2990_v17, %v2989_v25 }
 0x4e6   :  { %v2980_v56 = vadd.f32 %v2979_v26, %v2978_v15  ;;  %v2755_v62 = vmax.f32 %v2753_v42, %v2754_v30  ;;  %v2744_v35 = vmax.f32 %v2742_v53, %v2743_v40  ;;  %v3089_v0 = vsel %vm3073_vm7, 1.0, %v7301_v22  ;;  %v7349_v42 = vpop.f32.mrf.mxu1  ;;  %3649 = vmatpush1.bf16.msra.mxu0 %v5484_v54 }
 0x4e7   :  { %5670 = vpow2.f32 %v2860_v18  ;;  %v3183_v37 = vadd.f32 %v3182_v27, %v7303_v43  ;;  %v3317_v49 = vadd.f32 %v7257_v4, %v3294_v36  ;;  %v3197_v59 = vadd.f32 %v3196_v46, %v3195_v10  ;;  %v5487_v27 = vld [vmem:[#allocation10] ss:$12 sps:$4 sm:$0xff]   ;;  %3650 = vmatprep.subr.bf16.mxu0 %v5489_v51 }
 0x4e8   :  { %v2981_v20 = vrot.slane %v2980_v56, 4  ;;  %5672 = vpow2.f32 %v2862_v58  ;;  %v2756_v25 = vrot.slane %v2755_v62, 2  ;;  %v3395_v17 = vmul.f32 1.442695, %v7274_v28  ;;  %v7359_v46 = vpop.f32.mrf.mxu1 }
 0x4e9   :  { %v3173_v47 = vrot.slane %v3172_v60, 2  ;;  %v2745_v15 = vrot.slane %v2744_v35, 4  ;;  %5674 = vrcp.f32 %v3089_v0  ;;  %vm3072_vm8 = vcmp.eq.f32.partialorder %v2968_v33, 0.0 }
 0x4ea   :  { %v2992_v22 = vrot.slane %v2991_v12, 2  ;;  %v2757_v43 = vmax.f32 %v2755_v62, %v2756_v25  ;;  %v3401_v40 = vmul.f32 1.442695, %v7291_v41  ;;  %v3184_v36 = vrot.slane %v3183_v37, 1  ;;  %3651 = vmatpush1.bf16.msra.mxu0 %v5487_v27 }
 0x4eb   :  { %v2982_v48 = vadd.f32 %v2981_v20, %v2980_v56  ;;  %5676 = vpow2.f32 %v3397_v38  ;;  %v7357_v58 = vadd.f32 %v3334_v32, %v3317_v49  ;;  %v3198_v53 = vrot.slane %v3197_v59, 4  ;;  %5372 = vmatprep.subr.bf16.mxu0 %v8305_v3 }
 0x4ec   :  { %v2758_v10 = vrot.slane %v2757_v43, 1  ;;  %5678 = vpow2.f32 %v3395_v17  ;;  %v3088_v62 = vsel %vm3072_vm8, 1.0, %v2968_v33  ;;  %v7362_v54 = vadd.f32 %v3173_v47, %v3172_v60 }
 0x4ed   :  { %v5667_v18 = vpop.eup %5666  ;;  %v2746_v0 = vmax.f32 %v2744_v35, %v2745_v15  ;;  %v2993_v20 = vadd.f32 %v2992_v22, %v2991_v12  ;;  %v3112_v51 = vmul.f32 %v7326_v61, %v7049_v23  ;;  %5680 = vpow2.f32 %v3401_v40  ;;  %v7374_v35 = vpop.f32.mrf.mxu1 }
 0x4ee   :  { %v5669_v56 = vpop.eup %5668  ;;  %v2910_v38 = vmul.f32 %v5667_v18, %v6394_v45  ;;  %v2759_v25 = vmax.f32 %v2757_v43, %v2758_v10  ;;  %v2983_v32 = vrot.slane %v2982_v48, 2  ;;  %v3113_v49 = vmul.f32 %v7329_v52, %v7052_v16 }
 0x4ef   :  { %v2911_v17 = vmul.f32 %v5669_v56, %v6398_v7  ;;  %v3399_v60 = vmul.f32 1.442695, %v7357_v58  ;;  %v3199_v33 = vadd.f32 %v3198_v53, %v3197_v59  ;;  %v3185_v47 = vadd.f32 %v3184_v36, %v3183_v37 }
 0x4f0   :  { %v3005_v12 = vsel %vm626_vm6, %v2910_v38, 0.0  ;;  %v2818_v61 = vsub.f32 %v7279_v44, %v2759_v25  ;;  %5682 = vrcp.f32 %v3088_v62  ;;  %v2747_v22 = vrot.slane %v2746_v0, 2 }
 0x4f1   :  { %v3006_v15 = vsel %vm626_vm6, %v2911_v17, 0.0  ;;  %v2994_v43 = vrot.slane %v2993_v20, 1  ;;  %v3186_v52 = vsel %vm626_vm6, %v3112_v51, 0.0  ;;  %v2819_v40 = vsub.f32 %v7293_v57, %v2759_v25  ;;  %v7388_v25 = vpop.f32.mrf.mxu1 }
 0x4f2   :  { %v3007_v27 = vadd.f32 %v3006_v15, %v3005_v12  ;;  %v2984_v10 = vadd.f32 %v2983_v32, %v2982_v48  ;;  %v3187_v59 = vsel %vm626_vm6, %v3113_v49, 0.0  ;;  %v2872_v53 = vmul.f32 1.442695, %v2818_v61 }
 0x4f3   :  { %v2770_v44 = vsel %vm626_vm6, %v7374_v35, -inf  ;;  %5684 = vpow2.f32 %v3399_v60  ;;  %v3175_v37 = vrot.slane %v7362_v54, 1  ;;  %v3200_v36 = vrot.slane %v3199_v33, 2 }
 0x4f4   :  { %v5671_v18 = vpop.eup %5670  ;;  %v2769_v62 = vsel %vm626_vm6, %v7349_v42, -inf  ;;  %v3008_v51 = vrot.slane %v3007_v27, 4  ;;  %v2874_v57 = vmul.f32 1.442695, %v2819_v40  ;;  %v2748_v48 = vmax.f32 %v2746_v0, %v2747_v22 }
 0x4f5   :  { %v5673_v56 = vpop.eup %5672  ;;  %v7386_v12 = vmul.f32 %v5671_v18, %v6563_v31  ;;  %v2995_v32 = vadd.f32 %v2994_v43, %v2993_v20  ;;  %v3188_v49 = vadd.f32 %v3187_v59, %v3186_v52  ;;  %v2771_v60 = vmax.f32 %v2769_v62, %v2770_v44  ;;  %v7403_v44 = vpop.f32.mrf.mxu1 }
 0x4f6   :  { %v7391_v61 = vmul.f32 %v5673_v56, %v8310_v34  ;;  %v5675_v15 = vpop.eup %5674  ;;  %v2985_v30 = vrot.slane %v2984_v10, 1  ;;  %5686 = vpow2.f32 %v2872_v53  ;;  %v2749_v7 = vrot.slane %v2748_v48, 1 }
 0x4f7   :  { %v2996_v26 = vsel %vm626_vm6, %v7386_v12, 0.0  ;;  %v3118_v18 = vmul.f32 %v2910_v38, %v7049_v23  ;;  %v3119_v40 = vmul.f32 %v2911_v17, %v7052_v16  ;;  %v2761_v20 = vsel %vm626_vm6, %v7388_v25, -inf }
 0x4f8   :  { %v2997_v0 = vsel %vm626_vm6, %v7391_v61, 0.0  ;;  %v7401_v22 = vpop.eup %5676  ;;  %v3009_v43 = vadd.f32 %v3008_v51, %v3007_v27  ;;  %5688 = vpow2.f32 %v2874_v57  ;;  %v2750_v59 = vmax.f32 %v2748_v48, %v2749_v7 }
 0x4f9   :  { %v2998_v52 = vadd.f32 %v2997_v0, %v2996_v26  ;;  %v7405_v53 = vpop.eup %5678  ;;  %v3297_v62 = vmul.f32 %v5675_v15, %v3185_v47  ;;  %v3201_v38 = vadd.f32 %v3200_v36, %v3199_v33  ;;  %v3189_v56 = vrot.slane %v3188_v49, 4 }
 0x4fa   :  { %v2772_v17 = vrot.slane %v2771_v60, 4  ;;  %v2986_v34 = vadd.f32 %v2985_v30, %v2984_v10  ;;  %v2816_v31 = vsub.f32 %v7285_v24, %v2750_v59  ;;  %v2817_v45 = vsub.f32 %v7321_v50, %v2750_v59  ;;  %v7411_v27 = vpop.eup %5680  ;;  %v7415_v30 = vpop.f32.mrf.mxu1 }
 0x4fb   :  { %v2760_v11 = vsel %vm626_vm6, %v7359_v46, -inf  ;;  %v3213_v7 = vsel %vm626_vm6, %v3118_v18, 0.0  ;;  %v3214_v26 = vsel %vm626_vm6, %v3119_v40, 0.0  ;;  %vm3075_vm9 = vcmp.eq.f32.partialorder %v2995_v32, 0.0 }
 0x4fc   :  { %v2773_v51 = vmax.f32 %v2771_v60, %v2772_v17  ;;  %v2762_v57 = vmax.f32 %v2760_v11, %v2761_v20  ;;  %v3010_v33 = vrot.slane %v3009_v43, 2  ;;  %v2999_v47 = vrot.slane %v2998_v52, 4 }
 0x4fd   :  { %v2868_v36 = vmul.f32 1.442695, %v2816_v31  ;;  %v5683_v24 = vpop.eup %5682  ;;  %v3202_v10 = vrot.slane %v3201_v38, 1  ;;  %v3190_v50 = vadd.f32 %v3189_v56, %v3188_v49  ;;  %v2870_v48 = vmul.f32 1.442695, %v2817_v45  ;;  %v7423_v49 = vpop.f32.mrf.mxu1 }
 0x4fe   :  { %v2774_v15 = vrot.slane %v2773_v51, 2  ;;  %v3176_v0 = vadd.f32 %v3175_v37, %v7362_v54  ;;  %v3215_v59 = vadd.f32 %v3214_v26, %v3213_v7  ;;  %v2763_v18 = vrot.slane %v2762_v57, 4 }
 0x4ff   :  { %5690 = vpow2.f32 %v2868_v36  ;;  %v3091_v1 = vsel %vm3075_vm9, 1.0, %v2995_v32  ;;  %vm3074_vm10 = vcmp.eq.f32.partialorder %v2986_v34, 0.0  ;;  %v7421_v31 = vadd.f32 %v7257_v4, %v3297_v62 }
 0x500   :  { %5692 = vpow2.f32 %v2870_v48  ;;  %v2775_v11 = vmax.f32 %v2773_v51, %v2774_v15  ;;  %v7418_v60 = vpop.eup %5684  ;;  %v3011_v40 = vadd.f32 %v3010_v33, %v3009_v43  ;;  %v3000_v20 = vadd.f32 %v2999_v47, %v2998_v52  ;;  %v8336_v33 = vld [vmem:[#allocation36_spill] sm:$0xff] }
 0x501   :  { %v2764_v17 = vmax.f32 %v2762_v57, %v2763_v18  ;;  %v3296_v45 = vmul.f32 %v5683_v24, %v3176_v0  ;;  %v7425_v56 = vadd.f32 %v3202_v10, %v3201_v38  ;;  %v3191_v54 = vrot.slane %v3190_v50, 2 }
 0x502   :  { %v2776_v37 = vrot.slane %v2775_v11, 1  ;;  %5694 = vrcp.f32 %v3091_v1  ;;  %v3090_v32 = vsel %vm3074_vm10, 1.0, %v2986_v34  ;;  %v3216_v7 = vrot.slane %v3215_v59, 4 }
 0x503   :  { %v2765_v26 = vrot.slane %v2764_v17, 2  ;;  %v5687_v51 = vpop.eup %5686  ;;  %v3116_v36 = vmul.f32 %v7386_v12, %v7049_v23  ;;  %v3117_v43 = vmul.f32 %v7391_v61, %v7052_v16  ;;  %v2788_v62 = vsel %vm626_vm6, %v7423_v49, -inf  ;;  %v8337_v61 = vld [vmem:[#allocation35_spill] sm:$0xff] }
 0x504   :  { %v2777_v52 = vmax.f32 %v2775_v11, %v2776_v37  ;;  %v3012_v57 = vrot.slane %v3011_v40, 1  ;;  %v3001_v38 = vrot.slane %v3000_v20, 2  ;;  %v2914_v47 = vmul.f32 %v5687_v51, %v8336_v33 }
 0x505   :  { %v2787_v1 = vsel %vm626_vm6, %v7403_v44, -inf  ;;  %v5689_v34 = vpop.eup %5688  ;;  %v2766_v12 = vmax.f32 %v2764_v17, %v2765_v26  ;;  %v7438_v15 = vadd.f32 %v3191_v54, %v3190_v50  ;;  %5696 = vrcp.f32 %v3090_v32 }
 0x506   :  { %v2822_v24 = vsub.f32 %v7349_v42, %v2777_v52  ;;  %v2823_v10 = vsub.f32 %v7374_v35, %v2777_v52  ;;  %v2789_v48 = vmax.f32 %v2787_v1, %v2788_v62  ;;  %v2915_v0 = vmul.f32 %v5689_v34, %v8337_v61  ;;  %v8338_v1 = vld [vmem:[#allocation28_spill] sm:$0xff] }
 0x507   :  { %v3023_v18 = vsel %vm626_vm6, %v2914_v47, 0.0  ;;  %v3217_v11 = vadd.f32 %v3216_v7, %v3215_v59  ;;  %v3204_v37 = vsel %vm626_vm6, %v3116_v36, 0.0  ;;  %v3013_v9 = vadd.f32 %v3012_v57, %v3011_v40  ;;  %v7447_v7 = vpop.f32.mrf.mxu1 }
 0x508   :  { %v2880_v51 = vmul.f32 1.442695, %v2822_v24  ;;  %v2882_v33 = vmul.f32 1.442695, %v2823_v10  ;;  %v3205_v13 = vsel %vm626_vm6, %v3117_v43, 0.0  ;;  %v3024_v42 = vsel %vm626_vm6, %v2915_v0, 0.0 }
 0x509   :  { %v2767_v35 = vrot.slane %v2766_v12, 1  ;;  %v3002_v17 = vadd.f32 %v3001_v38, %v3000_v20  ;;  %v3025_v26 = vadd.f32 %v3024_v42, %v3023_v18  ;;  %v2790_v50 = vrot.slane %v2789_v48, 4  ;;  %v8339_v10 = vld [vmem:[#allocation27_spill] sm:$0xff] }
 0x50a   :  { %5698 = vpow2.f32 %v2880_v51  ;;  %v3319_v54 = vadd.f32 %v7257_v4, %v3296_v45  ;;  %v3193_v32 = vrot.slane %v7438_v15, 1  ;;  %v3218_v52 = vrot.slane %v3217_v11, 2 }
 0x50b   :  { %5700 = vpow2.f32 %v2882_v33  ;;  %v2768_v59 = vmax.f32 %v2766_v12, %v2767_v35  ;;  %v3206_v40 = vadd.f32 %v3205_v13, %v3204_v37  ;;  %v3026_v62 = vrot.slane %v3025_v26, 4 }
 0x50c   :  { %v5691_v36 = vpop.eup %5690  ;;  %v2791_v43 = vmax.f32 %v2789_v48, %v2790_v50  ;;  %vm3077_vm12 = vcmp.eq.f32.partialorder %v3013_v9, 0.0  ;;  %v3003_v45 = vrot.slane %v3002_v17, 1  ;;  %v2779_v12 = vsel %vm626_vm6, %v7447_v7, -inf }
 0x50d   :  { %v5693_v57 = vpop.eup %5692  ;;  %v2912_v20 = vmul.f32 %v5691_v36, %v8338_v1  ;;  %v2820_v38 = vsub.f32 %v7359_v46, %v2768_v59  ;;  %v2821_v34 = vsub.f32 %v7388_v25, %v2768_v59  ;;  %v3027_v24 = vadd.f32 %v3026_v62, %v3025_v26 }
 0x50e   :  { %v2913_v33 = vmul.f32 %v5693_v57, %v8339_v10  ;;  %v2792_v48 = vrot.slane %v2791_v43, 2  ;;  %v3122_v42 = vmul.f32 %v2914_v47, %v7049_v23  ;;  %v3123_v35 = vmul.f32 %v2915_v0, %v7052_v16 }
 0x50f   :  { %v3014_v18 = vsel %vm626_vm6, %v2912_v20, 0.0  ;;  %v2876_v13 = vmul.f32 1.442695, %v2820_v38  ;;  %v2878_v37 = vmul.f32 1.442695, %v2821_v34  ;;  %v5695_v51 = vpop.eup %5694  ;;  %v2778_v25 = vsel %vm626_vm6, %v7415_v30, -inf }
 0x510   :  { %v3015_v46 = vsel %vm626_vm6, %v2913_v33, 0.0  ;;  %v3028_v26 = vrot.slane %v3027_v24, 2  ;;  %v2780_v59 = vmax.f32 %v2778_v25, %v2779_v12  ;;  %v3207_v36 = vrot.slane %v3206_v40, 4 }
 0x511   :  { %v3016_v50 = vadd.f32 %v3015_v46, %v3014_v18  ;;  %5702 = vpow2.f32 %v2876_v13  ;;  %v3120_v62 = vmul.f32 %v2912_v20, %v7049_v23  ;;  %v3121_v57 = vmul.f32 %v2913_v33, %v7052_v16 }
 0x512   :  { %5704 = vpow2.f32 %v2878_v37  ;;  %v8340_v38 = vrot.slane %v7240_v39, 4  ;;  %v3004_v0 = vadd.f32 %v3003_v45, %v3002_v17  ;;  %v2793_v61 = vmax.f32 %v2791_v43, %v2792_v48  ;;  %v5697_v10 = vpop.eup %5696 }
 0x513   :  { %v3017_v34 = vrot.slane %v3016_v50, 4  ;;  %v3093_v1 = vsel %vm3077_vm12, 1.0, %v3013_v9  ;;  %v3219_v14 = vadd.f32 %v3218_v52, %v3217_v11  ;;  %v3231_v18 = vsel %vm626_vm6, %v3122_v42, 0.0  ;;  %v8341_v42 = vld [vmem:[#allocation43_spill] sm:$0xff] }
 0x514   :  { %v7465_v47 = vadd.f32 %v8340_v38, %v3319_v54  ;;  %v3232_v12 = vsel %vm626_vm6, %v3123_v35, 0.0  ;;  %v3029_v13 = vadd.f32 %v3028_v26, %v3027_v24  ;;  %v2794_v46 = vrot.slane %v2793_v61, 1 }
 0x515   :  { %v3018_v20 = vadd.f32 %v3017_v34, %v3016_v50  ;;  %v2781_v33 = vrot.slane %v2780_v59, 4  ;;  %v3194_v37 = vadd.f32 %v3193_v32, %v7438_v15  ;;  %v3208_v25 = vadd.f32 %v3207_v36, %v3206_v40 }
 0x516   :  { %v3222_v54 = vsel %vm626_vm6, %v3120_v62, 0.0  ;;  %v3223_v17 = vsel %vm626_vm6, %v3121_v57, 0.0  ;;  %5706 = vrcp.f32 %v3093_v1  ;;  %vm3076_vm0 = vcmp.eq.f32.partialorder %v3004_v0, 0.0  ;;  %v8342_v1 = vld [vmem:[#allocation42_spill] sm:$0xff] }
 0x517   :  { %v5699_v43 = vpop.eup %5698  ;;  %v3019_v9 = vrot.slane %v3018_v20, 2  ;;  %v2795_v11 = vmax.f32 %v2793_v61, %v2794_v46  ;;  %v7474_v45 = vmul.f32 1.442695, %v7465_v47  ;;  %v3220_v24 = vrot.slane %v3219_v14, 1 }
 0x518   :  { %v5701_v52 = vpop.eup %5700  ;;  %v3233_v48 = vadd.f32 %v3232_v12, %v3231_v18  ;;  %v2918_v35 = vmul.f32 %v5699_v43, %v8341_v42  ;;  %v3030_v26 = vrot.slane %v3029_v13, 1  ;;  %v3224_v32 = vadd.f32 %v3223_v17, %v3222_v54 }
 0x519   :  { %v3020_v15 = vadd.f32 %v3019_v9, %v3018_v20  ;;  %v2782_v40 = vmax.f32 %v2780_v59, %v2781_v33  ;;  %v3299_v50 = vmul.f32 %v5695_v51, %v7425_v56  ;;  %v3092_v36 = vsel %vm3076_vm0, 1.0, %v3004_v0 }
 0x51a   :  { %v3209_v62 = vrot.slane %v3208_v25, 2  ;;  %v2919_v57 = vmul.f32 %v5701_v52, %v8342_v1  ;;  %v3041_v61 = vsel %vm626_vm6, %v2918_v35, 0.0  ;;  %v3126_v34 = vmul.f32 %v2918_v35, %v7049_v23  ;;  %v8343_v1 = vld [vmem:[#allocation39_spill] sm:$0xff] }
 0x51b   :  { %v3021_v38 = vrot.slane %v3020_v15, 1  ;;  %v2826_v46 = vsub.f32 %v7403_v44, %v2795_v11  ;;  %v3221_v18 = vadd.f32 %v3220_v24, %v3219_v14  ;;  %v2827_v59 = vsub.f32 %v7423_v49, %v2795_v11 }
 0x51c   :  { %v3042_v12 = vsel %vm626_vm6, %v2919_v57, 0.0  ;;  %v3127_v20 = vmul.f32 %v2919_v57, %v7052_v16  ;;  %v3031_v33 = vadd.f32 %v3030_v26, %v3029_v13  ;;  %v3234_v56 = vrot.slane %v3233_v48, 4  ;;  %v8344_v13 = vld [vmem:[#allocation38_spill] sm:$0xff] }
 0x51d   :  { %v3225_v51 = vrot.slane %v3224_v32, 4  ;;  %v2783_v0 = vrot.slane %v2782_v40, 2  ;;  %v3298_v17 = vmul.f32 %v5697_v10, %v3194_v37  ;;  %v7485_v43 = vadd.f32 %v3209_v62, %v3208_v25 }
 0x51e   :  { %v5703_v54 = vpop.eup %5702  ;;  %5708 = vrcp.f32 %v3092_v36  ;;  %v3043_v9 = vadd.f32 %v3042_v12, %v3041_v61  ;;  %v3022_v35 = vadd.f32 %v3021_v38, %v3020_v15  ;;  %v3249_v14 = vsel %vm626_vm6, %v3126_v34, 0.0 }
 0x51f   :  { %v5705_v52 = vpop.eup %5704  ;;  %v3250_v44 = vsel %vm626_vm6, %v3127_v20, 0.0  ;;  %v2888_v24 = vmul.f32 1.442695, %v2826_v46  ;;  %v2916_v49 = vmul.f32 %v5703_v54, %v8343_v1  ;;  %v2890_v26 = vmul.f32 1.442695, %v2827_v59 }
 0x520   :  { %v3044_v57 = vrot.slane %v3043_v9, 4  ;;  %v2917_v11 = vmul.f32 %v5705_v52, %v8344_v13  ;;  %vm3079_vm5 = vcmp.eq.f32.partialorder %v3031_v33, 0.0  ;;  %v3235_v42 = vadd.f32 %v3234_v56, %v3233_v48 }
 0x521   :  { %v3226_v10 = vadd.f32 %v3225_v51, %v3224_v32  ;;  %v2784_v37 = vmax.f32 %v2782_v40, %v2783_v0  ;;  %v3032_v36 = vsel %vm626_vm6, %v2916_v49, 0.0  ;;  %v3124_v62 = vmul.f32 %v2916_v49, %v7049_v23 }
 0x522   :  { %v3045_v25 = vadd.f32 %v3044_v57, %v3043_v9  ;;  %v3033_v15 = vsel %vm626_vm6, %v2917_v11, 0.0  ;;  %v3251_v38 = vadd.f32 %v3250_v44, %v3249_v14  ;;  %v3125_v34 = vmul.f32 %v2917_v11, %v7052_v16 }
 0x523   :  { %v3034_v61 = vadd.f32 %v3033_v15, %v3032_v36  ;;  %5710 = vpow2.f32 %v2888_v24  ;;  %v5707_v46 = vpop.eup %5706  ;;  %vm3078_vm7 = vcmp.eq.f32.partialorder %v3022_v35, 0.0  ;;  %v2785_v20 = vrot.slane %v2784_v37, 1 }
 0x524   :  { %v3046_v12 = vrot.slane %v3045_v25, 2  ;;  %5712 = vpow2.f32 %v2890_v26  ;;  %v3321_v48 = vadd.f32 %v7257_v4, %v3298_v17  ;;  %v3095_v32 = vsel %vm3079_vm5, 1.0, %v3031_v33 }
 0x525   :  { %v3035_v40 = vrot.slane %v3034_v61, 4  ;;  %v3322_v59 = vadd.f32 %v7257_v4, %v3299_v50  ;;  %v3240_v51 = vsel %vm626_vm6, %v3124_v62, 0.0  ;;  %v3241_v0 = vsel %vm626_vm6, %v3125_v34, 0.0 }
 0x526   :  { %v3047_v56 = vadd.f32 %v3046_v12, %v3045_v25  ;;  %v2786_v54 = vmax.f32 %v2784_v37, %v2785_v20  ;;  %v3301_v9 = vmul.f32 %v5707_v46, %v3221_v18  ;;  %v3094_v52 = vsel %vm3078_vm7, 1.0, %v3022_v35 }
 0x527   :  { %v3252_v14 = vrot.slane %v3251_v38, 4  ;;  %v3036_v44 = vadd.f32 %v3035_v40, %v3034_v61  ;;  %v3236_v24 = vrot.slane %v3235_v42, 2  ;;  %5714 = vrcp.f32 %v3095_v32 }
 0x528   :  { %v3227_v57 = vrot.slane %v3226_v10, 2  ;;  %v2824_v17 = vsub.f32 %v7415_v30, %v2786_v54  ;;  %v3048_v49 = vrot.slane %v3047_v56, 1  ;;  %v3242_v11 = vadd.f32 %v3241_v0, %v3240_v51 }
 0x529   :  { %v3037_v33 = vrot.slane %v3036_v44, 2  ;;  %v2825_v50 = vsub.f32 %v7447_v7, %v2786_v54  ;;  %v3211_v26 = vrot.slane %v7485_v43, 1  ;;  %5716 = vrcp.f32 %v3094_v52 }
 0x52a   :  { %v2884_v25 = vmul.f32 1.442695, %v2824_v17  ;;  %v8345_v18 = vrot.slane %v7240_v39, 5  ;;  %v3253_v36 = vadd.f32 %v3252_v14, %v3251_v38  ;;  %v8346_v30 = vrot.slane %v7240_v39, 6 }
 0x52b   :  { %v5709_v37 = vpop.eup %5708  ;;  %v3038_v15 = vadd.f32 %v3037_v33, %v3036_v44  ;;  %v2886_v62 = vmul.f32 1.442695, %v2825_v50  ;;  %v3324_v34 = vadd.f32 %v7257_v4, %v3301_v9  ;;  %v3237_v7 = vadd.f32 %v3236_v24, %v3235_v42  ;;  %v8349_v24 = vld [vmem:[#allocation50_spill] sm:$0xff] }
 0x52c   :  { %v7506_v35 = vadd.f32 %v8345_v18, %v7421_v31  ;;  %v7510_v61 = vadd.f32 %v8346_v30, %v3321_v48  ;;  %v3228_v46 = vadd.f32 %v3227_v57, %v3226_v10  ;;  %5718 = vpow2.f32 %v2884_v25 }
 0x52d   :  { %v3049_v12 = vadd.f32 %v3048_v49, %v3047_v56  ;;  %v3039_v20 = vrot.slane %v3038_v15, 1  ;;  %v3243_v32 = vrot.slane %v3242_v11, 4  ;;  %5720 = vpow2.f32 %v2886_v62 }
 0x52e   :  { %v3341_v31 = vrot.slane %v7316_v21, 2  ;;  %5722 = vpow2.f32 %v7474_v45  ;;  %v3212_v38 = vadd.f32 %v3211_v26, %v7485_v43  ;;  %v8347_v40 = vrot.slane %v7240_v39, 7 }
 0x52f   :  { %v3254_v48 = vrot.slane %v3253_v36, 2  ;;  %v3040_v0 = vadd.f32 %v3039_v20, %v3038_v15  ;;  %v3405_v42 = vmul.f32 1.442695, %v7506_v35  ;;  %v3407_v10 = vmul.f32 1.442695, %v7510_v61 }
 0x530   :  { %v7518_v51 = vadd.f32 %v8347_v40, %v3322_v59  ;;  %v5711_v56 = vpop.eup %5710  ;;  %v8348_v54 = vrot.slane %v7316_v21, 1  ;;  %v3300_v52 = vmul.f32 %v5709_v37, %v3212_v38  ;;  %v3238_v14 = vrot.slane %v3237_v7, 1 }
 0x531   :  { %v3229_v45 = vrot.slane %v3228_v46, 1  ;;  %v5713_v44 = vpop.eup %5712  ;;  %vm3081_vm8 = vcmp.eq.f32.partialorder %v3049_v12, 0.0  ;;  %vm3080_vm9 = vcmp.eq.f32.partialorder %v3040_v0, 0.0  ;;  %v3244_v39 = vadd.f32 %v3243_v32, %v3242_v11 }
 0x532   :  { %v7524_v9 = vadd.f32 %v8348_v54, %v3324_v34  ;;  %v2922_v43 = vmul.f32 %v5711_v56, %v6886_v6  ;;  %v3096_v59 = vsel %vm3080_vm9, 1.0, %v3040_v0  ;;  %v2923_v57 = vmul.f32 %v5713_v44, %v8349_v24 }
 0x533   :  { %5724 = vpow2.f32 %v3405_v42  ;;  %v3409_v17 = vmul.f32 1.442695, %v7518_v51  ;;  %v3255_v49 = vadd.f32 %v3254_v48, %v3253_v36  ;;  %v3097_v26 = vsel %vm3081_vm8, 1.0, %v3049_v12 }
 0x534   :  { %v3059_v33 = vsel %vm626_vm6, %v2922_v43, 0.0  ;;  %v3130_v50 = vmul.f32 %v2922_v43, %v7049_v23  ;;  %5726 = vpow2.f32 %v3407_v10  ;;  %v3060_v25 = vsel %vm626_vm6, %v2923_v57, 0.0  ;;  %v5715_v18 = vpop.eup %5714  ;;  %v8350_v43 = vld [vmem:[#allocation47_spill] sm:$0xff] }
 0x535   :  { %5728 = vrcp.f32 %v3096_v59  ;;  %v3131_v11 = vmul.f32 %v2923_v57, %v7052_v16  ;;  %v3413_v37 = vmul.f32 1.442695, %v7524_v9  ;;  %v3245_v15 = vrot.slane %v3244_v39, 2 }
 0x536   :  { %v3061_v62 = vadd.f32 %v3060_v25, %v3059_v33  ;;  %v3267_v30 = vsel %vm626_vm6, %v3130_v50, 0.0  ;;  %v3323_v36 = vadd.f32 %v7257_v4, %v3300_v52  ;;  %v3239_v34 = vadd.f32 %v3238_v14, %v3237_v7  ;;  %v5717_v32 = vpop.eup %5716 }
 0x537   :  { %v3268_v20 = vsel %vm626_vm6, %v3131_v11, 0.0  ;;  %5730 = vpow2.f32 %v3409_v17  ;;  %v3342_v12 = vrot.slane %v7316_v21, 3  ;;  %v3343_v48 = vrot.slane %v7316_v21, 4 }
 0x538   :  { %5732 = vrcp.f32 %v3097_v26  ;;  %v3062_v38 = vrot.slane %v3061_v62, 4  ;;  %v3269_v40 = vadd.f32 %v3268_v20, %v3267_v30  ;;  %v3303_v0 = vmul.f32 %v5715_v18, %v3239_v34 }
 0x539   :  { %v3230_v42 = vadd.f32 %v3229_v45, %v3228_v46  ;;  %v3256_v10 = vrot.slane %v3255_v49, 1  ;;  %v5719_v56 = vpop.eup %5718  ;;  %v3344_v54 = vrot.slane %v7316_v21, 5  ;;  %vm3380_vm10 = vcmp.gt.f32.partialorder %v7267_v55, 0.0  ;;  %v8351_v46 = vld [vmem:[#allocation46_spill] sm:$0xff] }
 0x53a   :  { %v3246_v4 = vadd.f32 %v3245_v15, %v3244_v39  ;;  %v3063_v7 = vadd.f32 %v3062_v38, %v3061_v62  ;;  %v5721_v52 = vpop.eup %5720  ;;  %5734 = vpow2.f32 %v3413_v37  ;;  %v7542_v14 = vadd.f32 %v3323_v36, %v7316_v21  ;;  %v7551_v39 = vld [vmem:[%s8208_s9] ss:$0 sm:$0xff] }
 0x53b   :  { %v3302_v44 = vmul.f32 %v5717_v32, %v3230_v42  ;;  %v2920_v59 = vmul.f32 %v5719_v56, %v8350_v43  ;;  %v5723_v57 = vpop.eup %5722  ;;  %v3270_v33 = vrot.slane %v3269_v40, 4  ;;  %v2921_v45 = vmul.f32 %v5721_v52, %v8351_v46 }
 0x53c   :  { %v3064_v17 = vrot.slane %v3063_v7, 2  ;;  %vm3381_vm12 = vcmp.gt.f32.partialorder %v7357_v58, 0.0  ;;  %vm3379_vm0 = vcmp.gt.f32.partialorder %v7274_v28, 0.0  ;;  %v3326_v50 = vadd.f32 %v7551_v39, %v3303_v0 }
 0x53d   :  { %v3257_v26 = vadd.f32 %v3256_v10, %v3255_v49  ;;  %v3050_v25 = vsel %vm626_vm6, %v2920_v59, 0.0  ;;  %v3128_v11 = vmul.f32 %v2920_v59, %v7049_v23  ;;  %vm3382_vm5 = vcmp.gt.f32.partialorder %v7291_v41, 0.0 }
 0x53e   :  { %vm3383_vm7 = vcmp.gt.f32.partialorder %v7465_v47, 0.0  ;;  %v3247_v18 = vrot.slane %v3246_v4, 1  ;;  %v3065_v37 = vadd.f32 %v3064_v17, %v3063_v7  ;;  %v3051_v15 = vsel %vm626_vm6, %v2921_v45, 0.0 }
 0x53f   :  { %v3129_v62 = vmul.f32 %v2921_v45, %v7052_v16  ;;  %v3325_v30 = vadd.f32 %v7551_v39, %v3302_v44  ;;  %v3052_v36 = vadd.f32 %v3051_v15, %v3050_v25  ;;  %v5150_v34 = vadd.f32 -1.0, %v7401_v22 }
 0x540   :  { %v5151_v49 = vadd.f32 -1.0, %v7418_v60  ;;  %v5725_v20 = vpop.eup %5724  ;;  %v3066_v32 = vrot.slane %v3065_v37, 1  ;;  %v3271_v23 = vadd.f32 %v3270_v33, %v3269_v40  ;;  %v3258_v38 = vsel %vm626_vm6, %v3128_v11, 0.0 }
 0x541   :  { %v3259_v0 = vsel %vm626_vm6, %v3129_v62, 0.0  ;;  %vm3384_vm8 = vcmp.gt.f32.partialorder %v7506_v35, 0.0  ;;  %v5727_v42 = vpop.eup %5726  ;;  %v7566_v10 = vadd.f32 %v3342_v12, %v3326_v50  ;;  %v3053_v16 = vrot.slane %v3052_v36, 4 }
 0x542   :  { %vm3385_vm9 = vcmp.gt.f32.partialorder %v7510_v61, 0.0  ;;  %v5149_v56 = vadd.f32 -1.0, %v7405_v53  ;;  %v5729_v22 = vpop.eup %5728  ;;  %v3248_v7 = vadd.f32 %v3247_v18, %v3246_v4  ;;  %v3067_v60 = vadd.f32 %v3066_v32, %v3065_v37 }
 0x543   :  { %v5152_v52 = vadd.f32 -1.0, %v7411_v27  ;;  %v5153_v40 = vadd.f32 -1.0, %v5723_v57  ;;  %v7573_v44 = vadd.f32 %v3341_v31, %v3325_v30  ;;  %v3054_v59 = vadd.f32 %v3053_v16, %v3052_v36 }
 0x544   :  { %v3260_v17 = vadd.f32 %v3259_v0, %v3258_v38  ;;  %v3444_v12 = vsel %vm3380_vm10, %v7267_v55, %v5150_v34  ;;  %v5731_v33 = vpop.eup %5730  ;;  %vm3083_vm2 = vcmp.eq.f32.partialorder %v3067_v60, 0.0  ;;  %v3272_v45 = vrot.slane %v3271_v23, 2 }
 0x545   :  { %v5155_v53 = vadd.f32 -1.0, %v5727_v42  ;;  %v3445_v4 = vsel %vm3381_vm12, %v7357_v58, %v5151_v49  ;;  %v5733_v27 = vpop.eup %5732  ;;  %v3304_v57 = vmul.f32 %v5729_v22, %v3248_v7  ;;  %v3099_v50 = vsel %vm3083_vm2, 1.0, %v3067_v60 }
 0x546   :  { %v3055_v25 = vrot.slane %v3054_v59, 2  ;;  %v5154_v31 = vadd.f32 -1.0, %v5725_v20  ;;  %5736 = vrcp.f32 %v3099_v50  ;;  %v3443_v11 = vsel %vm3379_vm0, %v7274_v28, %v5149_v56 }
 0x547   :  { %v3446_v55 = vsel %vm3382_vm5, %v7291_v41, %v5152_v52  ;;  %v3447_v18 = vsel %vm3383_vm7, %v7465_v47, %v5153_v40  ;;  %v3261_v58 = vrot.slane %v3260_v17, 4  ;;  %v5156_v15 = vadd.f32 -1.0, %v5731_v33  ;;  %v7590_v30 = vpop.eup %5734 }
 0x548   :  { %v3056_v37 = vadd.f32 %v3055_v25, %v3054_v59  ;;  %v3460_v62 = vpack.c.bf16 %v3444_v12, %v3444_v12  ;;  %v3305_v36 = vmul.f32 %v5733_v27, %v3257_v26  ;;  %v3273_v34 = vadd.f32 %v3272_v45, %v3271_v23 }
 0x549   :  { %v3449_v28 = vsel %vm3385_vm9, %v7510_v61, %v5155_v53  ;;  %v3461_v49 = vpack.c.bf16 %v3445_v4, %v3445_v4  ;;  %v3327_v20 = vadd.f32 %v7551_v39, %v3304_v57  ;;  %v3448_v47 = vsel %vm3384_vm8, %v7506_v35, %v5154_v31 }
 0x54a   :  { %v3057_v41 = vrot.slane %v3056_v37, 1  ;;  %v3463_v32 = vpack.c.bf16 %v3447_v18, %v3447_v18  ;;  %v3415_v38 = vmul.f32 1.442695, %v7573_v44  ;;  %vm3386_vm2 = vcmp.gt.f32.partialorder %v7518_v51, 0.0 }
 0x54b   :  { %v3459_v0 = vpack.c.bf16 %v3443_v11, %v3443_v11  ;;  %v3462_v26 = vpack.c.bf16 %v3446_v55, %v3446_v55  ;;  %v3262_v42 = vadd.f32 %v3261_v58, %v3260_v17  ;;  %v3450_v16 = vsel %vm3386_vm2, %v7518_v51, %v5156_v15 }
 0x54c   :  { %v3058_v23 = vadd.f32 %v3057_v41, %v3056_v37  ;;  %v3465_v61 = vpack.c.bf16 %v3449_v28, %v3449_v28  ;;  %v3328_v56 = vadd.f32 %v7551_v39, %v3305_v36  ;;  %v3464_v22 = vpack.c.bf16 %v3448_v47, %v3448_v47 }
 0x54d   :  { %v3525_v7 = vunpack.c.l.b16 %v3460_v62  ;;  %v3526_v60 = vunpack.c.l.b16 %v3461_v49  ;;  %v7605_v35 = vadd.f32 %v3343_v48, %v3327_v20  ;;  %v3274_v52 = vrot.slane %v3273_v34, 1 }
 0x54e   :  { %vm3082_vm10 = vcmp.eq.f32.partialorder %v3058_v23, 0.0  ;;  %v3528_v40 = vunpack.c.l.b16 %v3463_v32  ;;  %v3466_v12 = vpack.c.bf16 %v3450_v16, %v3450_v16  ;;  %v3524_v33 = vunpack.c.l.b16 %v3459_v0 }
 0x54f   :  { %v3098_v59 = vsel %vm3082_vm10, 1.0, %v3058_v23  ;;  %v3527_v45 = vunpack.c.l.b16 %v3462_v26  ;;  %v3411_v17 = vmul.f32 1.442695, %v7542_v14  ;;  %v3263_v51 = vrot.slane %v3262_v42, 2 }
 0x550   :  { %5738 = vrcp.f32 %v3098_v59  ;;  %v3530_v53 = vunpack.c.l.b16 %v3465_v61  ;;  %v3417_v4 = vmul.f32 1.442695, %v7566_v10  ;;  %v3529_v27 = vunpack.c.l.b16 %v3464_v22 }
 0x551   :  { %v3540_v57 = vrot.slane %v3525_v7, 7  ;;  %v3542_v50 = vrot.slane %v3526_v60, 6  ;;  %5740 = vpow2.f32 %v3415_v38  ;;  %v3419_v48 = vmul.f32 1.442695, %v7605_v35 }
 0x552   :  { %v7612_v25 = vadd.f32 %v3344_v54, %v3328_v56  ;;  %v3546_v31 = vrot.slane %v3528_v40, 4  ;;  %v3275_v11 = vadd.f32 %v3274_v52, %v3273_v34  ;;  %v3531_v55 = vunpack.c.l.b16 %v3466_v12 }
 0x553   :  { %v3541_v18 = vsel %vm1901_vm15, %v3540_v57, %v3524_v33  ;;  %v3544_v37 = vrot.slane %v3527_v45, 5  ;;  %v5737_v58 = vpop.eup %5736  ;;  %5742 = vpow2.f32 %v3411_v17  ;;  %v3264_v15 = vadd.f32 %v3263_v51, %v3262_v42 }
 0x554   :  { %v3543_v62 = vsel %vm1904_vm11, %v3542_v50, %v3541_v18  ;;  %v3550_v36 = vrot.slane %v3530_v53, 2  ;;  %5744 = vpow2.f32 %v3417_v4  ;;  %v3307_v28 = vmul.f32 %v5737_v58, %v3275_v11 }
 0x555   :  { %v3545_v49 = vsel %vm1907_vm13, %v3544_v37, %v3543_v62  ;;  %v3548_v20 = vrot.slane %v3529_v27, 3  ;;  %5746 = vpow2.f32 %v3419_v48  ;;  %v3346_v54 = vrot.slane %v7316_v21, 7 }
 0x556   :  { %v3547_v34 = vsel %vm1910_vm14, %v3546_v31, %v3545_v49  ;;  %v3330_v41 = vadd.f32 %v7551_v39, %v3307_v28  ;;  %v3421_v47 = vmul.f32 1.442695, %v7612_v25  ;;  %v3552_v38 = vrot.slane %v3531_v55, 1 }
 0x557   :  { %v3549_v32 = vsel %vm1913_vm1, %v3548_v20, %v3547_v34  ;;  %v3265_v0 = vrot.slane %v3264_v15, 1  ;;  %v3345_v60 = vrot.slane %v7316_v21, 6  ;;  %v5158_v59 = vadd.f32 -1.0, %v7590_v30 }
 0x558   :  { %v3551_v26 = vsel %vm1916_vm3, %v3550_v36, %v3549_v32  ;;  %v3378_v23 = vadd.f32 %v3346_v54, %v3330_v41  ;;  %5748 = vpow2.f32 %v3421_v47  ;;  %vm3388_vm12 = vcmp.gt.f32.partialorder %v7524_v9, 0.0 }
 0x559   :  { %v7624_v42 = vsel %vm1919_vm4, %v3552_v38, %v3551_v26  ;;  %v3266_v61 = vadd.f32 %v3265_v0, %v3264_v15  ;;  %vm3389_vm0 = vcmp.gt.f32.partialorder %v7573_v44, 0.0  ;;  %v3452_v4 = vsel %vm3388_vm12, %v7524_v9, %v5158_v59 }
 0x55a   :  { %v3425_v16 = vmul.f32 1.442695, %v3378_v23  ;;  %vm3387_vm5 = vcmp.gt.f32.partialorder %v7542_v14, 0.0  ;;  %v3468_v30 = vpack.c.bf16 %v3452_v4, %v3452_v4  ;;  %vm3391_vm7 = vcmp.gt.f32.partialorder %v7605_v35, 0.0  ;;  %v5493_v4 = vld [vmem:[#allocation10 + $0x8] ss:$12 sps:$4 sm:$0xff]  }
 0x55b   :  { %vm3390_vm8 = vcmp.gt.f32.partialorder %v7566_v10, 0.0  ;;  %vm3392_vm9 = vcmp.gt.f32.partialorder %v7612_v25, 0.0  ;;  %vm3394_vm2 = vcmp.gt.f32.partialorder %v3378_v23, 0.0  ;;  %vm8352_vm12 = vmmov 0  }
 0x55c   :  { %5750 = vpow2.f32 %v3425_v16 }
 0x55d   :  { %v5739_v56 = vpop.eup %5738 }
 0x55e   :  { %v3306_v22 = vmul.f32 %v5739_v56, %v3266_v61  ;;  %v5741_v7 = vpop.eup %5740 }
 0x55f   :  { %v5159_v45 = vadd.f32 -1.0, %v5741_v7 }
 0x560   :  { %v3329_v52 = vadd.f32 %v7551_v39, %v3306_v22  ;;  %v5743_v40 = vpop.eup %5742 }
 0x561   :  { %v5745_v12 = vpop.eup %5744  ;;  %v5157_v53 = vadd.f32 -1.0, %v5743_v40  ;;  %v3453_v21 = vsel %vm3389_vm0, %v7573_v44, %v5159_v45  ;;  %v3533_v44 = vunpack.c.l.b16 %v3468_v30 }
 0x562   :  { %v3377_v33 = vadd.f32 %v3345_v60, %v3329_v52  ;;  %v5747_v17 = vpop.eup %5746  ;;  %v5160_v39 = vadd.f32 -1.0, %v5745_v12  ;;  %v3469_v48 = vpack.c.bf16 %v3453_v21, %v3453_v21  ;;  %v3491_v21 = vld [vmem:[%s8210_s11] sm:$0x7] }
 0x563   :  { %v5161_v27 = vadd.f32 -1.0, %v5747_v17  ;;  %v3451_v50 = vsel %vm3387_vm5, %v7542_v14, %v5157_v53  ;;  %v3554_v28 = vrot.slane %v3533_v44, 7  ;;  %v5490_v17 = vld [vmem:[#allocation10 + $0x50] ss:$12 sps:$4 sm:$0xff]   ;;  %v5492_v53 = vld [vmem:[#allocation10 + $0x20] ss:$12 sps:$4 sm:$0xff]   ;;  %v3496_v44 = vrot.slane %v3491_v21, %v8325_v19 }
 0x564   :  { %v3423_v51 = vmul.f32 1.442695, %v3377_v33  ;;  %v3454_v55 = vsel %vm3390_vm8, %v7566_v10, %v5160_v39  ;;  %v3467_v18 = vpack.c.bf16 %v3451_v50, %v3451_v50  ;;  %v3534_v15 = vunpack.c.l.b16 %v3469_v48 }
 0x565   :  { %v5749_v57 = vpop.eup %5748  ;;  %v3455_v11 = vsel %vm3391_vm7, %v7605_v35, %v5161_v27  ;;  %v3470_v62 = vpack.c.bf16 %v3454_v55, %v3454_v55  ;;  %vm3393_vm10 = vcmp.gt.f32.partialorder %v3377_v33, 0.0  ;;  %v5495_v27 = vld [vmem:[#allocation12] sm:$0xff]   ;;  %v3500_v39 = vrot.slane %v3491_v21, %v8323_v8 }
 0x566   :  { %5752 = vpow2.f32 %v3423_v51  ;;  %v5162_v9 = vadd.f32 -1.0, %v5749_v57  ;;  %v3471_v58 = vpack.c.bf16 %v3455_v11, %v3455_v11  ;;  %v3532_v14 = vunpack.c.l.b16 %v3467_v18  ;;  %v5491_v51 = vld [vmem:[#allocation10 + $0x38] ss:$12 sps:$4 sm:$0xff]  }
 0x567   :  { %v3556_v54 = vrot.slane %v3534_v15, 6  ;;  %v3535_v34 = vunpack.c.l.b16 %v3470_v62 }
 0x568   :  { %v3456_v36 = vsel %vm3392_vm9, %v7612_v25, %v5162_v9  ;;  %v3536_v20 = vunpack.c.l.b16 %v3471_v58  ;;  %v3555_v32 = vsel %vm1901_vm15, %v3554_v28, %v3532_v14 }
 0x569   :  { %v5751_v31 = vpop.eup %5750  ;;  %v3472_v35 = vpack.c.bf16 %v3456_v36, %v3456_v36  ;;  %v3557_v38 = vsel %vm1904_vm11, %v3556_v54, %v3555_v32  ;;  %v3558_v25 = vrot.slane %v3535_v34, 5 }
 0x56a   :  { %v5164_v37 = vadd.f32 -1.0, %v5751_v31  ;;  %v3560_v0 = vrot.slane %v3536_v20, 4 }
 0x56b   :  { %v3537_v16 = vunpack.c.l.b16 %v3472_v35 }
 0x56c   :  { %v3458_v49 = vsel %vm3394_vm2, %v3378_v23, %v5164_v37  ;;  %v3559_v23 = vsel %vm1907_vm13, %v3558_v25, %v3557_v38 }
 0x56d   :  { %v3474_v47 = vpack.c.bf16 %v3458_v49, %v3458_v49  ;;  %v3561_v7 = vsel %vm1910_vm14, %v3560_v0, %v3559_v23  ;;  %v3562_v60 = vrot.slane %v3537_v16, 3 }
 0x56f   :  { %v3539_v56 = vunpack.c.l.b16 %v3474_v47  ;;  %v3563_v40 = vsel %vm1913_vm1, %v3562_v60, %v3561_v7 }
 0x571   :  { %v3566_v59 = vrot.slane %v3539_v56, 1 }
 0x573   :  { %v5753_v41 = vpop.eup %5752 }
 0x574   :  { %v5163_v10 = vadd.f32 -1.0, %v5753_v41 }
 0x576   :  { %v3457_v26 = vsel %vm3393_vm10, %v3377_v33, %v5163_v10 }
 0x577   :  { %v3473_v61 = vpack.c.bf16 %v3457_v26, %v3457_v26 }
 0x579   :  { %v3538_v22 = vunpack.c.l.b16 %v3473_v61 }
 0x57b   :  { %v3564_v52 = vrot.slane %v3538_v22, 2 }
 0x57d   :  { %v3565_v12 = vsel %vm1916_vm3, %v3564_v52, %v3563_v40 }
 0x57e   :  { %v3567_v45 = vsel %vm1919_vm4, %v3566_v59, %v3565_v12 }
 0x57f   :  { %v3568_v33 = vpack.c.b16 %v3567_v45, %v7624_v42  ;;  %v5494_v42 = vld [vmem:[#allocation12 + $0x8] sm:$0xff]  }
 0x581   :  { %5177 = vmatmul.mubr.msk.bf16.vlgmr.msra.gmra.mxu0 %vm626_vm6, %v3568_v33 }
 0x582   :  { %5373 = vmatpush3.bf16.msra.mxu0 %v5490_v17  ;;  %5380 = vmatprep.mubr.msk.bf16.mxu0 %vm8352_vm12, %v8305_v3 }
 0x583   :  { %5374 = vmatprep.subr.bf16.mxu0 %v8305_v3 }
 0x586   :  { %5375 = vmatpush3.bf16.msra.mxu0 %v5491_v51 }
 0x587   :  { %5376 = vmatprep.subr.bf16.mxu0 %v8305_v3 }
 0x58a   :  { %5377 = vmatpush3.bf16.msra.mxu0 %v5492_v53 }
 0x58b   :  { %5378 = vmatprep.subr.bf16.mxu0 %v8305_v3 }
 0x58e   :  { %5379 = vmatpush3.bf16.msra.mxu0 %v5493_v4 }
 0x58f   :  { %5384 = vmatprep.subr.bf16.mxu0 %v5494_v42 }
 0x591   :  { %5381 = vmatmul.mubr.msk.bf16.vlgmr.msra.gmra.mxu0 %vm626_vm6, %v3568_v33  ;;  %vm4060_vm6 = vcmask 261120  }
 0x592   :  { %5385 = vmatpush3.bf16.msra.mxu0 %v5494_v42 }
 0x593   :  { %5386 = vmatprep.subr.bf16.mxu0 %v5495_v27 }
 0x596   :  { %5387 = vmatpush3.bf16.msra.mxu0 %v5495_v27 }
 0x641   :  { %v3670_v57 = vpop.f32.mrf.mxu0 }
 0x642   :  { %v7669_v14 = vadd.f32 %v3670_v57, %v3496_v44 }
 0x643   :  { %v3672_v30 = vpop.f32.mrf.mxu0 }
 0x644   :  { %v3673_v50 = vadd.f32 %v3672_v30, %v3500_v39 }
 0x645   :  { %v3674_v9 = vpop.f32.mrf.mxu0 }
 0x646   :  { %v3729_v48 = vrot.slane %v3673_v50, %v8324_v63  ;;  %v3722_v11 = vcombine.high %v3673_v50, %v3673_v50  ;;  %v7672_v49 = vadd.f32 %v3674_v9, %v3496_v44 }
 0x647   :  { %v3676_v58 = vpop.f32.mrf.mxu0 }
 0x648   :  { %v3737_v31 = vcombine.high %v3729_v48, %v3729_v48  ;;  %v3745_v55 = vrot.slane %v3729_v48, %v8324_v63  ;;  %v3736_v37 = vrot.slane %v3722_v11, %v8324_v63  ;;  %v7685_v7 = vadd.f32 %v3676_v58, %v3500_v39 }
 0x64a   :  { %v3759_v18 = vrot.slane %v3737_v31, %v8324_v63  ;;  %v3823_v15 = vrot.slane %v3745_v55, %v8325_v19  ;;  %v3767_v8 = vcombine.high %v3745_v55, %v3745_v55  ;;  %v3752_v28 = vrot.slane %v3736_v37, %v8324_v63 }
 0x64b   :  { %v3738_v32 = vcombine.high %v3736_v37, %v3736_v37  ;;  %v3778_v50 = vrot.slane %v7685_v7, %v8324_v63 }
 0x64c   :  { %v3827_v62 = vrot.slane %v3759_v18, %v8325_v19  ;;  %v3769_v54 = vcombine.high %v3759_v18, %v3759_v18  ;;  %v3900_v35 = vadd.f32 %v3823_v15, %v7669_v14  ;;  %v3831_v34 = vrot.slane %v3767_v8, %v8325_v19 }
 0x64d   :  { %v3839_v38 = vrot.slane %v3752_v28, %v8325_v19  ;;  %v3901_v0 = vadd.f32 %v3823_v15, %v7672_v49  ;;  %v3766_v60 = vrot.slane %v3738_v32, %v8324_v63  ;;  %v3768_v52 = vcombine.high %v3752_v28, %v3752_v28 }
 0x64e   :  { %v3902_v41 = vadd.f32 %v3827_v62, %v7669_v14  ;;  %v3903_v10 = vadd.f32 %v3827_v62, %v7672_v49  ;;  %v3835_v16 = vrot.slane %v3769_v54, %v8325_v19  ;;  %v3964_v25 = vmul.f32 0.2, %v3900_v35 }
 0x64f   :  { %v3904_v61 = vadd.f32 %v3831_v34, %v7669_v14  ;;  %vm3932_vm0 = vcmp.gt.f32.partialorder %v3900_v35, 0.0  ;;  %v3905_v22 = vadd.f32 %v3831_v34, %v7672_v49  ;;  %v3908_v40 = vadd.f32 %v3839_v38, %v7669_v14 }
 0x650   :  { %v3966_v56 = vmul.f32 0.2, %v3902_v41  ;;  %v3967_v23 = vmul.f32 0.2, %v3903_v10  ;;  %vm3934_vm5 = vcmp.gt.f32.partialorder %v3902_v41, 0.0  ;;  %vm3935_vm7 = vcmp.gt.f32.partialorder %v3903_v10, 0.0 }
 0x651   :  { %v7667_v36 = vpop.f32.mrf.mxu0  ;;  %vm3933_vm8 = vcmp.gt.f32.partialorder %v3901_v0, 0.0  ;;  %v3906_v59 = vadd.f32 %v3835_v16, %v7669_v14  ;;  %v3907_v12 = vadd.f32 %v3835_v16, %v7672_v49  ;;  %v3965_v45 = vmul.f32 0.2, %v3901_v0 }
 0x652   :  { %v3996_v17 = vsel %vm3932_vm0, %v3900_v35, %v3964_v25  ;;  %v3909_v33 = vadd.f32 %v3839_v38, %v7672_v49  ;;  %v3998_v51 = vsel %vm3934_vm5, %v3902_v41, %v3966_v56  ;;  %v3999_v53 = vsel %vm3935_vm7, %v3903_v10, %v3967_v23 }
 0x653   :  { %v5382_v20 = vpop.f32.mrf.mxu0  ;;  %vm3936_vm9 = vcmp.gt.f32.partialorder %v3904_v61, 0.0  ;;  %v3997_v4 = vsel %vm3933_vm8, %v3901_v0, %v3965_v45  ;;  %v4029_v42 = vpack.c.bf16 %v3999_v53, %v3998_v51  ;;  %vm3937_vm2 = vcmp.gt.f32.partialorder %v3905_v22, 0.0 }
 0x654   :  { %v3968_v27 = vmul.f32 0.2, %v3904_v61  ;;  %v4028_v21 = vpack.c.bf16 %v3997_v4, %v3996_v17  ;;  %v3969_v39 = vmul.f32 0.2, %v3905_v22  ;;  %v3843_v57 = vrot.slane %v3766_v60, %v8325_v19 }
 0x655   :  { %v7678_v47 = vpop.f32.mrf.mxu0  ;;  %v3847_v30 = vrot.slane %v3768_v52, %v8325_v19  ;;  %vm3938_vm10 = vcmp.gt.f32.partialorder %v3906_v59, 0.0  ;;  %v3970_v11 = vmul.f32 0.2, %v3906_v59  ;;  %v3971_v9 = vmul.f32 0.2, %v3907_v12 }
 0x656   :  { %v4000_v48 = vsel %vm3936_vm9, %v3904_v61, %v3968_v27  ;;  %5388 = vmatprep.mubr.msk.bf16.mxu0 %vm4060_vm6, %v4028_v21  ;;  %v4001_v31 = vsel %vm3937_vm2, %v3905_v22, %v3969_v39  ;;  %vm3939_vm12 = vcmp.gt.f32.partialorder %v3907_v12, 0.0  ;;  %v3972_v18 = vmul.f32 0.2, %v3908_v40 }
 0x657   :  { %v5383_v26 = vpop.f32.mrf.mxu0  ;;  %5389 = vmatmul.mubr.msk.bf16.vlgmr.msra.gmra.mxu0 %vm4060_vm6, %v4029_v42  ;;  %v4030_v55 = vpack.c.bf16 %v4001_v31, %v4000_v48  ;;  %v3973_v44 = vmul.f32 0.2, %v3909_v33  ;;  %vm3940_vm0 = vcmp.gt.f32.partialorder %v3908_v40, 0.0  ;;  %vm3941_vm5 = vcmp.gt.f32.partialorder %v3909_v33, 0.0 }
 0x658   :  { %v3770_v37 = vcombine.high %v3766_v60, %v3766_v60  ;;  %v3910_v58 = vadd.f32 %v3843_v57, %v7669_v14  ;;  %v3911_v15 = vadd.f32 %v3843_v57, %v7672_v49  ;;  %v3794_v8 = vrot.slane %v3778_v50, %v8324_v63 }
 0x659   :  { %5392 = vmatprep.mubr.msk.bf16.mxu0 %vm4060_vm6, %v4030_v55  ;;  %v4002_v62 = vsel %vm3938_vm10, %v3906_v59, %v3970_v11  ;;  %v4003_v28 = vsel %vm3939_vm12, %v3907_v12, %v3971_v9  ;;  %v3912_v20 = vadd.f32 %v3847_v30, %v7669_v14  ;;  %v3913_v54 = vadd.f32 %v3847_v30, %v7672_v49 }
 0x65a   :  { %v4004_v35 = vsel %vm3940_vm0, %v3908_v40, %v3972_v18  ;;  %v4005_v34 = vsel %vm3941_vm5, %v3909_v33, %v3973_v44  ;;  %v3851_v41 = vrot.slane %v3770_v37, %v8325_v19  ;;  %v3786_v10 = vcombine.high %v3778_v50, %v3778_v50 }
 0x65b   :  { %v4031_v32 = vpack.c.bf16 %v4003_v28, %v4002_v62  ;;  %v3855_v38 = vrot.slane %v3794_v8, %v8325_v19  ;;  %v4032_v0 = vpack.c.bf16 %v4005_v34, %v4004_v35  ;;  %v3974_v26 = vmul.f32 0.2, %v3910_v58 }
 0x65c   :  { %v3975_v16 = vmul.f32 0.2, %v3911_v15  ;;  %vm3942_vm7 = vcmp.gt.f32.partialorder %v3910_v58, 0.0  ;;  %vm3943_vm8 = vcmp.gt.f32.partialorder %v3911_v15, 0.0  ;;  %v3976_v25 = vmul.f32 0.2, %v3912_v20 }
 0x65d   :  { %v3977_v61 = vmul.f32 0.2, %v3913_v54  ;;  %vm3944_vm9 = vcmp.gt.f32.partialorder %v3912_v20, 0.0  ;;  %vm3945_vm2 = vcmp.gt.f32.partialorder %v3913_v54, 0.0  ;;  %v3771_v56 = vcombine.high %v7685_v7, %v7685_v7 }
 0x65e   :  { %v3808_v23 = vrot.slane %v3786_v10, %v8324_v63  ;;  %v3816_v22 = vcombine.high %v3794_v8, %v3794_v8  ;;  %v4006_v60 = vsel %vm3942_vm7, %v3910_v58, %v3974_v26  ;;  %v4007_v52 = vsel %vm3943_vm8, %v3911_v15, %v3975_v16 }
 0x65f   :  { %5393 = vmatmul.mubr.msk.bf16.gmra.mxu0 %vm4060_vm6, %v4031_v32  ;;  %v3914_v40 = vadd.f32 %v3851_v41, %v7669_v14  ;;  %v3915_v59 = vadd.f32 %v3851_v41, %v7672_v49  ;;  %v3916_v12 = vadd.f32 %v3855_v38, %v7669_v14  ;;  %v3917_v45 = vadd.f32 %v3855_v38, %v7672_v49 }
 0x660   :  { %5396 = vmatprep.mubr.msk.bf16.mxu0 %vm4060_vm6, %v4032_v0  ;;  %v4008_v17 = vsel %vm3944_vm9, %v3912_v20, %v3976_v25  ;;  %v4009_v33 = vsel %vm3945_vm2, %v3913_v54, %v3977_v61  ;;  %v3785_v51 = vrot.slane %v3771_v56, %v8324_v63  ;;  %v3859_v53 = vrot.slane %v3808_v23, %v8325_v19 }
 0x661   :  { %v4033_v7 = vpack.c.bf16 %v4007_v52, %v4006_v60  ;;  %v3863_v4 = vrot.slane %v3816_v22, %v8325_v19  ;;  %v4034_v42 = vpack.c.bf16 %v4009_v33, %v4008_v17  ;;  %v3978_v27 = vmul.f32 0.2, %v3914_v40 }
 0x662   :  { %v3979_v21 = vmul.f32 0.2, %v3915_v59  ;;  %vm3946_vm10 = vcmp.gt.f32.partialorder %v3914_v40, 0.0  ;;  %vm3947_vm12 = vcmp.gt.f32.partialorder %v3915_v59, 0.0  ;;  %v3980_v39 = vmul.f32 0.2, %v3916_v12 }
 0x663   :  { %v3981_v57 = vmul.f32 0.2, %v3917_v45  ;;  %vm3948_vm0 = vcmp.gt.f32.partialorder %v3916_v12, 0.0  ;;  %vm3949_vm5 = vcmp.gt.f32.partialorder %v3917_v45, 0.0  ;;  %v3801_v30 = vrot.slane %v3785_v51, %v8324_v63 }
 0x664   :  { %v3818_v50 = vcombine.high %v3808_v23, %v3808_v23  ;;  %v3918_v48 = vadd.f32 %v3859_v53, %v7669_v14  ;;  %v3919_v31 = vadd.f32 %v3859_v53, %v7672_v49  ;;  %v4010_v11 = vsel %vm3946_vm10, %v3914_v40, %v3978_v27 }
 0x665   :  { %v4011_v9 = vsel %vm3947_vm12, %v3915_v59, %v3979_v21  ;;  %v3920_v55 = vadd.f32 %v3863_v4, %v7669_v14  ;;  %v3921_v18 = vadd.f32 %v3863_v4, %v7672_v49  ;;  %v4012_v44 = vsel %vm3948_vm0, %v3916_v12, %v3980_v39 }
 0x666   :  { %v4013_v37 = vsel %vm3949_vm5, %v3917_v45, %v3981_v57  ;;  %v3787_v58 = vcombine.high %v3785_v51, %v3785_v51  ;;  %v3871_v15 = vrot.slane %v3801_v30, %v8325_v19  ;;  %v4035_v8 = vpack.c.bf16 %v4011_v9, %v4010_v11 }
 0x667   :  { %5397 = vmatmul.mubr.msk.bf16.gmra.mxu0 %vm4060_vm6, %v4033_v7  ;;  %v3867_v62 = vrot.slane %v3818_v50, %v8325_v19  ;;  %v4036_v28 = vpack.c.bf16 %v4013_v37, %v4012_v44  ;;  %v3982_v20 = vmul.f32 0.2, %v3918_v48  ;;  %v3983_v54 = vmul.f32 0.2, %v3919_v31 }
 0x668   :  { %5400 = vmatprep.mubr.msk.bf16.mxu0 %vm4060_vm6, %v4034_v42  ;;  %vm3950_vm7 = vcmp.gt.f32.partialorder %v3918_v48, 0.0  ;;  %vm3951_vm8 = vcmp.gt.f32.partialorder %v3919_v31, 0.0  ;;  %v3984_v35 = vmul.f32 0.2, %v3920_v55  ;;  %v3985_v34 = vmul.f32 0.2, %v3921_v18 }
 0x669   :  { %vm3952_vm9 = vcmp.gt.f32.partialorder %v3920_v55, 0.0  ;;  %vm3953_vm2 = vcmp.gt.f32.partialorder %v3921_v18, 0.0  ;;  %v3815_v41 = vrot.slane %v3787_v58, %v8324_v63  ;;  %v3817_v10 = vcombine.high %v3801_v30, %v3801_v30 }
 0x66a   :  { %v3922_v32 = vadd.f32 %v3867_v62, %v7669_v14  ;;  %v3923_v38 = vadd.f32 %v3867_v62, %v7672_v49  ;;  %v4014_v0 = vsel %vm3950_vm7, %v3918_v48, %v3982_v20  ;;  %v4015_v26 = vsel %vm3951_vm8, %v3919_v31, %v3983_v54 }
 0x66b   :  { %v3924_v16 = vadd.f32 %v3871_v15, %v7669_v14  ;;  %v3925_v25 = vadd.f32 %v3871_v15, %v7672_v49  ;;  %v4016_v61 = vsel %vm3952_vm9, %v3920_v55, %v3984_v35  ;;  %v4017_v56 = vsel %vm3953_vm2, %v3921_v18, %v3985_v34 }
 0x66c   :  { %v3875_v23 = vrot.slane %v3815_v41, %v8325_v19  ;;  %v4037_v22 = vpack.c.bf16 %v4015_v26, %v4014_v0  ;;  %v3879_v60 = vrot.slane %v3817_v10, %v8325_v19  ;;  %v4038_v52 = vpack.c.bf16 %v4017_v56, %v4016_v61 }
 0x66d   :  { %v3986_v63 = vmul.f32 0.2, %v3922_v32  ;;  %v3987_v40 = vmul.f32 0.2, %v3923_v38  ;;  %vm3954_vm10 = vcmp.gt.f32.partialorder %v3922_v32, 0.0  ;;  %vm3955_vm12 = vcmp.gt.f32.partialorder %v3923_v38, 0.0 }
 0x66e   :  { %v3988_v59 = vmul.f32 0.2, %v3924_v16  ;;  %v3989_v12 = vmul.f32 0.2, %v3925_v25  ;;  %vm3956_vm0 = vcmp.gt.f32.partialorder %v3924_v16, 0.0  ;;  %vm3957_vm5 = vcmp.gt.f32.partialorder %v3925_v25, 0.0 }
 0x66f   :  { %5401 = vmatmul.mubr.msk.bf16.gmra.mxu0 %vm4060_vm6, %v4035_v8  ;;  %v3819_v45 = vcombine.high %v3815_v41, %v3815_v41  ;;  %v3926_v17 = vadd.f32 %v3875_v23, %v7669_v14  ;;  %v3927_v33 = vadd.f32 %v3875_v23, %v7672_v49  ;;  %v4018_v51 = vsel %vm3954_vm10, %v3922_v32, %v3986_v63 }
 0x670   :  { %5404 = vmatprep.mubr.msk.bf16.mxu0 %vm4060_vm6, %v4036_v28  ;;  %v4019_v53 = vsel %vm3955_vm12, %v3923_v38, %v3987_v40  ;;  %v3928_v7 = vadd.f32 %v3879_v60, %v7669_v14  ;;  %v3929_v4 = vadd.f32 %v3879_v60, %v7672_v49  ;;  %v4020_v42 = vsel %vm3956_vm0, %v3924_v16, %v3988_v59 }
 0x671   :  { %v4021_v27 = vsel %vm3957_vm5, %v3925_v25, %v3989_v12  ;;  %v4039_v21 = vpack.c.bf16 %v4019_v53, %v4018_v51  ;;  %v3883_v39 = vrot.slane %v3819_v45, %v8325_v19  ;;  %v3990_v30 = vmul.f32 0.2, %v3926_v17 }
 0x672   :  { %v4040_v57 = vpack.c.bf16 %v4021_v27, %v4020_v42  ;;  %v3991_v50 = vmul.f32 0.2, %v3927_v33  ;;  %vm3958_vm7 = vcmp.gt.f32.partialorder %v3926_v17, 0.0  ;;  %vm3959_vm8 = vcmp.gt.f32.partialorder %v3927_v33, 0.0 }
 0x673   :  { %v3992_v48 = vmul.f32 0.2, %v3928_v7  ;;  %v3993_v31 = vmul.f32 0.2, %v3929_v4  ;;  %vm3960_vm9 = vcmp.gt.f32.partialorder %v3928_v7, 0.0  ;;  %vm3961_vm2 = vcmp.gt.f32.partialorder %v3929_v4, 0.0 }
 0x674   :  { %v4022_v11 = vsel %vm3958_vm7, %v3926_v17, %v3990_v30  ;;  %v4023_v9 = vsel %vm3959_vm8, %v3927_v33, %v3991_v50  ;;  %v3930_v55 = vadd.f32 %v3883_v39, %v7669_v14  ;;  %v3931_v18 = vadd.f32 %v3883_v39, %v7672_v49 }
 0x675   :  { %v4024_v19 = vsel %vm3960_vm9, %v3928_v7, %v3992_v48  ;;  %v4025_v44 = vsel %vm3961_vm2, %v3929_v4, %v3993_v31  ;;  %v4041_v37 = vpack.c.bf16 %v4023_v9, %v4022_v11 }
 0x676   :  { %v4042_v58 = vpack.c.bf16 %v4025_v44, %v4024_v19  ;;  %v3994_v15 = vmul.f32 0.2, %v3930_v55  ;;  %v3995_v8 = vmul.f32 0.2, %v3931_v18  ;;  %vm3962_vm10 = vcmp.gt.f32.partialorder %v3930_v55, 0.0 }
 0x677   :  { %5405 = vmatmul.mubr.msk.bf16.gmra.mxu0 %vm4060_vm6, %v4037_v22  ;;  %vm3963_vm12 = vcmp.gt.f32.partialorder %v3931_v18, 0.0 }
 0x678   :  { %5408 = vmatprep.mubr.msk.bf16.mxu0 %vm4060_vm6, %v4038_v52  ;;  %v4026_v62 = vsel %vm3962_vm10, %v3930_v55, %v3994_v15  ;;  %v4027_v28 = vsel %vm3963_vm12, %v3931_v18, %v3995_v8 }
 0x679   :  { %v4043_v20 = vpack.c.bf16 %v4027_v28, %v4026_v62 }
 0x67f   :  { %5409 = vmatmul.mubr.msk.bf16.gmra.mxu0 %vm4060_vm6, %v4039_v21 }
 0x680   :  { %5412 = vmatprep.mubr.msk.bf16.mxu0 %vm4060_vm6, %v4040_v57 }
 0x687   :  { %5413 = vmatmul.mubr.msk.bf16.gmra.mxu0 %vm4060_vm6, %v4041_v37 }
 0x688   :  { %5416 = vmatprep.mubr.msk.bf16.mxu0 %vm4060_vm6, %v4042_v58 }
 0x68f   :  { %5417 = vmatmul.mubr.msk.bf16.gmra.mxu0 %vm4060_vm6, %v4043_v20 }
 0x717   :  { %v5390_v54 = vpop.f32.mrf.mxu0 }
 0x718   :  { %v4279_v41 = vsel %vm4060_vm6, %v5390_v54, -inf }
 0x719   :  { %v4143_v35 = vpop.f32.mrf.mxu0 }
 0x71a   :  { %v4270_v0 = vsel %vm4060_vm6, %v4143_v35, -inf }
 0x71b   :  { %v5391_v34 = vpop.f32.mrf.mxu0 }
 0x71c   :  { %v4280_v10 = vsel %vm4060_vm6, %v5391_v34, -inf }
 0x71d   :  { %v4281_v32 = vmax.f32 %v4279_v41, %v4280_v10  ;;  %v4146_v38 = vpop.f32.mrf.mxu0 }
 0x71e   :  { %v4271_v26 = vsel %vm4060_vm6, %v4146_v38, -inf }
 0x71f   :  { %v4282_v16 = vrot.slane %v4281_v32, 4  ;;  %v4272_v25 = vmax.f32 %v4270_v0, %v4271_v26  ;;  %v7754_v61 = vpop.f32.mrf.mxu0 }
 0x720   :  { %v4297_v40 = vsel %vm4060_vm6, %v7754_v61, -inf }
 0x721   :  { %v4283_v56 = vmax.f32 %v4281_v32, %v4282_v16  ;;  %v4273_v23 = vrot.slane %v4272_v25, 4  ;;  %v7756_v22 = vpop.f32.mrf.mxu0 }
 0x722   :  { %v4288_v51 = vsel %vm4060_vm6, %v7756_v22, -inf }
 0x723   :  { %v4284_v60 = vrot.slane %v4283_v56, 2  ;;  %v4274_v52 = vmax.f32 %v4272_v25, %v4273_v23  ;;  %v7758_v63 = vpop.f32.mrf.mxu0 }
 0x724   :  { %v4298_v59 = vsel %vm4060_vm6, %v7758_v63, -inf }
 0x725   :  { %v4285_v12 = vmax.f32 %v4283_v56, %v4284_v60  ;;  %v4275_v45 = vrot.slane %v4274_v52, 2  ;;  %v4299_v17 = vmax.f32 %v4297_v40, %v4298_v59  ;;  %v7764_v33 = vpop.f32.mrf.mxu0 }
 0x726   :  { %v4289_v53 = vsel %vm4060_vm6, %v7764_v33, -inf }
 0x727   :  { %v4286_v7 = vrot.slane %v4285_v12, 1  ;;  %v4276_v4 = vmax.f32 %v4274_v52, %v4275_v45  ;;  %v4300_v42 = vrot.slane %v4299_v17, 4  ;;  %v4290_v27 = vmax.f32 %v4288_v51, %v4289_v53  ;;  %v7770_v21 = vpop.f32.mrf.mxu0 }
 0x729   :  { %v4287_v39 = vmax.f32 %v4285_v12, %v4286_v7  ;;  %v4277_v57 = vrot.slane %v4276_v4, 1  ;;  %v4301_v30 = vmax.f32 %v4299_v17, %v4300_v42  ;;  %v4291_v50 = vrot.slane %v4290_v27, 4  ;;  %v7772_v48 = vpop.f32.mrf.mxu0  ;;  %v8353_v42 = vld [vmem:[#allocation30_spill] sm:$0xff] }
 0x72a   :  { %v4306_v12 = vsel %vm4060_vm6, %v7772_v48, -inf }
 0x72b   :  { %v4416_v31 = vsub.f32 %v5390_v54, %v4287_v39  ;;  %v4417_v11 = vsub.f32 %v5391_v34, %v4287_v39  ;;  %v4278_v9 = vmax.f32 %v4276_v4, %v4277_v57  ;;  %v4302_v55 = vrot.slane %v4301_v30, 2  ;;  %v7774_v19 = vpop.f32.mrf.mxu0 }
 0x72c   :  { %v4292_v18 = vmax.f32 %v4290_v27, %v4291_v50  ;;  %v4316_v20 = vsel %vm4060_vm6, %v7774_v19, -inf  ;;  %v4315_v54 = vsel %vm4060_vm6, %v7770_v21, -inf }
 0x72d   :  { %v4450_v44 = vmul.f32 1.442695, %v4416_v31  ;;  %v4452_v37 = vmul.f32 1.442695, %v4417_v11  ;;  %v4414_v58 = vsub.f32 %v4143_v35, %v4278_v9  ;;  %v4415_v15 = vsub.f32 %v4146_v38, %v4278_v9  ;;  %v7780_v26 = vpop.f32.mrf.mxu0 }
 0x72e   :  { %v4303_v8 = vmax.f32 %v4301_v30, %v4302_v55  ;;  %v4293_v41 = vrot.slane %v4292_v18, 2  ;;  %v4317_v10 = vmax.f32 %v4315_v54, %v4316_v20  ;;  %v4307_v23 = vsel %vm4060_vm6, %v7780_v26, -inf  ;;  %v8354_v30 = vld [vmem:[#allocation29_spill] sm:$0xff] }
 0x72f   :  { %5754 = vpow2.f32 %v4450_v44  ;;  %v4446_v62 = vmul.f32 1.442695, %v4414_v58  ;;  %v4448_v28 = vmul.f32 1.442695, %v4415_v15 }
 0x730   :  { %5756 = vpow2.f32 %v4452_v37  ;;  %v4304_v34 = vrot.slane %v4303_v8, 1  ;;  %v4294_v32 = vmax.f32 %v4292_v18, %v4293_v41  ;;  %v4318_v35 = vrot.slane %v4317_v10, 4 }
 0x731   :  { %5758 = vpow2.f32 %v4446_v62 }
 0x732   :  { %5760 = vpow2.f32 %v4448_v28  ;;  %v4305_v0 = vmax.f32 %v4303_v8, %v4304_v34  ;;  %v4295_v38 = vrot.slane %v4294_v32, 1  ;;  %v4319_v25 = vmax.f32 %v4317_v10, %v4318_v35 }
 0x734   :  { %v4420_v16 = vsub.f32 %v7754_v61, %v4305_v0  ;;  %v4421_v56 = vsub.f32 %v7758_v63, %v4305_v0  ;;  %v4296_v52 = vmax.f32 %v4294_v32, %v4295_v38  ;;  %v4320_v53 = vrot.slane %v4319_v25, 2 }
 0x735   :  { %v4308_v61 = vmax.f32 %v4306_v12, %v4307_v23 }
 0x736   :  { %v4458_v51 = vmul.f32 1.442695, %v4420_v16  ;;  %v4460_v39 = vmul.f32 1.442695, %v4421_v56  ;;  %v4418_v31 = vsub.f32 %v7756_v22, %v4296_v52  ;;  %v4419_v15 = vsub.f32 %v7764_v33, %v4296_v52 }
 0x737   :  { %v4309_v41 = vrot.slane %v4308_v61, 4  ;;  %v4321_v38 = vmax.f32 %v4319_v25, %v4320_v53 }
 0x738   :  { %v4454_v0 = vmul.f32 1.442695, %v4418_v31  ;;  %5762 = vpow2.f32 %v4458_v51  ;;  %v4456_v35 = vmul.f32 1.442695, %v4419_v15 }
 0x739   :  { %5764 = vpow2.f32 %v4460_v39  ;;  %v4310_v33 = vmax.f32 %v4308_v61, %v4309_v41 }
 0x73a   :  { %5766 = vpow2.f32 %v4454_v0 }
 0x73b   :  { %5768 = vpow2.f32 %v4456_v35  ;;  %v8356_v35 = vld [vmem:[#allocation32_spill] sm:$0xff] }
 0x73c   :  { %v5755_v60 = vpop.eup %5754 }
 0x73d   :  { %v5757_v40 = vpop.eup %5756  ;;  %v4512_v59 = vmul.f32 %v5755_v60, %v8326_v5 }
 0x73e   :  { %v5759_v45 = vpop.eup %5758  ;;  %v4513_v17 = vmul.f32 %v5757_v40, %v8327_v2  ;;  %v7797_v2 = vpop.f32.mrf.mxu0 }
 0x73f   :  { %v5761_v7 = vpop.eup %5760  ;;  %v4551_v63 = vsel %vm4060_vm6, %v4512_v59, 0.0  ;;  %v4720_v4 = vmul.f32 %v4512_v59, %v7669_v14  ;;  %v4510_v27 = vmul.f32 %v5759_v45, %v8353_v42  ;;  %v4322_v59 = vrot.slane %v4321_v38, 1 }
 0x740   :  { %v4552_v57 = vsel %vm4060_vm6, %v4513_v17, 0.0  ;;  %v4721_v5 = vmul.f32 %v4513_v17, %v7672_v49  ;;  %v4511_v50 = vmul.f32 %v5761_v7, %v8354_v30  ;;  %v7808_v54 = vpop.f32.mrf.mxu0  ;;  %v4311_v7 = vrot.slane %v4310_v33, 2 }
 0x741   :  { %v4553_v11 = vadd.f32 %v4552_v57, %v4551_v63  ;;  %v4759_v9 = vsel %vm4060_vm6, %v4720_v4, 0.0  ;;  %v4542_v55 = vsel %vm4060_vm6, %v4510_v27, 0.0  ;;  %v4718_v18 = vmul.f32 %v4510_v27, %v7669_v14 }
 0x742   :  { %v4760_v44 = vsel %vm4060_vm6, %v4721_v5, 0.0  ;;  %v4543_v37 = vsel %vm4060_vm6, %v4511_v50, 0.0  ;;  %v4719_v58 = vmul.f32 %v4511_v50, %v7672_v49  ;;  %v7810_v23 = vpop.f32.mrf.mxu0  ;;  %v4323_v4 = vmax.f32 %v4321_v38, %v4322_v59  ;;  %v8358_v59 = vld [vmem:[#allocation25_spill] sm:$0xff] }
 0x743   :  { %v4554_v8 = vrot.slane %v4553_v11, 4  ;;  %v4761_v62 = vadd.f32 %v4760_v44, %v4759_v9  ;;  %v4544_v22 = vadd.f32 %v4543_v37, %v4542_v55  ;;  %v4750_v28 = vsel %vm4060_vm6, %v4718_v18, 0.0 }
 0x744   :  { %v4751_v20 = vsel %vm4060_vm6, %v4719_v58, 0.0  ;;  %v7812_v63 = vpop.f32.mrf.mxu0  ;;  %v4334_v27 = vsel %vm4060_vm6, %v7810_v23, -inf  ;;  %v4312_v57 = vmax.f32 %v4310_v33, %v4311_v7  ;;  %v4333_v5 = vsel %vm4060_vm6, %v7797_v2, -inf }
 0x745   :  { %v4555_v34 = vadd.f32 %v4554_v8, %v4553_v11  ;;  %v4545_v10 = vrot.slane %v4544_v22, 4  ;;  %v4752_v32 = vadd.f32 %v4751_v20, %v4750_v28  ;;  %v4762_v52 = vrot.slane %v4761_v62, 4  ;;  %v5763_v18 = vpop.eup %5762 }
 0x746   :  { %v7818_v30 = vpop.f32.mrf.mxu0  ;;  %v4325_v31 = vsel %vm4060_vm6, %v7812_v63, -inf  ;;  %v4424_v9 = vsub.f32 %v7770_v21, %v4323_v4  ;;  %v4335_v55 = vmax.f32 %v4333_v5, %v4334_v27  ;;  %v4425_v37 = vsub.f32 %v7774_v19, %v4323_v4  ;;  %v5765_v15 = vpop.eup %5764 }
 0x747   :  { %v4556_v16 = vrot.slane %v4555_v34, 2  ;;  %v4546_v56 = vadd.f32 %v4545_v10, %v4544_v22  ;;  %v4753_v17 = vrot.slane %v4752_v32, 4  ;;  %v4763_v25 = vadd.f32 %v4762_v52, %v4761_v62  ;;  %v5767_v20 = vpop.eup %5766  ;;  %v8357_v52 = vld [vmem:[#allocation26_spill] sm:$0xff] }
 0x748   :  { %v4324_v58 = vsel %vm4060_vm6, %v7808_v54, -inf  ;;  %v4313_v8 = vrot.slane %v4312_v57, 1  ;;  %v7826_v22 = vpop.f32.mrf.mxu0  ;;  %v4466_v41 = vmul.f32 1.442695, %v4424_v9  ;;  %v5769_v10 = vpop.eup %5768  ;;  %v4517_v38 = vmul.f32 %v5765_v15, %v8356_v35  ;;  %v5497_v15 = vld [vmem:[%s8213_s14] sm:$0xff]  }
 0x749   :  { %v4557_v60 = vadd.f32 %v4556_v16, %v4555_v34  ;;  %v4547_v40 = vrot.slane %v4546_v56, 2  ;;  %v4754_v42 = vadd.f32 %v4753_v17, %v4752_v32  ;;  %v4764_v50 = vrot.slane %v4763_v25, 2  ;;  %v8355_v32 = vld [vmem:[#allocation31_spill] sm:$0xff] }
 0x74a   :  { %v4326_v62 = vmax.f32 %v4324_v58, %v4325_v31  ;;  %v4336_v34 = vrot.slane %v4335_v55, 4  ;;  %v4516_v0 = vmul.f32 %v5763_v18, %v8355_v32  ;;  %v4468_v16 = vmul.f32 1.442695, %v4425_v37  ;;  %v7830_v33 = vpop.f32.mrf.mxu0  ;;  %v5496_v31 = vld [vmem:[%s8213_s14 + $0x8] sm:$0xff]  }
 0x74b   :  { %v4558_v12 = vrot.slane %v4557_v60, 1  ;;  %v4548_v45 = vadd.f32 %v4547_v40, %v4546_v56  ;;  %v4755_v44 = vrot.slane %v4754_v42, 2  ;;  %v4765_v28 = vadd.f32 %v4764_v50, %v4763_v25  ;;  %5421 = vmatpush3.bf16.msra.mxu1 %v5496_v31 }
 0x74c   :  { %v4314_v19 = vmax.f32 %v4312_v57, %v4313_v8  ;;  %v4327_v56 = vrot.slane %v4326_v62, 4  ;;  %v4514_v40 = vmul.f32 %v5767_v20, %v8357_v52  ;;  %v4569_v7 = vsel %vm4060_vm6, %v4516_v0, 0.0  ;;  %5422 = vmatprep.subr.bf16.mxu1 %v8305_v3 }
 0x74d   :  { %v4559_v51 = vadd.f32 %v4558_v12, %v4557_v60  ;;  %v4549_v53 = vrot.slane %v4548_v45, 1  ;;  %v4756_v21 = vadd.f32 %v4755_v44, %v4754_v42  ;;  %v4766_v60 = vrot.slane %v4765_v28, 1 }
 0x74e   :  { %v4515_v12 = vmul.f32 %v5769_v10, %v8358_v59  ;;  %v4422_v25 = vsub.f32 %v7772_v48, %v4314_v19  ;;  %v4328_v4 = vmax.f32 %v4326_v62, %v4327_v56  ;;  %v4560_v57 = vsel %vm4060_vm6, %v4514_v40, 0.0 }
 0x74f   :  { %vm4687_vm0 = vcmp.eq.f32.partialorder %v4559_v51, 0.0  ;;  %v4550_v61 = vadd.f32 %v4549_v53, %v4548_v45  ;;  %v4337_v45 = vmax.f32 %v4335_v55, %v4336_v34  ;;  %v4757_v17 = vrot.slane %v4756_v21, 1  ;;  %5423 = vmatpush3.bf16.msra.mxu1 %v5497_v15 }
 0x750   :  { %v4703_v39 = vsel %vm4687_vm0, 1.0, %v4559_v51  ;;  %v4570_v51 = vsel %vm4060_vm6, %v4517_v38, 0.0  ;;  %v4423_v53 = vsub.f32 %v7780_v26, %v4314_v19  ;;  %v4767_v42 = vadd.f32 %v4766_v60, %v4765_v28 }
 0x751   :  { %5770 = vrcp.f32 %v4703_v39  ;;  %vm4686_vm5 = vcmp.eq.f32.partialorder %v4550_v61, 0.0  ;;  %v4571_v39 = vadd.f32 %v4570_v51, %v4569_v7  ;;  %v4561_v5 = vsel %vm4060_vm6, %v4515_v12, 0.0 }
 0x752   :  { %v4702_v11 = vsel %vm4686_vm5, 1.0, %v4550_v61  ;;  %v7838_v61 = vpop.f32.mrf.mxu0  ;;  %v4351_v50 = vsel %vm4060_vm6, %v7818_v30, -inf  ;;  %v4758_v26 = vadd.f32 %v4757_v17, %v4756_v21  ;;  %v4352_v9 = vsel %vm4060_vm6, %v7830_v33, -inf }
 0x753   :  { %5772 = vrcp.f32 %v4702_v11  ;;  %v4338_v11 = vrot.slane %v4337_v45, 2  ;;  %v4462_v18 = vmul.f32 1.442695, %v4422_v25  ;;  %v4464_v44 = vmul.f32 1.442695, %v4423_v53 }
 0x754   :  { %5774 = vpow2.f32 %v4466_v41  ;;  %v4329_v37 = vrot.slane %v4328_v4, 2  ;;  %v7851_v58 = vpop.f32.mrf.mxu0  ;;  %v4724_v62 = vmul.f32 %v4516_v0, %v7669_v14  ;;  %v4725_v28 = vmul.f32 %v4517_v38, %v7672_v49 }
 0x755   :  { %5776 = vpow2.f32 %v4468_v16  ;;  %v4562_v20 = vadd.f32 %v4561_v5, %v4560_v57  ;;  %v4572_v41 = vrot.slane %v4571_v39, 4  ;;  %v4353_v34 = vmax.f32 %v4351_v50, %v4352_v9  ;;  %v8360_v5 = vld [vmem:[#allocation40_spill] sm:$0xff] }
 0x756   :  { %v4339_v10 = vmax.f32 %v4337_v45, %v4338_v11  ;;  %5778 = vpow2.f32 %v4462_v18  ;;  %v4330_v21 = vmax.f32 %v4328_v4, %v4329_v37  ;;  %v7861_v32 = vpop.f32.mrf.mxu0  ;;  %v4777_v35 = vsel %vm4060_vm6, %v4724_v62, 0.0 }
 0x757   :  { %v4778_v16 = vsel %vm4060_vm6, %v4725_v28, 0.0  ;;  %v4563_v19 = vrot.slane %v4562_v20, 4  ;;  %5780 = vpow2.f32 %v4464_v44  ;;  %v4573_v0 = vadd.f32 %v4572_v41, %v4571_v39 }
 0x758   :  { %v4354_v56 = vrot.slane %v4353_v34, 4  ;;  %v4340_v60 = vrot.slane %v4339_v10, 1  ;;  %v4779_v3 = vadd.f32 %v4778_v16, %v4777_v35  ;;  %v4722_v59 = vmul.f32 %v4514_v40, %v7669_v14  ;;  %v7870_v7 = vpop.f32.mrf.mxu0 }
 0x759   :  { %v4342_v45 = vsel %vm4060_vm6, %v7826_v22, -inf  ;;  %v4343_v17 = vsel %vm4060_vm6, %v7838_v61, -inf  ;;  %v4564_v51 = vadd.f32 %v4563_v19, %v4562_v20  ;;  %v4723_v25 = vmul.f32 %v4515_v12, %v7672_v49 }
 0x75a   :  { %v4331_v53 = vrot.slane %v4330_v21, 1  ;;  %v4344_v4 = vmax.f32 %v4342_v45, %v4343_v17  ;;  %v4355_v57 = vmax.f32 %v4353_v34, %v4354_v56  ;;  %v4341_v40 = vmax.f32 %v4339_v10, %v4340_v60  ;;  %v7881_v28 = vpop.f32.mrf.mxu0 }
 0x75b   :  { %v4780_v11 = vrot.slane %v4779_v3, 4  ;;  %v4768_v9 = vsel %vm4060_vm6, %v4722_v59, 0.0  ;;  %v4769_v18 = vsel %vm4060_vm6, %v4723_v25, 0.0  ;;  %v4369_v44 = vsel %vm4060_vm6, %v7851_v58, -inf }
 0x75c   :  { %v4345_v31 = vrot.slane %v4344_v4, 4  ;;  %v4332_v12 = vmax.f32 %v4330_v21, %v4331_v53  ;;  %v4356_v15 = vrot.slane %v4355_v57, 2  ;;  %v4428_v34 = vsub.f32 %v7797_v2, %v4341_v40 }
 0x75d   :  { %v4781_v35 = vadd.f32 %v4780_v11, %v4779_v3  ;;  %v4770_v16 = vadd.f32 %v4769_v18, %v4768_v9  ;;  %v4429_v19 = vsub.f32 %v7810_v23, %v4341_v40  ;;  %v4361_v60 = vsel %vm4060_vm6, %v7881_v28, -inf }
 0x75e   :  { %v5771_v27 = vpop.eup %5770  ;;  %v4346_v10 = vmax.f32 %v4344_v4, %v4345_v31  ;;  %v4427_v45 = vsub.f32 %v7812_v63, %v4332_v12  ;;  %v4357_v17 = vmax.f32 %v4355_v57, %v4356_v15  ;;  %v4474_v3 = vmul.f32 1.442695, %v4428_v34 }
 0x75f   :  { %v7847_v48 = vmul.f32 %v5771_v27, %v4767_v42  ;;  %v4574_v42 = vrot.slane %v4573_v0, 2  ;;  %v8359_v27 = vld [vmem:[#allocation41_spill] sm:$0xff]  ;;  %v4360_v23 = vsel %vm4060_vm6, %v7861_v32, -inf }
 0x760   :  { %v5773_v55 = vpop.eup %5772  ;;  %v4347_v53 = vrot.slane %v4346_v10, 2  ;;  %v4472_v57 = vmul.f32 1.442695, %v4427_v45  ;;  %5782 = vpow2.f32 %v4474_v3 }
 0x761   :  { %v7856_v8 = vmul.f32 %v5773_v55, %v4758_v26  ;;  %v5775_v38 = vpop.eup %5774  ;;  %v4370_v26 = vsel %vm4060_vm6, %v7870_v7, -inf  ;;  %v4565_v55 = vrot.slane %v4564_v51, 2  ;;  %v4575_v37 = vadd.f32 %v4574_v42, %v4573_v0 }
 0x762   :  { %v5777_v52 = vpop.eup %5776  ;;  %v4520_v39 = vmul.f32 %v5775_v38, %v8359_v27  ;;  %v4371_v62 = vmax.f32 %v4369_v44, %v4370_v26  ;;  %v4426_v0 = vsub.f32 %v7808_v54, %v4332_v12  ;;  %v4476_v42 = vmul.f32 1.442695, %v4429_v19  ;;  %v7901_v19 = vpop.f32.mrf.mxu0 }
 0x763   :  { %v4521_v50 = vmul.f32 %v5777_v52, %v8360_v5  ;;  %v5779_v21 = vpop.eup %5778  ;;  %v4566_v56 = vadd.f32 %v4565_v55, %v4564_v51  ;;  %v4576_v25 = vrot.slane %v4575_v37, 1  ;;  %v4771_v51 = vrot.slane %v4770_v16, 4  ;;  %v8361_v5 = vld [vmem:[#allocation37_spill] sm:$0xff] }
 0x764   :  { %v4587_v20 = vsel %vm4060_vm6, %v4520_v39, 0.0  ;;  %v4728_v38 = vmul.f32 %v4520_v39, %v7669_v14  ;;  %v5781_v52 = vpop.eup %5780  ;;  %v4372_v2 = vrot.slane %v4371_v62, 4  ;;  %v4362_v54 = vmax.f32 %v4360_v23, %v4361_v60 }
 0x765   :  { %v4588_v41 = vsel %vm4060_vm6, %v4521_v50, 0.0  ;;  %v4729_v4 = vmul.f32 %v4521_v50, %v7672_v49  ;;  %v4567_v27 = vrot.slane %v4566_v56, 1  ;;  %v4518_v39 = vmul.f32 %v5779_v21, %v6658_v29 }
 0x766   :  { %v4589_v59 = vadd.f32 %v4588_v41, %v4587_v20  ;;  %v4519_v40 = vmul.f32 %v5781_v52, %v8361_v5  ;;  %v4470_v31 = vmul.f32 1.442695, %v4426_v0  ;;  %v4358_v26 = vrot.slane %v4357_v17, 1 }
 0x767   :  { %v4373_v11 = vmax.f32 %v4371_v62, %v4372_v2  ;;  %v4577_v9 = vadd.f32 %v4576_v25, %v4575_v37  ;;  %v4795_v55 = vsel %vm4060_vm6, %v4728_v38, 0.0  ;;  %v4348_v18 = vmax.f32 %v4346_v10, %v4347_v53  ;;  %v7906_v25 = vpop.f32.mrf.mxu0 }
 0x768   :  { %v4590_v63 = vrot.slane %v4589_v59, 4  ;;  %v4772_v12 = vadd.f32 %v4771_v51, %v4770_v16  ;;  %v4796_v50 = vsel %vm4060_vm6, %v4729_v4, 0.0  ;;  %5784 = vpow2.f32 %v4476_v42 }
 0x769   :  { %v4363_v44 = vrot.slane %v4362_v54, 4  ;;  %v4568_v15 = vadd.f32 %v4567_v27, %v4566_v56  ;;  %v4578_v29 = vsel %vm4060_vm6, %v4518_v39, 0.0  ;;  %v4579_v20 = vsel %vm4060_vm6, %v4519_v40, 0.0 }
 0x76a   :  { %5786 = vpow2.f32 %v4470_v31  ;;  %v4591_v41 = vadd.f32 %v4590_v63, %v4589_v59  ;;  %v4359_v34 = vmax.f32 %v4357_v17, %v4358_v26  ;;  %v4374_v62 = vrot.slane %v4373_v11, 2 }
 0x76b   :  { %5788 = vpow2.f32 %v4472_v57  ;;  %v4349_v37 = vrot.slane %v4348_v18, 1  ;;  %v4782_v21 = vrot.slane %v4781_v35, 2  ;;  %v4580_v10 = vadd.f32 %v4579_v20, %v4578_v29 }
 0x76c   :  { %v4364_v16 = vmax.f32 %v4362_v54, %v4363_v44  ;;  %vm4689_vm7 = vcmp.eq.f32.partialorder %v4577_v9, 0.0  ;;  %vm4688_vm8 = vcmp.eq.f32.partialorder %v4568_v15, 0.0  ;;  %v4773_v38 = vrot.slane %v4772_v12, 2 }
 0x76d   :  { %v4797_v0 = vadd.f32 %v4796_v50, %v4795_v55  ;;  %v4592_v56 = vrot.slane %v4591_v41, 2  ;;  %v4432_v60 = vsub.f32 %v7818_v30, %v4359_v34  ;;  %v4375_v52 = vmax.f32 %v4373_v11, %v4374_v62  ;;  %v5783_v26 = vpop.eup %5782 }
 0x76e   :  { %v4365_v45 = vrot.slane %v4364_v16, 2  ;;  %v4726_v59 = vmul.f32 %v4518_v39, %v7669_v14  ;;  %v4433_v17 = vsub.f32 %v7830_v33, %v4359_v34  ;;  %v4350_v2 = vmax.f32 %v4348_v18, %v4349_v37 }
 0x76f   :  { %v7908_v3 = vadd.f32 %v4782_v21, %v4781_v35  ;;  %v4581_v53 = vrot.slane %v4580_v10, 4  ;;  %v4727_v23 = vmul.f32 %v4519_v40, %v7672_v49  ;;  %v4705_v51 = vsel %vm4689_vm7, 1.0, %v4577_v9  ;;  %v7915_v35 = vpop.f32.mrf.mxu0 }
 0x770   :  { %v4704_v4 = vsel %vm4688_vm8, 1.0, %v4568_v15  ;;  %v7911_v42 = vadd.f32 %v4773_v38, %v4772_v12  ;;  %v4366_v54 = vmax.f32 %v4364_v16, %v4365_v45  ;;  %v4593_v30 = vadd.f32 %v4592_v56, %v4591_v41  ;;  %v8362_v16 = vld [vmem:[#allocation49_spill] sm:$0xff] }
 0x771   :  { %v4798_v27 = vrot.slane %v4797_v0, 4  ;;  %v4482_v5 = vmul.f32 1.442695, %v4432_v60  ;;  %v4376_v31 = vrot.slane %v4375_v52, 1  ;;  %v4786_v39 = vsel %vm4060_vm6, %v4726_v59, 0.0  ;;  %v7923_v62 = vpop.f32.mrf.mxu0  ;;  %v8364_v60 = vld [vmem:[#allocation45_spill] sm:$0xff] }
 0x772   :  { %v4484_v33 = vmul.f32 1.442695, %v4433_v17  ;;  %v4430_v63 = vsub.f32 %v7826_v22, %v4350_v2  ;;  %v4367_v57 = vrot.slane %v4366_v54, 1  ;;  %5790 = vrcp.f32 %v4705_v51  ;;  %v8365_v59 = vld [vmem:[#allocation44_spill] sm:$0xff] }
 0x773   :  { %v4582_v40 = vadd.f32 %v4581_v53, %v4580_v10  ;;  %v4787_v11 = vsel %vm4060_vm6, %v4727_v23, 0.0  ;;  %v4431_v9 = vsub.f32 %v7838_v61, %v4350_v2  ;;  %v4784_v18 = vrot.slane %v7908_v3, 1 }
 0x774   :  { %v4775_v12 = vrot.slane %v7911_v42, 1  ;;  %5792 = vrcp.f32 %v4704_v4  ;;  %v4594_v44 = vrot.slane %v4593_v30, 1  ;;  %v7921_v15 = vadd.f32 %v4798_v27, %v4797_v0  ;;  %v8363_v0 = vld [vmem:[#allocation48_spill] sm:$0xff] }
 0x775   :  { %v5785_v55 = vpop.eup %5784  ;;  %5794 = vpow2.f32 %v4482_v5  ;;  %v4377_v22 = vmax.f32 %v4375_v52, %v4376_v31  ;;  %v4788_v20 = vadd.f32 %v4787_v11, %v4786_v39  ;;  %v4478_v41 = vmul.f32 1.442695, %v4430_v63 }
 0x776   :  { %5796 = vpow2.f32 %v4484_v33  ;;  %v4368_v34 = vmax.f32 %v4366_v54, %v4367_v57  ;;  %v4583_v61 = vrot.slane %v4582_v40, 2  ;;  %v4480_v37 = vmul.f32 1.442695, %v4431_v9 }
 0x777   :  { %v5787_v50 = vpop.eup %5786  ;;  %v4387_v21 = vsel %vm4060_vm6, %v7901_v19, -inf  ;;  %v4388_v10 = vsel %vm4060_vm6, %v7915_v35, -inf  ;;  %v4524_v38 = vmul.f32 %v5783_v26, %v8362_v16  ;;  %v4525_v56 = vmul.f32 %v5785_v55, %v8363_v0 }
 0x778   :  { %v5789_v29 = vpop.eup %5788  ;;  %v4522_v52 = vmul.f32 %v5787_v50, %v8364_v60  ;;  %v4389_v45 = vmax.f32 %v4387_v21, %v4388_v10  ;;  %v4436_v2 = vsub.f32 %v7851_v58, %v4377_v22  ;;  %v4378_v53 = vsel %vm4060_vm6, %v7906_v25, -inf }
 0x779   :  { %v4523_v17 = vmul.f32 %v5789_v29, %v8365_v59  ;;  %v4379_v23 = vsel %vm4060_vm6, %v7923_v62, -inf  ;;  %5798 = vpow2.f32 %v4478_v41  ;;  %v4434_v51 = vsub.f32 %v7861_v32, %v4368_v34 }
 0x77a   :  { %v4390_v4 = vrot.slane %v4389_v45, 4  ;;  %v4380_v54 = vmax.f32 %v4378_v53, %v4379_v23  ;;  %v4927_v27 = vpack.c.bf16 %v7847_v48, %v7847_v48  ;;  %v4595_v5 = vadd.f32 %v4594_v44, %v4593_v30 }
 0x77b   :  { %5800 = vpow2.f32 %v4480_v37  ;;  %v4435_v31 = vsub.f32 %v7881_v28, %v4368_v34  ;;  %v4789_v39 = vrot.slane %v4788_v20, 4  ;;  %v4437_v58 = vsub.f32 %v7870_v7, %v4377_v22 }
 0x77c   :  { %v4391_v33 = vmax.f32 %v4389_v45, %v4390_v4  ;;  %v4381_v63 = vrot.slane %v4380_v54, 4  ;;  %v4584_v57 = vadd.f32 %v4583_v61, %v4582_v40  ;;  %v4605_v26 = vsel %vm4060_vm6, %v4524_v38, 0.0  ;;  %v7956_v4 = vpop.f32.mrf.mxu0 }
 0x77d   :  { %v4606_v11 = vsel %vm4060_vm6, %v4525_v56, 0.0  ;;  %v4490_v32 = vmul.f32 1.442695, %v4436_v2  ;;  %v4596_v9 = vsel %vm4060_vm6, %v4522_v52, 0.0  ;;  %v4597_v55 = vsel %vm4060_vm6, %v4523_v17, 0.0 }
 0x77e   :  { %v4486_v48 = vmul.f32 1.442695, %v4434_v51  ;;  %v4392_v30 = vrot.slane %v4391_v33, 2  ;;  %v4785_v50 = vadd.f32 %v4784_v18, %v7908_v3  ;;  %v4776_v28 = vadd.f32 %v4775_v12, %v7911_v42 }
 0x77f   :  { %v4800_v7 = vrot.slane %v7921_v15, 2  ;;  %v4488_v44 = vmul.f32 1.442695, %v4435_v31  ;;  %v5791_v22 = vpop.eup %5790  ;;  %v4607_v40 = vadd.f32 %v4606_v11, %v4605_v26  ;;  %v4492_v29 = vmul.f32 1.442695, %v4437_v58 }
 0x780   :  { %v4393_v41 = vmax.f32 %v4391_v33, %v4392_v30  ;;  %v4382_v34 = vmax.f32 %v4380_v54, %v4381_v63  ;;  %v7950_v37 = vunpack.c.l.b16 %v4927_v27  ;;  %v4790_v21 = vadd.f32 %v4789_v39, %v4788_v20  ;;  %v8366_v27 = vld [vmem:[#allocation21_spill] sm:$0xff] }
 0x781   :  { %v5793_v61 = vpop.eup %5792  ;;  %v4598_v10 = vadd.f32 %v4597_v55, %v4596_v9  ;;  %5802 = vpow2.f32 %v4490_v32  ;;  %vm4691_vm9 = vcmp.eq.f32.partialorder %v4595_v5, 0.0  ;;  %v4585_v0 = vrot.slane %v4584_v57, 1 }
 0x782   :  { %v5795_v16 = vpop.eup %5794  ;;  %5804 = vpow2.f32 %v4486_v48  ;;  %v4394_v3 = vrot.slane %v4393_v41, 1  ;;  %v4732_v18 = vmul.f32 %v4524_v38, %v7669_v14  ;;  %v4733_v12 = vmul.f32 %v4525_v56, %v7672_v49  ;;  %v8367_v38 = vld [vmem:[#allocation23_spill] sm:$0xff] }
 0x783   :  { %v5797_v42 = vpop.eup %5796  ;;  %v4730_v60 = vmul.f32 %v4522_v52, %v7669_v14  ;;  %5806 = vpow2.f32 %v4488_v44  ;;  %v4608_v45 = vrot.slane %v4607_v40, 4  ;;  %v4731_v59 = vmul.f32 %v4523_v17, %v7672_v49 }
 0x784   :  { %5808 = vpow2.f32 %v4492_v29  ;;  %v4383_v20 = vrot.slane %v4382_v34, 2  ;;  %v4913_v2 = vmul.f32 %v5791_v22, %v4785_v50  ;;  %v4912_v53 = vmul.f32 %v5793_v61, %v4776_v28  ;;  %v7973_v28 = vpop.f32.mrf.mxu0  ;;  %v8368_v29 = vld [vmem:[#allocation34_spill] sm:$0xff] }
 0x785   :  { %v4791_v23 = vrot.slane %v4790_v21, 2  ;;  %v4599_v51 = vrot.slane %v4598_v10, 4  ;;  %v4586_v54 = vadd.f32 %v4585_v0, %v4584_v57  ;;  %v7959_v31 = vmul.f32 %v5795_v16, %v8366_v27 }
 0x786   :  { %v7962_v56 = vmul.f32 %v5797_v42, %v8367_v38  ;;  %v4395_v52 = vmax.f32 %v4393_v41, %v4394_v3  ;;  %v5799_v39 = vpop.eup %5798  ;;  %v4926_v17 = vpack.c.bf16 %v7856_v8, %v7856_v8  ;;  %v4707_v58 = vsel %vm4691_vm9, 1.0, %v4595_v5 }
 0x787   :  { %v4813_v33 = vsel %vm4060_vm6, %v4732_v18, 0.0  ;;  %v4814_v63 = vsel %vm4060_vm6, %v4733_v12, 0.0  ;;  %v4609_v11 = vadd.f32 %v4608_v45, %v4607_v40  ;;  %v4804_v57 = vsel %vm4060_vm6, %v4730_v60, 0.0  ;;  %v7995_v18 = vpop.f32.mrf.mxu0 }
 0x788   :  { %v5801_v26 = vpop.eup %5800  ;;  %v4805_v32 = vsel %vm4060_vm6, %v4731_v59, 0.0  ;;  %v4384_v9 = vmax.f32 %v4382_v34, %v4383_v20  ;;  %v4929_v55 = vpack.c.bf16 %v4913_v2, %v4913_v2  ;;  %v4928_v48 = vpack.c.bf16 %v4912_v53, %v4912_v53  ;;  %v8369_v34 = vld [vmem:[#allocation33_spill] sm:$0xff] }
 0x789   :  { %v7971_v30 = vadd.f32 %v4791_v23, %v4790_v21  ;;  %v4600_v50 = vadd.f32 %v4599_v51, %v4598_v10  ;;  %vm4690_vm2 = vcmp.eq.f32.partialorder %v4586_v54, 0.0  ;;  %v4623_v8 = vsel %vm4060_vm6, %v7959_v31, 0.0 }
 0x78a   :  { %v4624_v5 = vsel %vm4060_vm6, %v7962_v56, 0.0  ;;  %v4440_v44 = vsub.f32 %v7901_v19, %v4395_v52  ;;  %v7980_v22 = vadd.f32 %v4814_v63, %v4813_v33  ;;  %v7982_v40 = vadd.f32 %v4805_v32, %v4804_v57 }
 0x78b   :  { %v7985_v41 = vmul.f32 %v5799_v39, %v8368_v29  ;;  %v7988_v61 = vmul.f32 %v5801_v26, %v8369_v34  ;;  %v7990_v21 = vunpack.c.l.b16 %v4926_v17  ;;  %v4610_v10 = vrot.slane %v4609_v11, 2  ;;  %v8011_v26 = vpop.f32.mrf.mxu0  ;;  %v8373_v29 = vld [vmem:[#allocation35_spill] sm:$0xff] }
 0x78c   :  { %v4441_v16 = vsub.f32 %v7915_v35, %v4395_v52  ;;  %v4385_v0 = vrot.slane %v4384_v9, 1  ;;  %v7993_v3 = vunpack.c.l.b16 %v4929_v55  ;;  %5810 = vrcp.f32 %v4707_v58  ;;  %v8370_v55 = vld [vmem:[#allocation36_spill] sm:$0xff] }
 0x78d   :  { %v4601_v19 = vrot.slane %v4600_v50, 2  ;;  %v4625_v42 = vadd.f32 %v4624_v5, %v4623_v8  ;;  %v7997_v60 = vunpack.c.l.b16 %v4928_v48  ;;  %v4706_v45 = vsel %vm4690_vm2, 1.0, %v4586_v54  ;;  %v8371_v48 = vld [vmem:[#allocation28_spill] sm:$0xff] }
 0x78e   :  { %v5803_v12 = vpop.eup %5802  ;;  %v4793_v59 = vrot.slane %v7971_v30, 1  ;;  %v4498_v20 = vmul.f32 1.442695, %v4440_v44  ;;  %v4816_v53 = vrot.slane %v7980_v22, 4  ;;  %v4807_v35 = vrot.slane %v7982_v40, 4 }
 0x78f   :  { %v5805_v2 = vpop.eup %5804  ;;  %v4614_v23 = vsel %vm4060_vm6, %v7985_v41, 0.0  ;;  %v4615_v51 = vsel %vm4060_vm6, %v7988_v61, 0.0  ;;  %v4611_v38 = vadd.f32 %v4610_v10, %v4609_v11  ;;  %v4500_v52 = vmul.f32 1.442695, %v4441_v16 }
 0x790   :  { %v5807_v27 = vpop.eup %5806  ;;  %v4386_v39 = vmax.f32 %v4384_v9, %v4385_v0  ;;  %v4406_v54 = vsel %vm4060_vm6, %v7995_v18, -inf  ;;  %v4602_v58 = vadd.f32 %v4601_v19, %v4600_v50  ;;  %v4626_v33 = vrot.slane %v4625_v42, 4  ;;  %v8372_v50 = vld [vmem:[#allocation27_spill] sm:$0xff] }
 0x791   :  { %v5809_v17 = vpop.eup %5808  ;;  %5812 = vpow2.f32 %v4498_v20  ;;  %v4405_v63 = vsel %vm4060_vm6, %v7956_v4, -inf  ;;  %v4616_v57 = vadd.f32 %v4615_v51, %v4614_v23  ;;  %v8016_v9 = vmul.f32 %v5803_v12, %v8370_v55 }
 0x792   :  { %5814 = vpow2.f32 %v4500_v52  ;;  %v4438_v32 = vsub.f32 %v7906_v25, %v4386_v39  ;;  %v4439_v11 = vsub.f32 %v7923_v62, %v4386_v39  ;;  %v8019_v8 = vmul.f32 %v5805_v2, %v8371_v48 }
 0x793   :  { %v8022_v5 = vmul.f32 %v5807_v27, %v8372_v50  ;;  %v4407_v44 = vmax.f32 %v4405_v63, %v4406_v54  ;;  %v8025_v34 = vmul.f32 %v5809_v17, %v8373_v29  ;;  %v4397_v25 = vsel %vm4060_vm6, %v8011_v26, -inf }
 0x794   :  { %v4494_v10 = vmul.f32 1.442695, %v4438_v32  ;;  %v4496_v16 = vmul.f32 1.442695, %v4439_v11  ;;  %v4603_v0 = vrot.slane %v4602_v58, 1  ;;  %v4736_v62 = vmul.f32 %v7959_v31, %v7669_v14 }
 0x795   :  { %v4396_v19 = vsel %vm4060_vm6, %v7973_v28, -inf  ;;  %v4408_v12 = vrot.slane %v4407_v44, 4  ;;  %v4627_v20 = vadd.f32 %v4626_v33, %v4625_v42  ;;  %v4737_v2 = vmul.f32 %v7962_v56, %v7672_v49 }
 0x796   :  { %5816 = vpow2.f32 %v4494_v10  ;;  %v4398_v23 = vmax.f32 %v4396_v19, %v4397_v25  ;;  %v4617_v51 = vrot.slane %v4616_v57, 4  ;;  %v4632_v27 = vsel %vm4060_vm6, %v8019_v8, 0.0 }
 0x797   :  { %v4633_v52 = vsel %vm4060_vm6, %v8022_v5, 0.0  ;;  %v4409_v39 = vmax.f32 %v4407_v44, %v4408_v12  ;;  %v4641_v31 = vsel %vm4060_vm6, %v8016_v9, 0.0  ;;  %v4642_v54 = vsel %vm4060_vm6, %v8025_v34, 0.0 }
 0x798   :  { %5818 = vpow2.f32 %v4496_v16  ;;  %v4399_v42 = vrot.slane %v4398_v23, 4  ;;  %v4612_v56 = vrot.slane %v4611_v38, 1  ;;  %v4604_v17 = vadd.f32 %v4603_v0, %v4602_v58 }
 0x799   :  { %5820 = vrcp.f32 %v4706_v45  ;;  %v4410_v33 = vrot.slane %v4409_v39, 2  ;;  %v8043_v63 = vpop.eup %5810  ;;  %v4628_v32 = vrot.slane %v4627_v20, 2  ;;  %v4831_v11 = vsel %vm4060_vm6, %v4736_v62, 0.0 }
 0x79a   :  { %v4634_v55 = vadd.f32 %v4633_v52, %v4632_v27  ;;  %v4400_v48 = vmax.f32 %v4398_v23, %v4399_v42  ;;  %v4832_v50 = vsel %vm4060_vm6, %v4737_v2, 0.0  ;;  %v4618_v44 = vadd.f32 %v4617_v51, %v4616_v57  ;;  %v8375_v52 = vld [vmem:[#allocation42_spill] sm:$0xff] }
 0x79b   :  { %v4643_v29 = vadd.f32 %v4642_v54, %v4641_v31  ;;  %v4411_v10 = vmax.f32 %v4409_v39, %v4410_v33  ;;  %v8048_v25 = vadd.f32 %v4816_v53, %v7980_v22  ;;  %v8051_v45 = vadd.f32 %v4807_v35, %v7982_v40  ;;  %v8374_v35 = vld [vmem:[#allocation43_spill] sm:$0xff] }
 0x79c   :  { %v4734_v58 = vmul.f32 %v7985_v41, %v7669_v14  ;;  %v4401_v16 = vrot.slane %v4400_v48, 2  ;;  %v8055_v0 = vadd.f32 %v4612_v56, %v4611_v38  ;;  %vm4692_vm10 = vcmp.eq.f32.partialorder %v4604_v17, 0.0 }
 0x79d   :  { %v4735_v62 = vmul.f32 %v7988_v61, %v7672_v49  ;;  %v4412_v19 = vrot.slane %v4411_v10, 1  ;;  %v4629_v12 = vadd.f32 %v4628_v32, %v4627_v20  ;;  %v4833_v2 = vadd.f32 %v4832_v50, %v4831_v11 }
 0x79e   :  { %v5813_v57 = vpop.eup %5812  ;;  %v4635_v23 = vrot.slane %v4634_v55, 4  ;;  %v4402_v22 = vmax.f32 %v4400_v48, %v4401_v16  ;;  %v4619_v51 = vrot.slane %v4618_v44, 2  ;;  %v4644_v40 = vrot.slane %v4643_v29, 4 }
 0x79f   :  { %v5815_v53 = vpop.eup %5814  ;;  %v8060_v27 = vmul.f32 %v5813_v57, %v8374_v35  ;;  %v4413_v41 = vmax.f32 %v4411_v10, %v4412_v19  ;;  %v4822_v38 = vsel %vm4060_vm6, %v4734_v58, 0.0  ;;  %v4985_v61 = vsel %vm1901_vm15, %v7950_v37, %v7990_v21 }
 0x7a0   :  { %v8064_v39 = vmul.f32 %v5815_v53, %v8375_v52  ;;  %v4403_v31 = vrot.slane %v4402_v22, 1  ;;  %v4823_v20 = vsel %vm4060_vm6, %v4735_v62, 0.0  ;;  %v4630_v33 = vrot.slane %v4629_v12, 1 }
 0x7a1   :  { %v4659_v54 = vsel %vm4060_vm6, %v8060_v27, 0.0  ;;  %v4444_v42 = vsub.f32 %v7956_v4, %v4413_v41  ;;  %v4445_v56 = vsub.f32 %v7995_v18, %v4413_v41  ;;  %v4636_v32 = vadd.f32 %v4635_v23, %v4634_v55 }
 0x7a2   :  { %v4660_v11 = vsel %vm4060_vm6, %v8064_v39, 0.0  ;;  %v4404_v48 = vmax.f32 %v4402_v22, %v4403_v31  ;;  %v4620_v10 = vadd.f32 %v4619_v51, %v4618_v44  ;;  %v4645_v58 = vadd.f32 %v4644_v40, %v4643_v29 }
 0x7a3   :  { %v5817_v50 = vpop.eup %5816  ;;  %v4506_v16 = vmul.f32 1.442695, %v4444_v42  ;;  %v4508_v37 = vmul.f32 1.442695, %v4445_v56  ;;  %v4661_v21 = vadd.f32 %v4660_v11, %v4659_v54  ;;  %vm4693_vm12 = vcmp.eq.f32.partialorder %v8055_v0, 0.0 }
 0x7a4   :  { %v4534_v62 = vmul.f32 %v5817_v50, %v8343_v1  ;;  %v4442_v19 = vsub.f32 %v7973_v28, %v4404_v48  ;;  %v4443_v4 = vsub.f32 %v8011_v26, %v4404_v48  ;;  %v4708_v18 = vsel %vm4692_vm10, 1.0, %v4604_v17 }
 0x7a5   :  { %v5819_v57 = vpop.eup %5818  ;;  %v4834_v55 = vrot.slane %v4833_v2, 4  ;;  %v4824_v23 = vadd.f32 %v4823_v20, %v4822_v38  ;;  %5822 = vpow2.f32 %v4506_v16  ;;  %v4637_v44 = vrot.slane %v4636_v32, 2 }
 0x7a6   :  { %v8081_v22 = vpop.eup %5820  ;;  %v4535_v29 = vmul.f32 %v5819_v57, %v8344_v13  ;;  %v4650_v53 = vsel %vm4060_vm6, %v4534_v62, 0.0  ;;  %5824 = vpow2.f32 %v4508_v37  ;;  %v4631_v1 = vadd.f32 %v4630_v33, %v4629_v12 }
 0x7a7   :  { %v4621_v28 = vrot.slane %v4620_v10, 1  ;;  %v4740_v26 = vmul.f32 %v8016_v9, %v7669_v14  ;;  %v4502_v51 = vmul.f32 1.442695, %v4442_v19  ;;  %v4646_v40 = vrot.slane %v4645_v58, 2 }
 0x7a8   :  { %v4662_v35 = vrot.slane %v4661_v21, 4  ;;  %v4651_v17 = vsel %vm4060_vm6, %v4535_v29, 0.0  ;;  %v4504_v41 = vmul.f32 1.442695, %v4443_v4  ;;  %v4825_v38 = vrot.slane %v4824_v23, 4 }
 0x7a9   :  { %v4738_v52 = vmul.f32 %v8019_v8, %v7669_v14  ;;  %v4739_v13 = vmul.f32 %v8022_v5, %v7672_v49  ;;  %v4652_v31 = vadd.f32 %v4651_v17, %v4650_v53  ;;  %v4741_v12 = vmul.f32 %v8025_v34, %v7672_v49 }
 0x7aa   :  { %v4638_v20 = vadd.f32 %v4637_v44, %v4636_v32  ;;  %5826 = vpow2.f32 %v4502_v51  ;;  %v4986_v9 = vsel %vm1904_vm11, %v7997_v60, %v4985_v61  ;;  %vm4695_vm0 = vcmp.eq.f32.partialorder %v4631_v1, 0.0 }
 0x7ab   :  { %v8096_v54 = vadd.f32 %v4834_v55, %v4833_v2  ;;  %v4622_v42 = vadd.f32 %v4621_v28, %v4620_v10  ;;  %v4653_v56 = vrot.slane %v4652_v31, 4  ;;  %v4647_v33 = vadd.f32 %v4646_v40, %v4645_v58 }
 0x7ac   :  { %v4663_v11 = vadd.f32 %v4662_v35, %v4661_v21  ;;  %5828 = vpow2.f32 %v4504_v41  ;;  %v8100_v8 = vsel %vm1907_vm13, %v7993_v3, %v4986_v9  ;;  %v4849_v5 = vsel %vm4060_vm6, %v4740_v26, 0.0 }
 0x7ad   :  { %v4840_v34 = vsel %vm4060_vm6, %v4738_v52, 0.0  ;;  %v4841_v32 = vsel %vm4060_vm6, %v4739_v13, 0.0  ;;  %v4654_v48 = vadd.f32 %v4653_v56, %v4652_v31  ;;  %v4711_v60 = vsel %vm4695_vm0, 1.0, %v4631_v1 }
 0x7ae   :  { %v8105_v61 = vadd.f32 %v4825_v38, %v4824_v23  ;;  %v4850_v2 = vsel %vm4060_vm6, %v4741_v12, 0.0  ;;  %v4639_v50 = vrot.slane %v4638_v20, 1  ;;  %vm4694_vm5 = vcmp.eq.f32.partialorder %v4622_v42, 0.0 }
 0x7af   :  { %v4655_v10 = vrot.slane %v4654_v48, 2  ;;  %v4742_v58 = vmul.f32 %v4534_v62, %v7669_v14  ;;  %v4743_v3 = vmul.f32 %v4535_v29, %v7672_v49  ;;  %v8113_v16 = vsel %vm4693_vm12, 1.0, %v8055_v0 }
 0x7b0   :  { %v4648_v37 = vrot.slane %v4647_v33, 1  ;;  %v4842_v21 = vadd.f32 %v4841_v32, %v4840_v34  ;;  %v4664_v19 = vrot.slane %v4663_v11, 2  ;;  %5830 = vrcp.f32 %v4708_v18 }
 0x7b1   :  { %v4836_v4 = vrot.slane %v8096_v54, 2  ;;  %v8116_v57 = vadd.f32 %v4850_v2, %v4849_v5  ;;  %v4656_v55 = vadd.f32 %v4655_v10, %v4654_v48  ;;  %5832 = vrcp.f32 %v4711_v60 }
 0x7b2   :  { %v5823_v23 = vpop.eup %5822  ;;  %v4710_v44 = vsel %vm4694_vm5, 1.0, %v4622_v42  ;;  %v4827_v62 = vrot.slane %v8105_v61, 2  ;;  %v4640_v29 = vadd.f32 %v4639_v50, %v4638_v20  ;;  %v4858_v0 = vsel %vm4060_vm6, %v4742_v58, 0.0 }
 0x7b3   :  { %v5825_v53 = vpop.eup %5824  ;;  %v4657_v1 = vrot.slane %v4656_v55, 1  ;;  %v4859_v28 = vsel %vm4060_vm6, %v4743_v3, 0.0  ;;  %v4540_v26 = vmul.f32 %v5823_v23, %v6886_v6  ;;  %v4649_v18 = vadd.f32 %v4648_v37, %v4647_v33 }
 0x7b4   :  { %v4843_v51 = vrot.slane %v4842_v21, 4  ;;  %v4665_v40 = vadd.f32 %v4664_v19, %v4663_v11  ;;  %v4541_v35 = vmul.f32 %v5825_v53, %v8349_v24  ;;  %v4852_v17 = vrot.slane %v8116_v57, 4 }
 0x7b5   :  { %v4744_v41 = vmul.f32 %v8060_v27, %v7669_v14  ;;  %v4745_v38 = vmul.f32 %v8064_v39, %v7672_v49  ;;  %v4677_v52 = vsel %vm4060_vm6, %v4540_v26, 0.0  ;;  %5834 = vrcp.f32 %v4710_v44 }
 0x7b6   :  { %vm4696_vm7 = vcmp.eq.f32.partialorder %v4640_v29, 0.0  ;;  %v4860_v13 = vadd.f32 %v4859_v28, %v4858_v0  ;;  %v4678_v6 = vsel %vm4060_vm6, %v4541_v35, 0.0  ;;  %v4658_v12 = vadd.f32 %v4657_v1, %v4656_v55 }
 0x7b7   :  { %v5827_v31 = vpop.eup %5826  ;;  %v4679_v20 = vadd.f32 %v4678_v6, %v4677_v52  ;;  %v4748_v24 = vmul.f32 %v4540_v26, %v7669_v14  ;;  %v4749_v9 = vmul.f32 %v4541_v35, %v7672_v49  ;;  %vm4697_vm8 = vcmp.eq.f32.partialorder %v4649_v18, 0.0 }
 0x7b8   :  { %v4844_v42 = vadd.f32 %v4843_v51, %v4842_v21  ;;  %v4666_v27 = vrot.slane %v4665_v40, 1  ;;  %v4538_v56 = vmul.f32 %v5827_v31, %v8350_v43  ;;  %v4712_v33 = vsel %vm4696_vm7, 1.0, %v4640_v29 }
 0x7b9   :  { %v5829_v39 = vpop.eup %5828  ;;  %v4867_v11 = vsel %vm4060_vm6, %v4744_v41, 0.0  ;;  %v4868_v5 = vsel %vm4060_vm6, %v4745_v38, 0.0  ;;  %v4680_v34 = vrot.slane %v4679_v20, 4  ;;  %v4861_v32 = vrot.slane %v4860_v13, 4 }
 0x7ba   :  { %v4539_v48 = vmul.f32 %v5829_v39, %v8351_v46  ;;  %v4668_v60 = vsel %vm4060_vm6, %v4538_v56, 0.0  ;;  %v4746_v2 = vmul.f32 %v4538_v56, %v7669_v14  ;;  %vm4698_vm9 = vcmp.eq.f32.partialorder %v4658_v12, 0.0 }
 0x7bb   :  { %v4681_v50 = vadd.f32 %v4680_v34, %v4679_v20  ;;  %v4885_v10 = vsel %vm4060_vm6, %v4748_v24, 0.0  ;;  %v4886_v43 = vsel %vm4060_vm6, %v4749_v9, 0.0  ;;  %v4667_v58 = vadd.f32 %v4666_v27, %v4665_v40 }
 0x7bc   :  { %v4869_v3 = vadd.f32 %v4868_v5, %v4867_v11  ;;  %v4669_v37 = vsel %vm4060_vm6, %v4539_v48, 0.0  ;;  %v4747_v21 = vmul.f32 %v4539_v48, %v7672_v49  ;;  %v4845_v19 = vrot.slane %v4844_v42, 2 }
 0x7bd   :  { %5836 = vrcp.f32 %v4712_v33  ;;  %v4682_v55 = vrot.slane %v4681_v50, 2  ;;  %v4670_v46 = vadd.f32 %v4669_v37, %v4668_v60  ;;  %v8142_v23 = vpop.eup %5830  ;;  %v4714_v44 = vsel %vm4698_vm9, 1.0, %v4658_v12 }
 0x7be   :  { %v4887_v14 = vadd.f32 %v4886_v43, %v4885_v10  ;;  %v4876_v29 = vsel %vm4060_vm6, %v4746_v2, 0.0  ;;  %v4877_v53 = vsel %vm4060_vm6, %v4747_v21, 0.0  ;;  %v8146_v1 = vpop.eup %5832  ;;  %v4713_v0 = vsel %vm4697_vm8, 1.0, %v4649_v18 }
 0x7bf   :  { %v4862_v28 = vadd.f32 %v4861_v32, %v4860_v13  ;;  %v4683_v26 = vadd.f32 %v4682_v55, %v4681_v50  ;;  %v4671_v51 = vrot.slane %v4670_v46, 4  ;;  %v4837_v49 = vadd.f32 %v4836_v4, %v8096_v54 }
 0x7c0   :  { %v4853_v40 = vadd.f32 %v4852_v17, %v8116_v57  ;;  %vm4699_vm2 = vcmp.eq.f32.partialorder %v4667_v58, 0.0  ;;  %v4870_v35 = vrot.slane %v4869_v3, 4  ;;  %5838 = vrcp.f32 %v4714_v44 }
 0x7c1   :  { %v4684_v41 = vrot.slane %v4683_v26, 1  ;;  %v4672_v38 = vadd.f32 %v4671_v51, %v4670_v46  ;;  %v4878_v52 = vadd.f32 %v4877_v53, %v4876_v29  ;;  %v4828_v6 = vadd.f32 %v4827_v62, %v8105_v61 }
 0x7c2   :  { %5840 = vrcp.f32 %v4713_v0  ;;  %v4846_v18 = vadd.f32 %v4845_v19, %v4844_v42  ;;  %v4888_v13 = vrot.slane %v4887_v14, 4  ;;  %v5835_v31 = vpop.eup %5834  ;;  %v4715_v12 = vsel %vm4699_vm2, 1.0, %v4667_v58 }
 0x7c3   :  { %v4863_v20 = vrot.slane %v4862_v28, 2  ;;  %v4685_v24 = vadd.f32 %v4684_v41, %v4683_v26  ;;  %v4673_v54 = vrot.slane %v4672_v38, 2  ;;  %v4818_v4 = vrot.slane %v8048_v25, 2 }
 0x7c4   :  { %v4809_v57 = vrot.slane %v8051_v45, 2  ;;  %v4854_v17 = vrot.slane %v4853_v40, 2  ;;  %v4871_v9 = vadd.f32 %v4870_v35, %v4869_v3  ;;  %5842 = vrcp.f32 %v8113_v16 }
 0x7c5   :  { %vm4701_vm10 = vcmp.eq.f32.partialorder %v4685_v24, 0.0  ;;  %v4674_v27 = vadd.f32 %v4673_v54, %v4672_v38  ;;  %v4879_v56 = vrot.slane %v4878_v52, 4  ;;  %v4829_v61 = vrot.slane %v4828_v6, 1 }
 0x7c6   :  { %5844 = vrcp.f32 %v4715_v12  ;;  %v4717_v62 = vsel %vm4701_vm10, 1.0, %v4685_v24  ;;  %v4889_v42 = vadd.f32 %v4888_v13, %v4887_v14  ;;  %v4838_v39 = vrot.slane %v4837_v49, 1 }
 0x7c7   :  { %v4847_v33 = vrot.slane %v4846_v18, 1  ;;  %v4864_v11 = vadd.f32 %v4863_v20, %v4862_v28  ;;  %v4675_v5 = vrot.slane %v4674_v27, 1  ;;  %v4855_v34 = vadd.f32 %v4854_v17, %v4853_v40 }
 0x7c8   :  { %v4872_v32 = vrot.slane %v4871_v9, 2  ;;  %5846 = vrcp.f32 %v4717_v62  ;;  %v4801_v48 = vadd.f32 %v4800_v7, %v7921_v15  ;;  %v4810_v16 = vadd.f32 %v4809_v57, %v8051_v45 }
 0x7c9   :  { %v4676_v60 = vadd.f32 %v4675_v5, %v4674_v27  ;;  %v4880_v2 = vadd.f32 %v4879_v56, %v4878_v52  ;;  %v4794_v10 = vadd.f32 %v4793_v59, %v7971_v30  ;;  %v4819_v43 = vadd.f32 %v4818_v4, %v8048_v25 }
 0x7ca   :  { %v5837_v50 = vpop.eup %5836  ;;  %v4830_v58 = vadd.f32 %v4829_v61, %v4828_v6  ;;  %v4890_v3 = vrot.slane %v4889_v42, 2  ;;  %v4839_v37 = vadd.f32 %v4838_v39, %v4837_v49  ;;  %v4848_v21 = vadd.f32 %v4847_v33, %v4846_v18 }
 0x7cb   :  { %v4865_v19 = vrot.slane %v4864_v11, 1  ;;  %vm4700_vm12 = vcmp.eq.f32.partialorder %v4676_v60, 0.0  ;;  %v4856_v46 = vrot.slane %v4855_v34, 1  ;;  %v4873_v15 = vadd.f32 %v4872_v32, %v4871_v9 }
 0x7cc   :  { %v4918_v55 = vmul.f32 %v5835_v31, %v4830_v58  ;;  %v4716_v7 = vsel %vm4700_vm12, 1.0, %v4676_v60  ;;  %v4811_v45 = vrot.slane %v4810_v16, 1  ;;  %v4920_v44 = vmul.f32 %v5837_v50, %v4848_v21 }
 0x7cd   :  { %v4881_v14 = vrot.slane %v4880_v2, 2  ;;  %5848 = vrcp.f32 %v4716_v7  ;;  %v5839_v29 = vpop.eup %5838  ;;  %v4802_v53 = vrot.slane %v4801_v48, 1  ;;  %v4919_v30 = vmul.f32 %v8146_v1, %v4839_v37 }
 0x7ce   :  { %v4891_v59 = vadd.f32 %v4890_v3, %v4889_v42  ;;  %v4914_v0 = vmul.f32 %v8081_v22, %v4794_v10  ;;  %v4866_v28 = vadd.f32 %v4865_v19, %v4864_v11  ;;  %v4820_v26 = vrot.slane %v4819_v43, 1 }
 0x7cf   :  { %v5841_v25 = vpop.eup %5840  ;;  %v4934_v51 = vpack.c.bf16 %v4918_v55, %v4918_v55  ;;  %v4857_v49 = vadd.f32 %v4856_v46, %v4855_v34  ;;  %v4874_v40 = vrot.slane %v4873_v15, 1  ;;  %v4812_v35 = vadd.f32 %v4811_v45, %v4810_v16 }
 0x7d0   :  { %v4936_v41 = vpack.c.bf16 %v4920_v44, %v4920_v44  ;;  %v4922_v38 = vmul.f32 %v5839_v29, %v4866_v28  ;;  %v4882_v52 = vadd.f32 %v4881_v14, %v4880_v2  ;;  %v4803_v18 = vadd.f32 %v4802_v53, %v4801_v48  ;;  %v8376_v28 = vld [vmem:[#allocation18_spill] sm:$0xff] }
 0x7d1   :  { %v5843_v6 = vpop.eup %5842  ;;  %v4935_v13 = vpack.c.bf16 %v4919_v30, %v4919_v30  ;;  %v4921_v31 = vmul.f32 %v5841_v25, %v4857_v49  ;;  %v4892_v12 = vrot.slane %v4891_v59, 1  ;;  %v4916_v1 = vmul.f32 %v8142_v23, %v4812_v35 }
 0x7d2   :  { %v4930_v24 = vpack.c.bf16 %v4914_v0, %v4914_v0  ;;  %v4977_v54 = vunpack.c.l.b16 %v4934_v51  ;;  %v4875_v22 = vadd.f32 %v4874_v40, %v4873_v15  ;;  %v4915_v4 = vmul.f32 %v8043_v63, %v4803_v18  ;;  %v5852_v0 = vld [vmem:[%s8210_s11] sm:$0x7] }
 0x7d3   :  { %v5845_v20 = vpop.eup %5844  ;;  %v4979_v17 = vunpack.c.l.b16 %v4936_v41  ;;  %v4883_v9 = vrot.slane %v4882_v52, 1  ;;  %v4821_v27 = vadd.f32 %v4820_v26, %v4819_v43  ;;  %v4938_v56 = vpack.c.bf16 %v4922_v38, %v4922_v38  ;;  %v5197_v51 = vld [vmem:[%s8212_s13] ss:$0 sm:$0xff] }
 0x7d4   :  { %v4978_v61 = vunpack.c.l.b16 %v4935_v13  ;;  %v4937_v62 = vpack.c.bf16 %v4921_v31, %v4921_v31  ;;  %v4893_v42 = vadd.f32 %v4892_v12, %v4891_v59  ;;  %v4923_v39 = vmul.f32 %v5845_v20, %v4875_v22 }
 0x7d5   :  { %v5847_v57 = vpop.eup %5846  ;;  %v4932_v33 = vpack.c.bf16 %v4916_v1, %v4916_v1  ;;  %v4973_v11 = vunpack.c.l.b16 %v4930_v24  ;;  %v4917_v5 = vmul.f32 %v5843_v6, %v4821_v27  ;;  %v4931_v32 = vpack.c.bf16 %v4915_v4, %v4915_v4 }
 0x7d6   :  { %v4925_v34 = vmul.f32 %v5847_v57, %v4893_v42  ;;  %v4992_v23 = vsel %vm1901_vm15, %v4978_v61, %v4977_v54  ;;  %v4884_v48 = vadd.f32 %v4883_v9, %v4882_v52  ;;  %v4981_v16 = vunpack.c.l.b16 %v4938_v56 }
 0x7d7   :  { %v4993_v63 = vsel %vm1904_vm11, %v4979_v17, %v4992_v23  ;;  %v4980_v2 = vunpack.c.l.b16 %v4937_v62  ;;  %v4939_v50 = vpack.c.bf16 %v4923_v39, %v4923_v39  ;;  %v4975_v43 = vunpack.c.l.b16 %v4932_v33 }
 0x7d8   :  { %v4988_v58 = vsel %vm1910_vm14, %v4973_v11, %v8100_v8  ;;  %v4933_v3 = vpack.c.bf16 %v4917_v5, %v4917_v5  ;;  %v4941_v37 = vpack.c.bf16 %v4925_v34, %v4925_v34  ;;  %v4974_v21 = vunpack.c.l.b16 %v4931_v32 }
 0x7d9   :  { %v4994_v19 = vsel %vm1907_vm13, %v4980_v2, %v4993_v63  ;;  %v4982_v15 = vunpack.c.l.b16 %v4939_v50  ;;  %v3504_v26 = vrot.slane %v5852_v0, %v8376_v28  ;;  %vm5058_vm15 = vcmask 31744  }
 0x7da   :  { %v5849_v60 = vpop.eup %5848  ;;  %v4995_v46 = vsel %vm1910_vm14, %v4981_v16, %v4994_v19  ;;  %v4989_v7 = vsel %vm1913_vm1, %v4974_v21, %v4988_v58  ;;  %v4976_v14 = vunpack.c.l.b16 %v4933_v3  ;;  %v4984_v29 = vunpack.c.l.b16 %v4941_v37 }
 0x7db   :  { %v4924_v10 = vmul.f32 %v5849_v60, %v4884_v48  ;;  %v4990_v44 = vsel %vm1916_vm3, %v4975_v43, %v4989_v7  ;;  %v4996_v53 = vsel %vm1913_vm1, %v4982_v15, %v4995_v46  ;;  %v3714_v40 = vadd.f32 %v7667_v36, %v3504_v26 }
 0x7dc   :  { %v4991_v30 = vsel %vm1919_vm4, %v4976_v14, %v4990_v44  ;;  %v3717_v6 = vadd.f32 %v7678_v47, %v3504_v26 }
 0x7dd   :  { %v4940_v55 = vpack.c.bf16 %v4924_v10, %v4924_v10 }
 0x7df   :  { %v4983_v45 = vunpack.c.l.b16 %v4940_v55 }
 0x7e1   :  { %v4997_v8 = vsel %vm1916_vm3, %v4983_v45, %v4996_v53 }
 0x7e2   :  { %v4998_v59 = vsel %vm1919_vm4, %v4984_v29, %v4997_v8 }
 0x7e3   :  { %v4999_v25 = vpack.c.b16 %v4998_v59, %v4991_v30 }
 0x7e5   :  { %5425 = vmatmul.mubr.msk.bf16.vlgmr.msra.gmra.mxu1 %vm4060_vm6, %v4999_v25 }
 0x8a5   :  { %v5049_v49 = vpop.f32.mrf.mxu1 }
 0x8a6   :  { %v5050_v35 = vadd.f32 %v5197_v51, %v5049_v49 }
 0x8a7   :  { %v5426_v41 = vpop.f32.mrf.mxu1 }
 0x8a8   :  { %v5056_v38 = vadd.f32 %v5050_v35, %v3714_v40 }
 0x8a9   :  { %v5052_v52 = vpop.f32.mrf.mxu1 }
 0x8aa   :  { %v5059_v18 = vsel %vm5058_vm15, %v5056_v38, 0.0  ;;  %v5053_v13 = vadd.f32 %v5197_v51, %v5052_v52 }
 0x8ab   :  { %5061 = vst [vmem:[%s8214_s15] sm:$0xff] %v5059_v18  ;;  %v5427_v31 = vpop.f32.mrf.mxu1 }
 0x8ac   :  { %v5057_v12 = vadd.f32 %v5053_v13, %v3717_v6 }
 0x8ae   :  { %v5060_v20 = vsel %vm5058_vm15, %v5057_v12, 0.0 }
 0x8af   :  { %5062 = vst [vmem:[%s8214_s15 + $0x8] sm:$0xff] %v5060_v20 }
 0x8b0   :  { %5067 = vsyncpa [#allocation3], 1 }
 0x8b1   :  { %5068 = vsyncpa [#allocation5], 1 }
 0x8b2   :  { %5069 = vsyncpa [#allocation8], 1 }
 0x8b3   :  { %5070 = vsyncpa [#allocation11], 1 }

</bundles_post_ra>
